<compile_context>
chip_gen: v7x
topology: tpu7x:2x2x1
jax: 0.10.0
libtpu: 0.0.40
codegen_flags: <defaults>
</compile_context>

<pallas_src>
import functools

import jax
import jax.numpy as jnp
from jax.experimental import pallas as pl
from jax.experimental.pallas import tpu as pltpu

D_IN = 1024       # size_dict['small'][0]
D_HID = 512       # size_dict['small'][1]
C_PAD = 128       # pad n_classes up to one lane-width
TM_DEFAULT = 512  # row tile (instances per grid step)


def _round_up(x, m):
    return (x + m - 1) // m * m


def _choose_tm(n, tm_req):
    """Row-tile heuristic: big tiles, but >=4 grid steps on large bags."""
    tm = max(16, min(int(tm_req), _round_up(n, 16)))
    if n >= 4 * 256:                       # only shrink if tiles stay >=256 rows
        tm = min(tm, _round_up(pl.cdiv(n, 4), 16))
    return _round_up(tm, 16)               # bf16 output sublane packing


def _mil_kernel(n_classes, h_ref, w1_ref, b1_ref, w2_ref, b2_ref, probs_ref):
    # fc: Linear(1024, 512) + ReLU.  h arrives f32; cast per tile (VPU, cheap).
    h_bf = h_ref[...].astype(jnp.bfloat16)
    feat = jnp.dot(h_bf, w1_ref[...], preferred_element_type=jnp.float32)
    feat = jnp.maximum(feat + b1_ref[...], 0.0)

    # stacked per-class heads: Linear(512, 1) x n_classes (padded to C_PAD)
    logits = jnp.dot(feat.astype(w2_ref.dtype), w2_ref[...],
                     preferred_element_type=jnp.float32) + b2_ref[...]

    # masked softmax over the real classes (dim=1); padded columns -> exactly 0
    col = jax.lax.broadcasted_iota(jnp.int32, logits.shape, 1)
    valid = col < n_classes
    masked = jnp.where(valid, logits, jnp.float32(-1e30))
    mx = jnp.max(masked, axis=1, keepdims=True)
    ex = jnp.where(valid, jnp.exp(masked - mx), 0.0)
    denom = jnp.sum(ex, axis=1, keepdims=True)
    # approx reciprocal (EUP slot): rows don't sum to exactly 1 (~1e-3 rel err);
    # downstream use is argmax / return value with 1e-2 tolerance.
    probs_ref[...] = (ex * pl.reciprocal(denom, approx=True)).astype(probs_ref.dtype)


def prepare_params(params, n_classes):
    """Pad / cast parameters once, outside the per-call path."""
    assert n_classes <= C_PAD, "n_classes must be <= 128 (one lane tile)"
    w1, b1, w2, b2 = params  # (D_IN,D_HID), (D_HID,), (D_HID,n_classes), (n_classes,)
    w1_bf = w1.astype(jnp.bfloat16)
    w2_pad = jnp.zeros((D_HID, C_PAD), jnp.bfloat16).at[:, :n_classes].set(
        w2.astype(jnp.bfloat16))
    b1_row = b1.reshape(1, D_HID).astype(jnp.float32)
    b2_row = jnp.zeros((1, C_PAD), jnp.float32).at[0, :n_classes].set(
        b2.astype(jnp.float32))
    return w1_bf, b1_row, w2_pad, b2_row


@functools.partial(jax.jit, static_argnames=("n_classes", "return_features", "tm"))
def mil_fc_mc_forward(h, prepared, n_classes, return_features=False,
                      tm=TM_DEFAULT):
    """Pallas equivalent of MIL_fc_mc.forward (gate/dropout unused, top_k=1)."""
    N = h.shape[0]
    w1_bf, b1_row, w2_pad, b2_row = prepared

    tm = _choose_tm(N, tm)
    grid = (pl.cdiv(N, tm),)   # ragged last tile: OOB reads unused, writes masked

    def _const(shape):  # weights resident across grid steps (DMA'd once)
        return pl.BlockSpec(shape, lambda i: (0, 0))

    probs_pad = pl.pallas_call(
        functools.partial(_mil_kernel, n_classes),
        grid=grid,
        out_shape=jax.ShapeDtypeStruct((N, C_PAD), jnp.bfloat16),
        in_specs=[
            pl.BlockSpec((tm, D_IN), lambda i: (i, 0)),   # h row tile (f32)
            _const((D_IN, D_HID)),                        # w1 (bf16, ~1 MiB)
            _const((1, D_HID)),                           # b1 (f32)
            _const((D_HID, C_PAD)),                       # w2 padded (bf16)
            _const((1, C_PAD)),                           # b2 padded (f32)
        ],
        out_specs=pl.BlockSpec((tm, C_PAD), lambda i: (i, 0)),
        compiler_params=pltpu.CompilerParams(
            dimension_semantics=("parallel",),
            vmem_limit_bytes=32 * 1024 * 1024),
    )(h, w1_bf, b1_row, w2_pad, b2_row)

    # Flat argmax BEFORE any slicing.  Padded class columns are exactly 0
    # (strictly below any real softmax prob) and there are no padded rows
    # (ragged tile writes were masked), so this matches argmax over the
    # row-major flattened (N, n_classes) array.
    m = jnp.argmax(probs_pad.reshape(1, -1), axis=1)   # (1,)
    top_row = m // C_PAD                               # (1,)
    Y_hat = m % C_PAD                                  # (1,)  guaranteed < n_classes

    # One column slice produces the returned f32 (N, n_classes) probs.
    y_probs = probs_pad[:, :n_classes].astype(jnp.float32)
    Y_prob = y_probs[top_row]                          # (1, n_classes)

    # Recompute only the winning row's feat / logits (tiny) instead of
    # streaming full feat / logits arrays out of the kernel.
    h_top = h[top_row].astype(jnp.bfloat16)            # (1, D_IN)
    feat_top = jnp.maximum(
        jnp.dot(h_top, w1_bf, preferred_element_type=jnp.float32) + b1_row, 0.0)
    top_instance = (jnp.dot(feat_top.astype(jnp.bfloat16), w2_pad[:, :n_classes],
                            preferred_element_type=jnp.float32)
                    + b2_row[:, :n_classes])           # (1, n_classes)

    results_dict = {}
    if return_features:
        results_dict["features"] = feat_top            # (1, D_HID)
    return top_instance, Y_prob, Y_hat, y_probs, results_dict


def init_params(key, n_classes):
    """Deterministic synthetic params matching nn.Linear shapes."""
    k1, k2, k3 = jax.random.split(key, 3)
    w1 = jax.random.normal(k1, (D_IN, D_HID), jnp.float32) * 0.02
    b1 = jnp.zeros((D_HID,), jnp.float32)
    # n_classes x Linear(512, 1), stacked column-wise -> (D_HID, n_classes)
    w2 = jax.random.normal(k2, (D_HID, n_classes), jnp.float32) * 0.02
    b2 = jax.random.normal(k3, (n_classes,), jnp.float32) * 0.01
    return w1, b1, w2, b2


if __name__ == "__main__":
    # TODO(synk): dropout (train-mode) and the unused `gate` flag are not implemented.
    n_classes = 4     # module asserts n_classes > 2
    N = 300           # instances in the bag (ragged vs the row tile)

    key = jax.random.PRNGKey(0)
    k_h, k_p = jax.random.split(key)
    h = jax.random.normal(k_h, (N, D_IN), jnp.float32)
    params = init_params(k_p, n_classes)
    prepared = prepare_params(params, n_classes)   # pad/cast once

    top_instance, Y_prob, Y_hat, y_probs, results = mil_fc_mc_forward(
        h, prepared, n_classes, return_features=True)
    jax.block_until_ready((top_instance, Y_prob, Y_hat, y_probs,
                           results["features"]))

    # no-feature path uses the identical kernel; must agree exactly
    _, _, _, y_probs_nf, _ = mil_fc_mc_forward(
        h, prepared, n_classes, return_features=False)
    jax.block_until_ready(y_probs_nf)
    assert jnp.allclose(y_probs, y_probs_nf)

    # --- reference check (pure f32 JAX); bf16 compute -> relaxed tolerance ---
    w1, b1, w2, b2 = params
    feat_ref = jnp.maximum(h @ w1 + b1, 0.0)
    logits_ref = feat_ref @ w2 + b2
    probs_ref = jax.nn.softmax(logits_ref, axis=1)
    assert y_probs.shape == (N, n_classes)
    assert jnp.allclose(y_probs, probs_ref, atol=1e-2)

    # internal consistency of the top-k=1 glue (argmax over kernel's own probs)
    m_k = int(jnp.argmax(y_probs.reshape(-1)))
    row_k, cls_k = m_k // n_classes, m_k % n_classes
    assert int(Y_hat[0]) == cls_k
    assert jnp.allclose(Y_prob[0], y_probs[row_k], atol=1e-6)
    assert jnp.allclose(top_instance[0], logits_ref[row_k], atol=1e-2)
    assert jnp.allclose(results["features"][0], feat_ref[row_k], atol=1e-2)

    print("KERNEL_OK")
</pallas_src>

<mosaic_0001>
module attributes {stable_mosaic.version = 11 : i64} {
  func.func @_mil_kernel(%arg0: i32, %arg1: memref<304x1024xf32, #tpu.memory_space<vmem>>, %arg2: memref<1024x512xbf16, #tpu.memory_space<vmem>>, %arg3: memref<1x512xf32, #tpu.memory_space<vmem>>, %arg4: memref<512x128xbf16, #tpu.memory_space<vmem>>, %arg5: memref<1x128xf32, #tpu.memory_space<vmem>>, %arg6: memref<304x128xbf16, #tpu.memory_space<vmem>>) attributes {dimension_semantics = [#tpu.dimension_semantics<parallel>], iteration_bounds = array<i64: 1>, scalar_prefetch = 0 : i64, scratch_operands = 0 : i64, tpu.core_type = #tpu.core_type<tc>, window_params = [{transform_indices = @transform_0, window_bounds = array<i64: 304, 1024>}, {pipeline_mode = #tpu.pipeline_mode<synchronous>, transform_indices = @transform_1, window_bounds = array<i64: 1024, 512>}, {pipeline_mode = #tpu.pipeline_mode<synchronous>, transform_indices = @transform_2, window_bounds = array<i64: 1, 512>}, {pipeline_mode = #tpu.pipeline_mode<synchronous>, transform_indices = @transform_3, window_bounds = array<i64: 512, 128>}, {pipeline_mode = #tpu.pipeline_mode<synchronous>, transform_indices = @transform_4, window_bounds = array<i64: 1, 128>}, {transform_indices = @transform_5, window_bounds = array<i64: 304, 128>}]} {
    %c0 = arith.constant 0 : index
    %c0_0 = arith.constant 0 : index
    %0 = vector.load %arg1[%c0, %c0_0] : memref<304x1024xf32, #tpu.memory_space<vmem>>, vector<304x1024xf32>
    %1 = arith.truncf %0 : vector<304x1024xf32> to vector<304x1024xbf16>
    %c0_1 = arith.constant 0 : index
    %c0_2 = arith.constant 0 : index
    %2 = vector.load %arg2[%c0_1, %c0_2] : memref<1024x512xbf16, #tpu.memory_space<vmem>>, vector<1024x512xbf16>
    %cst = arith.constant dense<0.000000e+00> : vector<304x512xf32>
    %3 = tpu.matmul %1, %2, %cst {dimension_numbers = #tpu.dot_dimension_numbers<[1], [0], [0], [1], [0, 0, 1, 1], [], []>} : vector<304x1024xbf16>, vector<1024x512xbf16>, vector<304x512xf32> -> vector<304x512xf32>
    %c0_3 = arith.constant 0 : index
    %c0_4 = arith.constant 0 : index
    %4 = vector.load %arg3[%c0_3, %c0_4] : memref<1x512xf32, #tpu.memory_space<vmem>>, vector<1x512xf32>
    %5 = vector.broadcast %4 : vector<1x512xf32> to vector<304x512xf32>
    %6 = arith.addf %3, %5 : vector<304x512xf32>
    %cst_5 = arith.constant 0.000000e+00 : f32
    %7 = vector.broadcast %cst_5 : f32 to vector<304x512xf32>
    %8 = arith.maximumf %6, %7 : vector<304x512xf32>
    %9 = arith.truncf %8 : vector<304x512xf32> to vector<304x512xbf16>
    %c0_6 = arith.constant 0 : index
    %c0_7 = arith.constant 0 : index
    %10 = vector.load %arg4[%c0_6, %c0_7] : memref<512x128xbf16, #tpu.memory_space<vmem>>, vector<512x128xbf16>
    %cst_8 = arith.constant dense<0.000000e+00> : vector<304x128xf32>
    %11 = tpu.matmul %9, %10, %cst_8 {dimension_numbers = #tpu.dot_dimension_numbers<[1], [0], [0], [1], [0, 0, 1, 1], [], []>} : vector<304x512xbf16>, vector<512x128xbf16>, vector<304x128xf32> -> vector<304x128xf32>
    %c0_9 = arith.constant 0 : index
    %c0_10 = arith.constant 0 : index
    %12 = vector.load %arg5[%c0_9, %c0_10] : memref<1x128xf32, #tpu.memory_space<vmem>>, vector<1x128xf32>
    %13 = vector.broadcast %12 : vector<1x128xf32> to vector<304x128xf32>
    %14 = arith.addf %11, %13 : vector<304x128xf32>
    %15 = tpu.iota {dimensions = array<i32: 1>} : vector<304x128xi32>
    %c4_i32 = arith.constant 4 : i32
    %16 = vector.broadcast %c4_i32 : i32 to vector<304x128xi32>
    %17 = arith.cmpi slt, %15, %16 : vector<304x128xi32>
    %cst_11 = arith.constant -1.000000e+30 : f32
    %18 = vector.broadcast %cst_11 : f32 to vector<304x128xf32>
    %19 = arith.select %17, %14, %18 : vector<304x128xi1>, vector<304x128xf32>
    %cst_12 = arith.constant dense<0xFF800000> : vector<304xf32>
    %20 = vector.multi_reduction <maximumf>, %19, %cst_12 [1] : vector<304x128xf32> to vector<304xf32>
    %21 = vector.shape_cast %20 : vector<304xf32> to vector<304x1xf32>
    %22 = vector.broadcast %21 : vector<304x1xf32> to vector<304x128xf32>
    %23 = arith.subf %19, %22 : vector<304x128xf32>
    %24 = math.exp %23 : vector<304x128xf32>
    %cst_13 = arith.constant 0.000000e+00 : f32
    %25 = vector.broadcast %cst_13 : f32 to vector<304x128xf32>
    %26 = arith.select %17, %24, %25 : vector<304x128xi1>, vector<304x128xf32>
    %cst_14 = arith.constant dense<0.000000e+00> : vector<304xf32>
    %27 = vector.multi_reduction <add>, %26, %cst_14 [1] : vector<304x128xf32> to vector<304xf32>
    %28 = vector.shape_cast %27 : vector<304xf32> to vector<304x1xf32>
    %29 = tpu.reciprocal %28 {approx = true} : vector<304x1xf32> -> vector<304x1xf32>
    %30 = vector.broadcast %29 : vector<304x1xf32> to vector<304x128xf32>
    %31 = arith.mulf %26, %30 : vector<304x128xf32>
    %32 = arith.truncf %31 : vector<304x128xf32> to vector<304x128xbf16>
    %c0_15 = arith.constant 0 : index
    %c0_16 = arith.constant 0 : index
    %33 = vector.load %arg6[%c0_15, %c0_16] : memref<304x128xbf16, #tpu.memory_space<vmem>>, vector<304x128xbf16>
    tpu.vector_store %arg6[%c0_15, %c0_16], %32 {strides = array<i32>} : memref<304x128xbf16, #tpu.memory_space<vmem>>, vector<304x128xbf16>,
    return
  }
  func.func @transform_0(%arg0: i32) -> (i32, i32) {
    %c0_i32 = arith.constant 0 : i32
    %c0_i32_0 = arith.constant 0 : i32
    return %arg0, %c0_i32 : i32, i32
  }
  func.func @transform_1(%arg0: i32) -> (i32, i32) {
    %c0_i32 = arith.constant 0 : i32
    %c0_i32_0 = arith.constant 0 : i32
    %c0_i32_1 = arith.constant 0 : i32
    return %c0_i32, %c0_i32_0 : i32, i32
  }
  func.func @transform_2(%arg0: i32) -> (i32, i32) {
    %c0_i32 = arith.constant 0 : i32
    %c0_i32_0 = arith.constant 0 : i32
    %c0_i32_1 = arith.constant 0 : i32
    return %c0_i32, %c0_i32_0 : i32, i32
  }
  func.func @transform_3(%arg0: i32) -> (i32, i32) {
    %c0_i32 = arith.constant 0 : i32
    %c0_i32_0 = arith.constant 0 : i32
    %c0_i32_1 = arith.constant 0 : i32
    return %c0_i32, %c0_i32_0 : i32, i32
  }
  func.func @transform_4(%arg0: i32) -> (i32, i32) {
    %c0_i32 = arith.constant 0 : i32
    %c0_i32_0 = arith.constant 0 : i32
    %c0_i32_1 = arith.constant 0 : i32
    return %c0_i32, %c0_i32_0 : i32, i32
  }
  func.func @transform_5(%arg0: i32) -> (i32, i32) {
    %c0_i32 = arith.constant 0 : i32
    %c0_i32_0 = arith.constant 0 : i32
    return %arg0, %c0_i32 : i32, i32
  }
}

</mosaic_0001>

<bundles_post_ra>
// kernel: mil_fc_mc_forward.1
= control target key start
LH: loop header
LB: loop body
LE: loop exit
PB: predicated region body
PF: predicated region fallthrough
CT: control target
= control target key end

     0   :  { %10 = vsyncpa [#allocation3], 0  ;;  %s8956_s0 = inlined_call_operand.hbm [shape: f32[300,1024], index: 0, kind: input, shape index: {}]   ;;  %s8957_s1 = inlined_call_operand.hbm [shape: bf16[1024,512], index: 1, kind: input, shape index: {}]   ;;  %s8958_s2 = inlined_call_operand.hbm [shape: f32[1,512], index: 2, kind: input, shape index: {}]   ;;  %s8959_s3 = inlined_call_operand.hbm [shape: bf16[512,128], index: 3, kind: input, shape index: {}]   ;;  %s8960_s4 = inlined_call_operand.hbm [shape: f32[1,128], index: 4, kind: input, shape index: {}]   ;;  %s8961_s5 = inlined_call_operand.vmem [shape: bf16[300,128], index: 5, kind: output, shape index: {}]  }
   0x1   :  { %11 = vsyncpa [#allocation5], 0 }
   0x2   :  { %12 = vsyncpa [#allocation8], 0  ;;  %s7257_s18 = smov [#allocation4]   ;;  %s7141_s22 = scalar_lea.hbm %s8957_s1, 32768 }
   0x3   :  { %s30_s19 = sshll.u32 %s7257_s18, 4  ;;  %p7142_p0 = scmp.ne.s32.totalorder %s8957_s1, %s7141_s22  ;;  %s31_s19 = int_to_ptr.vmem [resolvable:$true] %s30_s19 }
   0x4   :  { %p7145_p1 = scmp.lt.u32.totalorder %s7141_s22, %s8957_s1 }
   0x6   :  { %p7147_p2 = pnand %p7145_p1, %p7142_p0 }
   0x8   :  { %7150 = shalt.err (!%p7147_p2)
}
   0x9   :  { %s7151_s27 = scalar_lea.vmem %s31_s19, 32768  ;;  %p7156_p4 = scmp.lt.s32.totalorder %s31_s19, %s31_s19 }
   0xa   :  { %p7152_p3 = scmp.ne.s32.totalorder %s31_s19, %s7151_s27  ;;  %p7157_p5 = scmp.lt.s32.totalorder %s7151_s27, %s7151_s27 }
   0xc   :  { %p7158_p6 = por %p7157_p5, %p7156_p4 }
   0xe   :  { %p7159_p7 = pnand %p7158_p6, %p7152_p3 }
  0x10   :  { %7162 = shalt.err (!%p7159_p7)
}
  0x11   :  { %s7258_s28 = smov 256   ;;  %s7259_s29 = smov 16  }
  0x12   :  { %36 = dma.hbm_to_vmem [thread:$0]  %s8957_s1, 32768, %s31_s19, [#allocation5], %s7258_s28, %s7258_s28, %s7259_s29  }
  0x13   :  { %s7260_s7 = smov [#allocation7]   ;;  %s7261_s9 = smov [#allocation2]  }
  0x14   :  { %s52_s8 = sshll.u32 %s7260_s7, 4  ;;  %s18_s10 = sshll.u32 %s7261_s9, 4  ;;  %s53_s8 = int_to_ptr.vmem [resolvable:$true] %s52_s8  ;;  %s19_s10 = int_to_ptr.vmem [resolvable:$true] %s18_s10 }
  0x15   :  { %s7163_s13 = scalar_lea.hbm %s8959_s3, 4096 }
  0x16   :  { %p7164_p8 = scmp.ne.s32.totalorder %s8959_s3, %s7163_s13  ;;  %p7167_p9 = scmp.lt.u32.totalorder %s7163_s13, %s8959_s3 }
  0x18   :  { %p7169_p10 = pnand %p7167_p9, %p7164_p8 }
  0x1a   :  { %7172 = shalt.err (!%p7169_p10)
}
  0x1b   :  { %s7173_s1 = scalar_lea.vmem %s53_s8, 4096  ;;  %p7178_p12 = scmp.lt.s32.totalorder %s53_s8, %s53_s8 }
  0x1c   :  { %p7174_p11 = scmp.ne.s32.totalorder %s53_s8, %s7173_s1  ;;  %p7179_p13 = scmp.lt.s32.totalorder %s7173_s1, %s7173_s1 }
  0x1e   :  { %p7180_p0 = por %p7179_p13, %p7178_p12 }
  0x20   :  { %p7181_p1 = pnand %p7180_p0, %p7174_p11 }
  0x22   :  { %7184 = shalt.err (!%p7181_p1)
}
  0x23   :  { %s7262_s18 = smov 64   ;;  %s7263_s19 = smov 4  }
  0x24   :  { %58 = dma.hbm_to_vmem [thread:$0]  %s8959_s3, 4096, %s53_s8, [#allocation8], %s7262_s18, %s7262_s18, %s7263_s19  }
  0x25   :  { %s7185_s24 = scalar_lea.hbm %s8956_s0, 38912 }
  0x26   :  { %p7186_p2 = scmp.ne.s32.totalorder %s8956_s0, %s7185_s24  ;;  %p7189_p3 = scmp.lt.u32.totalorder %s7185_s24, %s8956_s0 }
  0x28   :  { %p7191_p4 = pnand %p7189_p3, %p7186_p2 }
  0x2a   :  { %7194 = shalt.err (!%p7191_p4)
}
  0x2b   :  { %s7195_s29 = scalar_lea.vmem %s19_s10, 38912  ;;  %p7200_p6 = scmp.lt.s32.totalorder %s19_s10, %s19_s10 }
  0x2c   :  { %p7196_p5 = scmp.ne.s32.totalorder %s19_s10, %s7195_s29  ;;  %p7201_p7 = scmp.lt.s32.totalorder %s7195_s29, %s7195_s29 }
  0x2e   :  { %p7202_p8 = por %p7201_p7, %p7200_p6 }
  0x30   :  { %p7203_p9 = pnand %p7202_p8, %p7196_p5 }
  0x32   :  { %7206 = shalt.err (!%p7203_p9)
}
  0x33   :  { %s7264_s3 = smov 1024   ;;  %s7265_s7 = smov [#allocation6]  }
  0x34   :  { %24 = dma.hbm_to_vmem [thread:$0]  %s8956_s0, 38912, %s19_s10, [#allocation3], %s7264_s3, %s7264_s3, %s7262_s18  }
  0x35   :  { %s43_s8 = sshll.u32 %s7265_s7, 4  ;;  %s7266_s9 = smov [#allocation9]   ;;  %s44_s8 = int_to_ptr.vmem [resolvable:$true] %s43_s8 }
  0x36   :  { %s65_s11 = sshll.u32 %s7266_s9, 4  ;;  %s7207_s14 = scalar_lea.hbm %s8958_s2, 64  ;;  %s66_s11 = int_to_ptr.vmem [resolvable:$true] %s65_s11 }
  0x37   :  { %p7208_p10 = scmp.ne.s32.totalorder %s8958_s2, %s7207_s14  ;;  %p7211_p11 = scmp.lt.u32.totalorder %s7207_s14, %s8958_s2 }
  0x39   :  { %p7213_p12 = pnand %p7211_p11, %p7208_p10 }
  0x3b   :  { %7216 = shalt.err (!%p7213_p12)
}
  0x3c   :  { %s7217_s0 = scalar_lea.vmem %s44_s8, 64  ;;  %p7222_p0 = scmp.lt.s32.totalorder %s44_s8, %s44_s8 }
  0x3d   :  { %p7218_p13 = scmp.ne.s32.totalorder %s44_s8, %s7217_s0  ;;  %p7223_p1 = scmp.lt.s32.totalorder %s7217_s0, %s7217_s0 }
  0x3f   :  { %p7224_p2 = por %p7223_p1, %p7222_p0 }
  0x41   :  { %p7225_p3 = pnand %p7224_p2, %p7218_p13 }
  0x43   :  { %7228 = shalt.err (!%p7225_p3)
}
  0x44   :  { %46 = dma.hbm_to_vmem [thread:$0]  %s8958_s2, 64, %s44_s8, [#allocation5]  }
  0x45   :  { %s7229_s21 = scalar_lea.hbm %s8960_s4, 16 }
  0x46   :  { %p7230_p4 = scmp.ne.s32.totalorder %s8960_s4, %s7229_s21  ;;  %p7233_p5 = scmp.lt.u32.totalorder %s7229_s21, %s8960_s4 }
  0x48   :  { %p7235_p6 = pnand %p7233_p5, %p7230_p4 }
  0x4a   :  { %7238 = shalt.err (!%p7235_p6)
}
  0x4b   :  { %s7239_s26 = scalar_lea.vmem %s66_s11, 16  ;;  %s7243_s27 = scalar_lea.vmem %s66_s11, 32 }
  0x4c   :  { %p7240_p7 = scmp.ne.s32.totalorder %s66_s11, %s7239_s26  ;;  %p7244_p8 = scmp.lt.s32.totalorder %s66_s11, %s66_s11 }
  0x4d   :  { %p7245_p9 = scmp.lt.s32.totalorder %s7243_s27, %s7239_s26 }
  0x4f   :  { %p7246_p10 = por %p7245_p9, %p7244_p8 }
  0x51   :  { %p7247_p11 = pnand %p7246_p10, %p7240_p7 }
  0x53   :  { %7250 = shalt.err (!%p7247_p11)
}
  0x54   :  { %68 = dma.hbm_to_vmem [thread:$0]  %s8960_s4, 16, %s66_s11, [#allocation8]  }
  0x55   :  { %7251 = dma.done.wait [#allocation3], 38912  }
  0x56   :  { %7252 = vsyncadd [#allocation3], 4294928384 }
  0x57   :  { %7253 = dma.done.wait [#allocation5], 32832  }
  0x58   :  { %7254 = vsyncadd [#allocation5], 4294934464 }
  0x59   :  { %7255 = dma.done.wait [#allocation8], 4112  }
  0x5a   :  { %7256 = vsyncadd [#allocation8], 4294963184  ;;  %v6573_v0 = vld [vmem:[#allocation4 + $0x4] ss:$16 sps:$4 sm:$0xff]   ;;  %v6577_v2 = vld [vmem:[#allocation4] ss:$16 sps:$4 sm:$0xff]  }
  0x5b   :  { %v6575_v1 = vld [vmem:[#allocation4 + $0x204] ss:$16 sps:$4 sm:$0xff]   ;;  %2099 = vmatprep.subr.bf16.mxu1 %v6573_v0  ;;  %v6578_v3 = vld [vmem:[#allocation4 + $0x200] ss:$16 sps:$4 sm:$0xff]   ;;  %v86_v46 = vld [vmem:[#allocation2 + $0x8] sm:$0xff] }
  0x5c   :  { %2322 = vmatprep.subr.bf16.mxu0 %v6575_v1  ;;  %v6579_v4 = vld [vmem:[#allocation4 + $0x24] ss:$16 sps:$4 sm:$0xff]   ;;  %2100 = vmatpush1.bf16.msra.mxu1 %v6577_v2  ;;  %v6583_v6 = vld [vmem:[#allocation4 + $0x20] ss:$16 sps:$4 sm:$0xff]   ;;  %v94_v47 = vld [vmem:[#allocation2 + $0x48] sm:$0xff] }
  0x5d   :  { %2323 = vmatpush1.bf16.msra.mxu0 %v6578_v3  ;;  %v6581_v5 = vld [vmem:[#allocation4 + $0x224] ss:$16 sps:$4 sm:$0xff]   ;;  %2101 = vmatprep.subr.bf16.mxu1 %v6579_v4  ;;  %v6584_v7 = vld [vmem:[#allocation4 + $0x220] ss:$16 sps:$4 sm:$0xff]   ;;  %v88_v48 = vld [vmem:[#allocation2 + $0x18] sm:$0xff]  ;;  %v7358_v53 = vpack.c.bf16 %v94_v47, %v86_v46 }
  0x5e   :  { %2324 = vmatprep.subr.bf16.mxu0 %v6581_v5  ;;  %v6585_v8 = vld [vmem:[#allocation4 + $0x44] ss:$16 sps:$4 sm:$0xff]   ;;  %v6589_v10 = vld [vmem:[#allocation4 + $0x40] ss:$16 sps:$4 sm:$0xff]   ;;  %v96_v49 = vld [vmem:[#allocation2 + $0x58] sm:$0xff] }
  0x5f   :  { %v6587_v9 = vld [vmem:[#allocation4 + $0x244] ss:$16 sps:$4 sm:$0xff]   ;;  %v6590_v11 = vld [vmem:[#allocation4 + $0x240] ss:$16 sps:$4 sm:$0xff]   ;;  %v7360_v54 = vpack.c.bf16 %v96_v49, %v88_v48  ;;  %2131 = vmatprep.mubr.bf16.mxu1 %v7358_v53  ;;  %v6683_v46 = vld [vmem:[#allocation4 + $0x8c] ss:$16 sps:$4 sm:$0xff]  }
  0x60   :  { %2102 = vmatpush1.bf16.msra.mxu1 %v6583_v6  ;;  %v6591_v12 = vld [vmem:[#allocation4 + $0x64] ss:$16 sps:$4 sm:$0xff]   ;;  %v6595_v14 = vld [vmem:[#allocation4 + $0x60] ss:$16 sps:$4 sm:$0xff]  }
  0x61   :  { %2325 = vmatpush1.bf16.msra.mxu0 %v6584_v7  ;;  %2103 = vmatprep.subr.bf16.mxu1 %v6585_v8  ;;  %v6593_v13 = vld [vmem:[#allocation4 + $0x264] ss:$16 sps:$4 sm:$0xff]   ;;  %v6596_v15 = vld [vmem:[#allocation4 + $0x260] ss:$16 sps:$4 sm:$0xff]  }
  0x62   :  { %2326 = vmatprep.subr.bf16.mxu0 %v6587_v9  ;;  %v6597_v16 = vld [vmem:[#allocation4 + $0x84] ss:$16 sps:$4 sm:$0xff]   ;;  %v6601_v18 = vld [vmem:[#allocation4 + $0x80] ss:$16 sps:$4 sm:$0xff]   ;;  %2354 = vmatprep.mubr.bf16.mxu0 %v7360_v54 }
  0x63   :  { %v6599_v17 = vld [vmem:[#allocation4 + $0x284] ss:$16 sps:$4 sm:$0xff]   ;;  %v6602_v19 = vld [vmem:[#allocation4 + $0x280] ss:$16 sps:$4 sm:$0xff]  }
  0x64   :  { %2104 = vmatpush1.bf16.msra.mxu1 %v6589_v10  ;;  %v6603_v20 = vld [vmem:[#allocation4 + $0xa4] ss:$16 sps:$4 sm:$0xff]   ;;  %v6607_v22 = vld [vmem:[#allocation4 + $0xa0] ss:$16 sps:$4 sm:$0xff]   ;;  %v6671_v10 = vld [vmem:[#allocation4 + $0xc] ss:$16 sps:$4 sm:$0xff]  }
  0x65   :  { %2327 = vmatpush1.bf16.msra.mxu0 %v6590_v11  ;;  %2105 = vmatprep.subr.bf16.mxu1 %v6591_v12  ;;  %v6605_v21 = vld [vmem:[#allocation4 + $0x2a4] ss:$16 sps:$4 sm:$0xff]   ;;  %v6608_v23 = vld [vmem:[#allocation4 + $0x2a0] ss:$16 sps:$4 sm:$0xff]   ;;  %v102_v11 = vld [vmem:[#allocation2 + $0x88] sm:$0xff] }
  0x66   :  { %2328 = vmatprep.subr.bf16.mxu0 %v6593_v13  ;;  %v6609_v24 = vld [vmem:[#allocation4 + $0xc4] ss:$16 sps:$4 sm:$0xff]   ;;  %v6613_v26 = vld [vmem:[#allocation4 + $0xc0] ss:$16 sps:$4 sm:$0xff]   ;;  %v110_v12 = vld [vmem:[#allocation2 + $0xc8] sm:$0xff] }
  0x67   :  { %v6611_v25 = vld [vmem:[#allocation4 + $0x2c4] ss:$16 sps:$4 sm:$0xff]   ;;  %v6614_v27 = vld [vmem:[#allocation4 + $0x2c0] ss:$16 sps:$4 sm:$0xff]   ;;  %v104_v13 = vld [vmem:[#allocation2 + $0x98] sm:$0xff] }
  0x68   :  { %2106 = vmatpush1.bf16.msra.mxu1 %v6595_v14  ;;  %v6615_v28 = vld [vmem:[#allocation4 + $0xe4] ss:$16 sps:$4 sm:$0xff]   ;;  %v6619_v30 = vld [vmem:[#allocation4 + $0xe0] ss:$16 sps:$4 sm:$0xff]   ;;  %v112_v14 = vld [vmem:[#allocation2 + $0xd8] sm:$0xff] }
  0x69   :  { %2329 = vmatpush1.bf16.msra.mxu0 %v6596_v15  ;;  %2107 = vmatprep.subr.bf16.mxu1 %v6597_v16  ;;  %v6617_v29 = vld [vmem:[#allocation4 + $0x2e4] ss:$16 sps:$4 sm:$0xff]   ;;  %v6620_v31 = vld [vmem:[#allocation4 + $0x2e0] ss:$16 sps:$4 sm:$0xff]  }
  0x6a   :  { %2330 = vmatprep.subr.bf16.mxu0 %v6599_v17  ;;  %v6621_v32 = vld [vmem:[#allocation4 + $0x104] ss:$16 sps:$4 sm:$0xff]   ;;  %v6625_v34 = vld [vmem:[#allocation4 + $0x100] ss:$16 sps:$4 sm:$0xff]   ;;  %v6669_v17 = vld [vmem:[#allocation4 + $0x8] ss:$16 sps:$4 sm:$0xff]  }
  0x6b   :  { %v6623_v33 = vld [vmem:[#allocation4 + $0x304] ss:$16 sps:$4 sm:$0xff]   ;;  %v6626_v35 = vld [vmem:[#allocation4 + $0x300] ss:$16 sps:$4 sm:$0xff]  }
  0x6c   :  { %2108 = vmatpush1.bf16.msra.mxu1 %v6601_v18  ;;  %v6627_v36 = vld [vmem:[#allocation4 + $0x124] ss:$16 sps:$4 sm:$0xff]   ;;  %v6631_v38 = vld [vmem:[#allocation4 + $0x120] ss:$16 sps:$4 sm:$0xff]   ;;  %v7368_v18 = vpack.c.bf16 %v110_v12, %v102_v11 }
  0x6d   :  { %2331 = vmatpush1.bf16.msra.mxu0 %v6602_v19  ;;  %2109 = vmatprep.subr.bf16.mxu1 %v6603_v20  ;;  %v6629_v37 = vld [vmem:[#allocation4 + $0x324] ss:$16 sps:$4 sm:$0xff]   ;;  %v6632_v39 = vld [vmem:[#allocation4 + $0x320] ss:$16 sps:$4 sm:$0xff]   ;;  %v7370_v19 = vpack.c.bf16 %v112_v14, %v104_v13  ;;  %v6674_v20 = vld [vmem:[#allocation4 + $0x2c] ss:$16 sps:$4 sm:$0xff]  }
  0x6e   :  { %2332 = vmatprep.subr.bf16.mxu0 %v6605_v21  ;;  %v6633_v40 = vld [vmem:[#allocation4 + $0x144] ss:$16 sps:$4 sm:$0xff]   ;;  %v6637_v42 = vld [vmem:[#allocation4 + $0x140] ss:$16 sps:$4 sm:$0xff]   ;;  %v166_v13 = vld [vmem:[#allocation2 + $0x288] sm:$0xff] }
  0x6f   :  { %v6635_v41 = vld [vmem:[#allocation4 + $0x344] ss:$16 sps:$4 sm:$0xff]   ;;  %v6638_v43 = vld [vmem:[#allocation4 + $0x340] ss:$16 sps:$4 sm:$0xff]  }
  0x70   :  { %2110 = vmatpush1.bf16.msra.mxu1 %v6607_v22  ;;  %v6639_v44 = vld [vmem:[#allocation4 + $0x164] ss:$16 sps:$4 sm:$0xff]   ;;  %v6643_v50 = vld [vmem:[#allocation4 + $0x160] ss:$16 sps:$4 sm:$0xff]  }
  0x71   :  { %2333 = vmatpush1.bf16.msra.mxu0 %v6608_v23  ;;  %2111 = vmatprep.subr.bf16.mxu1 %v6609_v24  ;;  %v6641_v45 = vld [vmem:[#allocation4 + $0x364] ss:$16 sps:$4 sm:$0xff]   ;;  %v6644_v51 = vld [vmem:[#allocation4 + $0x360] ss:$16 sps:$4 sm:$0xff]  }
  0x72   :  { %2334 = vmatprep.subr.bf16.mxu0 %v6611_v25  ;;  %v6645_v52 = vld [vmem:[#allocation4 + $0x184] ss:$16 sps:$4 sm:$0xff]   ;;  %v6649_v56 = vld [vmem:[#allocation4 + $0x180] ss:$16 sps:$4 sm:$0xff]   ;;  %v6672_v25 = vld [vmem:[#allocation4 + $0x28] ss:$16 sps:$4 sm:$0xff]  }
  0x73   :  { %v6647_v55 = vld [vmem:[#allocation4 + $0x384] ss:$16 sps:$4 sm:$0xff]   ;;  %v6650_v57 = vld [vmem:[#allocation4 + $0x380] ss:$16 sps:$4 sm:$0xff]  }
  0x74   :  { %2112 = vmatpush1.bf16.msra.mxu1 %v6613_v26  ;;  %v6651_v58 = vld [vmem:[#allocation4 + $0x1a4] ss:$16 sps:$4 sm:$0xff]   ;;  %v6655_v60 = vld [vmem:[#allocation4 + $0x1a0] ss:$16 sps:$4 sm:$0xff]   ;;  %v118_v26 = vld [vmem:[#allocation2 + $0x108] sm:$0xff] }
  0x75   :  { %2335 = vmatpush1.bf16.msra.mxu0 %v6614_v27  ;;  %2113 = vmatprep.subr.bf16.mxu1 %v6615_v28  ;;  %v6653_v59 = vld [vmem:[#allocation4 + $0x3a4] ss:$16 sps:$4 sm:$0xff]   ;;  %v6656_v61 = vld [vmem:[#allocation4 + $0x3a0] ss:$16 sps:$4 sm:$0xff]   ;;  %v126_v27 = vld [vmem:[#allocation2 + $0x148] sm:$0xff] }
  0x76   :  { %2336 = vmatprep.subr.bf16.mxu0 %v6617_v29  ;;  %v6657_v62 = vld [vmem:[#allocation4 + $0x1c4] ss:$16 sps:$4 sm:$0xff]   ;;  %v6661_v0 = vld [vmem:[#allocation4 + $0x1c0] ss:$16 sps:$4 sm:$0xff]   ;;  %v120_v28 = vld [vmem:[#allocation2 + $0x118] sm:$0xff] }
  0x77   :  { %v6659_v63 = vld [vmem:[#allocation4 + $0x3c4] ss:$16 sps:$4 sm:$0xff]   ;;  %v6662_v1 = vld [vmem:[#allocation4 + $0x3c0] ss:$16 sps:$4 sm:$0xff]   ;;  %v128_v29 = vld [vmem:[#allocation2 + $0x158] sm:$0xff] }
  0x78   :  { %2114 = vmatpush1.bf16.msra.mxu1 %v6619_v30  ;;  %v6663_v2 = vld [vmem:[#allocation4 + $0x1e4] ss:$16 sps:$4 sm:$0xff]   ;;  %v6667_v4 = vld [vmem:[#allocation4 + $0x1e0] ss:$16 sps:$4 sm:$0xff]   ;;  %v6677_v30 = vld [vmem:[#allocation4 + $0x4c] ss:$16 sps:$4 sm:$0xff]  }
  0x79   :  { %2337 = vmatpush1.bf16.msra.mxu0 %v6620_v31  ;;  %2115 = vmatprep.subr.bf16.mxu1 %v6621_v32  ;;  %v6665_v3 = vld [vmem:[#allocation4 + $0x3e4] ss:$16 sps:$4 sm:$0xff]   ;;  %v6668_v5 = vld [vmem:[#allocation4 + $0x3e0] ss:$16 sps:$4 sm:$0xff]  }
  0x7a   :  { %2338 = vmatprep.subr.bf16.mxu0 %v6623_v33  ;;  %v85_v6 = vld [vmem:[#allocation2] sm:$0xff]  ;;  %v87_v8 = vld [vmem:[#allocation2 + $0x10] sm:$0xff]  ;;  %v7380_v33 = vpack.c.bf16 %v126_v27, %v118_v26 }
  0x7b   :  { %v93_v7 = vld [vmem:[#allocation2 + $0x40] sm:$0xff]  ;;  %v95_v9 = vld [vmem:[#allocation2 + $0x50] sm:$0xff] }
  0x7c   :  { %2116 = vmatpush1.bf16.msra.mxu1 %v6625_v34  ;;  %v7364_v15 = vpack.c.bf16 %v93_v7, %v85_v6  ;;  %v7366_v16 = vpack.c.bf16 %v95_v9, %v87_v8  ;;  %v101_v21 = vld [vmem:[#allocation2 + $0x80] sm:$0xff]  ;;  %v103_v23 = vld [vmem:[#allocation2 + $0x90] sm:$0xff]  ;;  %v7382_v34 = vpack.c.bf16 %v128_v29, %v120_v28  ;;  %v6693_v29 = vld [vmem:[#allocation4 + $0x108] ss:$16 sps:$4 sm:$0xff]  }
  0x7d   :  { %2339 = vmatpush1.bf16.msra.mxu0 %v6626_v35  ;;  %2117 = vmatprep.subr.bf16.mxu1 %v6627_v36  ;;  %v109_v22 = vld [vmem:[#allocation2 + $0xc0] sm:$0xff]  ;;  %v111_v24 = vld [vmem:[#allocation2 + $0xd0] sm:$0xff]  ;;  %v6675_v35 = vld [vmem:[#allocation4 + $0x48] ss:$16 sps:$4 sm:$0xff]  }
  0x7e   :  { %2340 = vmatprep.subr.bf16.mxu0 %v6629_v37  ;;  %v7376_v31 = vpack.c.bf16 %v109_v22, %v101_v21  ;;  %v7378_v32 = vpack.c.bf16 %v111_v24, %v103_v23  ;;  %v117_v36 = vld [vmem:[#allocation2 + $0x100] sm:$0xff]  ;;  %v151_v9 = vld [vmem:[#allocation2 + $0x210] sm:$0xff]  ;;  %v176_v21 = vld [vmem:[#allocation2 + $0x2d8] sm:$0xff] }
  0x7f   :  { %v125_v37 = vld [vmem:[#allocation2 + $0x140] sm:$0xff]  ;;  %v159_v12 = vld [vmem:[#allocation2 + $0x250] sm:$0xff]  ;;  %v6690_v22 = vld [vmem:[#allocation4 + $0xe8] ss:$16 sps:$4 sm:$0xff]  }
  0x80   :  { %2118 = vmatpush1.bf16.msra.mxu1 %v6631_v38  ;;  %v6680_v38 = vld [vmem:[#allocation4 + $0x6c] ss:$16 sps:$4 sm:$0xff]   ;;  %v7388_v47 = vpack.c.bf16 %v125_v37, %v117_v36  ;;  %v6701_v6 = vld [vmem:[#allocation4 + $0x404] ss:$16 sps:$4 sm:$0xff]   ;;  %v6699_v11 = vld [vmem:[#allocation4 + $0x400] ss:$16 sps:$4 sm:$0xff]   ;;  %v7414_v26 = vpack.c.bf16 %v159_v12, %v151_v9 }
  0x81   :  { %2341 = vmatpush1.bf16.msra.mxu0 %v6632_v39  ;;  %2119 = vmatprep.subr.bf16.mxu1 %v6633_v40  ;;  %v119_v39 = vld [vmem:[#allocation2 + $0x110] sm:$0xff]  ;;  %v149_v7 = vld [vmem:[#allocation2 + $0x200] sm:$0xff]  ;;  %v6695_v23 = vld [vmem:[#allocation4 + $0x10c] ss:$16 sps:$4 sm:$0xff]  }
  0x82   :  { %2342 = vmatprep.subr.bf16.mxu0 %v6635_v41  ;;  %v127_v40 = vld [vmem:[#allocation2 + $0x150] sm:$0xff]  ;;  %v134_v41 = vld [vmem:[#allocation2 + $0x188] sm:$0xff]  ;;  %v157_v8 = vld [vmem:[#allocation2 + $0x240] sm:$0xff]  ;;  %9041 = vst [vmem:[#allocation13_spill] sm:$0xff] %v7414_v26 }
  0x83   :  { %v7390_v48 = vpack.c.bf16 %v127_v40, %v119_v39  ;;  %v6704_v14 = vld [vmem:[#allocation4 + $0x424] ss:$16 sps:$4 sm:$0xff]   ;;  %v6702_v24 = vld [vmem:[#allocation4 + $0x420] ss:$16 sps:$4 sm:$0xff]   ;;  %v6698_v39 = vld [vmem:[#allocation4 + $0x12c] ss:$16 sps:$4 sm:$0xff]  }
  0x84   :  { %2120 = vmatpush1.bf16.msra.mxu1 %v6637_v42  ;;  %v142_v42 = vld [vmem:[#allocation2 + $0x1c8] sm:$0xff]  ;;  %v173_v36 = vld [vmem:[#allocation2 + $0x2c0] sm:$0xff]  ;;  %v167_v37 = vld [vmem:[#allocation2 + $0x290] sm:$0xff] }
  0x85   :  { %2343 = vmatpush1.bf16.msra.mxu0 %v6638_v43  ;;  %2121 = vmatprep.subr.bf16.mxu1 %v6639_v44  ;;  %v136_v43 = vld [vmem:[#allocation2 + $0x198] sm:$0xff]  ;;  %v7392_v49 = vpack.c.bf16 %v142_v42, %v134_v41  ;;  %v6708_v40 = vld [vmem:[#allocation4 + $0x440] ss:$16 sps:$4 sm:$0xff]   ;;  %v182_v41 = vld [vmem:[#allocation2 + $0x308] sm:$0xff] }
  0x86   :  { %2344 = vmatprep.subr.bf16.mxu0 %v6641_v45  ;;  %v144_v44 = vld [vmem:[#allocation2 + $0x1d8] sm:$0xff]  ;;  %v190_v42 = vld [vmem:[#allocation2 + $0x348] sm:$0xff] }
  0x87   :  { %v6678_v45 = vld [vmem:[#allocation4 + $0x68] ss:$16 sps:$4 sm:$0xff]  }
  0x88   :  { %2122 = vmatpush1.bf16.msra.mxu1 %v6643_v50  ;;  %v7394_v50 = vpack.c.bf16 %v144_v44, %v136_v43  ;;  %v184_v43 = vld [vmem:[#allocation2 + $0x318] sm:$0xff]  ;;  %v6713_v44 = vld [vmem:[#allocation4 + $0x464] ss:$16 sps:$4 sm:$0xff]  }
  0x89   :  { %2345 = vmatpush1.bf16.msra.mxu0 %v6644_v51  ;;  %2123 = vmatprep.subr.bf16.mxu1 %v6645_v52  ;;  %v6681_v51 = vld [vmem:[#allocation4 + $0x88] ss:$16 sps:$4 sm:$0xff]   ;;  %v133_v52 = vld [vmem:[#allocation2 + $0x180] sm:$0xff] }
  0x8a   :  { %2346 = vmatprep.subr.bf16.mxu0 %v6647_v55  ;;  %v141_v55 = vld [vmem:[#allocation2 + $0x1c0] sm:$0xff]  ;;  %v200_v9 = vld [vmem:[#allocation2 + $0x398] sm:$0xff] }
  0x8b   :  { %v6717_v12 = vld [vmem:[#allocation4 + $0x168] ss:$16 sps:$4 sm:$0xff]  }
  0x8c   :  { %2124 = vmatpush1.bf16.msra.mxu1 %v6649_v56  ;;  %v6686_v56 = vld [vmem:[#allocation4 + $0xac] ss:$16 sps:$4 sm:$0xff]  }
  0x8d   :  { %2347 = vmatpush1.bf16.msra.mxu0 %v6650_v57  ;;  %2125 = vmatprep.subr.bf16.mxu1 %v6651_v58  ;;  %v135_v57 = vld [vmem:[#allocation2 + $0x190] sm:$0xff] }
  0x8e   :  { %2348 = vmatprep.subr.bf16.mxu0 %v6653_v59  ;;  %v143_v58 = vld [vmem:[#allocation2 + $0x1d0] sm:$0xff]  ;;  %v150_v59 = vld [vmem:[#allocation2 + $0x208] sm:$0xff] }
  0x90   :  { %2126 = vmatpush1.bf16.msra.mxu1 %v6655_v60  ;;  %v158_v60 = vld [vmem:[#allocation2 + $0x248] sm:$0xff] }
  0x91   :  { %2349 = vmatpush1.bf16.msra.mxu0 %v6656_v61  ;;  %2127 = vmatprep.subr.bf16.mxu1 %v6657_v62  ;;  %v152_v61 = vld [vmem:[#allocation2 + $0x218] sm:$0xff] }
  0x92   :  { %2350 = vmatprep.subr.bf16.mxu0 %v6659_v63  ;;  %v160_v62 = vld [vmem:[#allocation2 + $0x258] sm:$0xff] }
  0x93   :  { %v6684_v63 = vld [vmem:[#allocation4 + $0xa8] ss:$16 sps:$4 sm:$0xff]  }
  0x94   :  { %2128 = vmatpush1.bf16.msra.mxu1 %v6661_v0  ;;  %v6689_v0 = vld [vmem:[#allocation4 + $0xcc] ss:$16 sps:$4 sm:$0xff]  }
  0x95   :  { %2351 = vmatpush1.bf16.msra.mxu0 %v6662_v1  ;;  %2129 = vmatprep.subr.bf16.mxu1 %v6663_v2  ;;  %v7400_v1 = vpack.c.bf16 %v141_v55, %v133_v52  ;;  %v7402_v2 = vpack.c.bf16 %v143_v58, %v135_v57  ;;  %v6711_v52 = vld [vmem:[#allocation4 + $0x460] ss:$16 sps:$4 sm:$0xff]   ;;  %v7428_v57 = vpack.c.bf16 %v190_v42, %v182_v41  ;;  %v216_v41 = vld [vmem:[#allocation2 + $0x418] sm:$0xff] }
  0x96   :  { %2352 = vmatprep.subr.bf16.mxu0 %v6665_v3  ;;  %v7404_v3 = vpack.c.bf16 %v158_v60, %v150_v59  ;;  %v6705_v59 = vld [vmem:[#allocation4 + $0x148] ss:$16 sps:$4 sm:$0xff]   ;;  %v6716_v60 = vld [vmem:[#allocation4 + $0x484] ss:$16 sps:$4 sm:$0xff]  }
  0x97   :  { %v224_v42 = vld [vmem:[#allocation2 + $0x458] sm:$0xff] }
  0x98   :  { %2130 = vmatpush1.bf16.msra.mxu1 %v6667_v4  ;;  %v7406_v4 = vpack.c.bf16 %v160_v62, %v152_v61  ;;  %v181_v61 = vld [vmem:[#allocation2 + $0x300] sm:$0xff] }
  0x99   :  { %2353 = vmatpush1.bf16.msra.mxu0 %v6668_v5  ;;  %2991 = vmatprep.subr.bf16.mxu1 %v6671_v10  ;;  %v6687_v5 = vld [vmem:[#allocation4 + $0xc8] ss:$16 sps:$4 sm:$0xff]   ;;  %v6692_v10 = vld [vmem:[#allocation4 + $0xec] ss:$16 sps:$4 sm:$0xff]   ;;  %v189_v62 = vld [vmem:[#allocation2 + $0x340] sm:$0xff] }
  0x9a   :  { %2545 = vmatprep.subr.bf16.mxu0 %v6701_v6  ;;  %v6719_v6 = vld [vmem:[#allocation4 + $0x16c] ss:$16 sps:$4 sm:$0xff]  }
  0x9b   :  { %2132 = vmatmul.mubr.bf16.vlgmr.msra.gmra.mrb[0].mxu1 %v7364_v15 }
  0x9c   :  { %2355 = vmatmul.mubr.bf16.vlgmr.msra.gmra.mrb[0].mxu0 %v7366_v16  ;;  %2992 = vmatpush1.bf16.msra.mxu1 %v6669_v17  ;;  %v174_v17 = vld [vmem:[#allocation2 + $0x2c8] sm:$0xff] }
  0x9d   :  { %2141 = vmatprep.mubr.bf16.mxu1 %v7368_v18  ;;  %2364 = vmatprep.mubr.bf16.mxu0 %v7370_v19  ;;  %v7416_v27 = vpack.c.bf16 %v174_v17, %v166_v13  ;;  %v6720_v13 = vld [vmem:[#allocation4 + $0x4a0] ss:$16 sps:$4 sm:$0xff]   ;;  %v7436_v17 = vpack.c.bf16 %v189_v62, %v181_v61 }
  0x9e   :  { %2993 = vmatprep.subr.bf16.mxu1 %v6674_v20  ;;  %v168_v20 = vld [vmem:[#allocation2 + $0x298] sm:$0xff]  ;;  %2546 = vmatpush1.bf16.msra.mxu0 %v6699_v11  ;;  %v213_v61 = vld [vmem:[#allocation2 + $0x400] sm:$0xff] }
  0x9f   :  { %2547 = vmatprep.subr.bf16.mxu0 %v6704_v14  ;;  %v7418_v28 = vpack.c.bf16 %v176_v21, %v168_v20  ;;  %v208_v11 = vld [vmem:[#allocation2 + $0x3d8] sm:$0xff]  ;;  %v221_v62 = vld [vmem:[#allocation2 + $0x440] sm:$0xff] }
  0xa0   :  { %2994 = vmatpush1.bf16.msra.mxu1 %v6672_v25  ;;  %v7412_v25 = vpack.c.bf16 %v157_v8, %v149_v7  ;;  %v198_v7 = vld [vmem:[#allocation2 + $0x388] sm:$0xff] }
  0xa1   :  { %2995 = vmatprep.subr.bf16.mxu1 %v6677_v30  ;;  %9042 = vst [vmem:[#allocation14_spill] sm:$0xff] %v7418_v28  ;;  %v6710_v30 = vld [vmem:[#allocation4 + $0x444] ss:$16 sps:$4 sm:$0xff]   ;;  %v206_v8 = vld [vmem:[#allocation2 + $0x3c8] sm:$0xff] }
  0xa2   :  { %2548 = vmatpush1.bf16.msra.mxu0 %v6702_v24  ;;  %v6728_v14 = vld [vmem:[#allocation4 + $0x18c] ss:$16 sps:$4 sm:$0xff]   ;;  %v7440_v21 = vpack.c.bf16 %v206_v8, %v198_v7  ;;  %v6726_v24 = vld [vmem:[#allocation4 + $0x188] ss:$16 sps:$4 sm:$0xff]   ;;  %v215_v7 = vld [vmem:[#allocation2 + $0x410] sm:$0xff] }
  0xa3   :  { %2142 = vmatmul.mubr.bf16.gmra.mrb[4].mxu1 %v7376_v31  ;;  %2549 = vmatprep.subr.bf16.mxu0 %v6710_v30  ;;  %v205_v30 = vld [vmem:[#allocation2 + $0x3c0] sm:$0xff]  ;;  %v223_v8 = vld [vmem:[#allocation2 + $0x450] sm:$0xff] }
  0xa4   :  { %2365 = vmatmul.mubr.bf16.gmra.mrb[4].mxu0 %v7378_v32  ;;  %2151 = vmatprep.mubr.bf16.mxu1 %v7380_v33 }
  0xa5   :  { %2374 = vmatprep.mubr.bf16.mxu0 %v7382_v34  ;;  %2996 = vmatpush1.bf16.msra.mxu1 %v6675_v35  ;;  %v165_v35 = vld [vmem:[#allocation2 + $0x280] sm:$0xff] }
  0xa6   :  { %2997 = vmatprep.subr.bf16.mxu1 %v6680_v38  ;;  %v175_v38 = vld [vmem:[#allocation2 + $0x2d0] sm:$0xff]  ;;  %2550 = vmatpush1.bf16.msra.mxu0 %v6708_v40  ;;  %v7424_v55 = vpack.c.bf16 %v173_v36, %v165_v35 }
  0xa7   :  { %2551 = vmatprep.subr.bf16.mxu0 %v6713_v44  ;;  %v199_v35 = vld [vmem:[#allocation2 + $0x390] sm:$0xff]  ;;  %v6740_v44 = vld [vmem:[#allocation4 + $0x1ac] ss:$16 sps:$4 sm:$0xff]  }
  0xa8   :  { %v207_v36 = vld [vmem:[#allocation2 + $0x3d0] sm:$0xff] }
  0xa9   :  { %2998 = vmatpush1.bf16.msra.mxu1 %v6678_v45  ;;  %v192_v45 = vld [vmem:[#allocation2 + $0x358] sm:$0xff]  ;;  %v6731_v40 = vld [vmem:[#allocation4 + $0x4e4] ss:$16 sps:$4 sm:$0xff]  }
  0xaa   :  { %2999 = vmatprep.subr.bf16.mxu1 %v6683_v46  ;;  %v6696_v46 = vld [vmem:[#allocation4 + $0x128] ss:$16 sps:$4 sm:$0xff]   ;;  %v7430_v58 = vpack.c.bf16 %v192_v45, %v184_v43  ;;  %2552 = vmatpush1.bf16.msra.mxu0 %v6711_v52  ;;  %v6729_v45 = vld [vmem:[#allocation4 + $0x4e0] ss:$16 sps:$4 sm:$0xff]  }
  0xab   :  { %2152 = vmatmul.mubr.bf16.gmra.mrb[8].mxu1 %v7388_v47  ;;  %2553 = vmatprep.subr.bf16.mxu0 %v6716_v60  ;;  %v6738_v43 = vld [vmem:[#allocation4 + $0x1a8] ss:$16 sps:$4 sm:$0xff]   ;;  %v6734_v60 = vld [vmem:[#allocation4 + $0x504] ss:$16 sps:$4 sm:$0xff]  }
  0xac   :  { %2375 = vmatmul.mubr.bf16.gmra.mrb[8].mxu0 %v7390_v48  ;;  %2161 = vmatprep.mubr.bf16.mxu1 %v7392_v49  ;;  %9044 = vst [vmem:[#allocation16_spill] sm:$0xff] %v7430_v58 }
  0xad   :  { %2384 = vmatprep.mubr.bf16.mxu0 %v7394_v50  ;;  %3000 = vmatpush1.bf16.msra.mxu1 %v6681_v51  ;;  %v6707_v51 = vld [vmem:[#allocation4 + $0x14c] ss:$16 sps:$4 sm:$0xff]  }
  0xae   :  { %3001 = vmatprep.subr.bf16.mxu1 %v6686_v56  ;;  %v7426_v56 = vpack.c.bf16 %v175_v38, %v167_v37  ;;  %v6723_v37 = vld [vmem:[#allocation4 + $0x4c0] ss:$16 sps:$4 sm:$0xff]   ;;  %v214_v38 = vld [vmem:[#allocation2 + $0x408] sm:$0xff] }
  0xb0   :  { %9043 = vst [vmem:[#allocation15_spill] sm:$0xff] %v7426_v56 }
  0xb1   :  { %3002 = vmatpush1.bf16.msra.mxu1 %v6684_v63  ;;  %v183_v63 = vld [vmem:[#allocation2 + $0x310] sm:$0xff] }
  0xb2   :  { %3003 = vmatprep.subr.bf16.mxu1 %v6689_v0  ;;  %v191_v0 = vld [vmem:[#allocation2 + $0x350] sm:$0xff] }
  0xb3   :  { %2162 = vmatmul.mubr.bf16.gmra.mrb[12].mxu1 %v7400_v1  ;;  %v7438_v20 = vpack.c.bf16 %v191_v0, %v183_v63  ;;  %v6732_v63 = vld [vmem:[#allocation4 + $0x500] ss:$16 sps:$4 sm:$0xff]   ;;  %v6737_v0 = vld [vmem:[#allocation4 + $0x524] ss:$16 sps:$4 sm:$0xff]  }
  0xb4   :  { %2385 = vmatmul.mubr.bf16.gmra.mrb[12].mxu0 %v7402_v2  ;;  %2171 = vmatprep.mubr.bf16.mxu1 %v7404_v3 }
  0xb5   :  { %2394 = vmatprep.mubr.bf16.mxu0 %v7406_v4  ;;  %3004 = vmatpush1.bf16.msra.mxu1 %v6687_v5  ;;  %v6714_v5 = vld [vmem:[#allocation4 + $0x480] ss:$16 sps:$4 sm:$0xff]   ;;  %9045 = vst [vmem:[#allocation17_spill] sm:$0xff] %v7438_v20 }
  0xb6   :  { %3005 = vmatprep.subr.bf16.mxu1 %v6692_v10  ;;  %v6722_v10 = vld [vmem:[#allocation4 + $0x4a4] ss:$16 sps:$4 sm:$0xff]   ;;  %2554 = vmatpush1.bf16.msra.mxu0 %v6714_v5  ;;  %v6747_v5 = vld [vmem:[#allocation4 + $0x1c8] ss:$16 sps:$4 sm:$0xff]  }
  0xb7   :  { %2555 = vmatprep.subr.bf16.mxu0 %v6722_v10  ;;  %v238_v10 = vld [vmem:[#allocation2 + $0x4c8] sm:$0xff] }
  0xb9   :  { %3006 = vmatpush1.bf16.msra.mxu1 %v6690_v22  ;;  %v7442_v22 = vpack.c.bf16 %v208_v11, %v200_v9  ;;  %v230_v9 = vld [vmem:[#allocation2 + $0x488] sm:$0xff]  ;;  %v232_v11 = vld [vmem:[#allocation2 + $0x498] sm:$0xff] }
  0xba   :  { %3007 = vmatprep.subr.bf16.mxu1 %v6695_v23  ;;  %v6725_v23 = vld [vmem:[#allocation4 + $0x4c4] ss:$16 sps:$4 sm:$0xff]   ;;  %2556 = vmatpush1.bf16.msra.mxu0 %v6720_v13  ;;  %v6735_v13 = vld [vmem:[#allocation4 + $0x520] ss:$16 sps:$4 sm:$0xff]  }
  0xbb   :  { %2172 = vmatmul.mubr.bf16.gmra.mrb[16].mxu1 %v7412_v25  ;;  %9046 = vst [vmem:[#allocation18_spill] sm:$0xff] %v7442_v22  ;;  %2557 = vmatprep.subr.bf16.mxu0 %v6725_v23  ;;  %v7462_v23 = vpack.c.bf16 %v223_v8, %v215_v7  ;;  %v245_v7 = vld [vmem:[#allocation2 + $0x500] sm:$0xff] }
  0xbc   :  { %2395 = vmatmul.mubr.bf16.gmra.mrb[16].mxu0 %v7414_v26  ;;  %2181 = vmatprep.mubr.bf16.mxu1 %v7416_v27  ;;  %v253_v8 = vld [vmem:[#allocation2 + $0x540] sm:$0xff] }
  0xbd   :  { %2404 = vmatprep.mubr.bf16.mxu0 %v7418_v28  ;;  %3008 = vmatpush1.bf16.msra.mxu1 %v6693_v29  ;;  %v197_v29 = vld [vmem:[#allocation2 + $0x380] sm:$0xff]  ;;  %9049 = vst [vmem:[#allocation21_spill] sm:$0xff] %v7462_v23 }
  0xbe   :  { %3009 = vmatprep.subr.bf16.mxu1 %v6698_v39  ;;  %v222_v39 = vld [vmem:[#allocation2 + $0x448] sm:$0xff]  ;;  %2558 = vmatpush1.bf16.msra.mxu0 %v6723_v37  ;;  %v231_v37 = vld [vmem:[#allocation2 + $0x490] sm:$0xff]  ;;  %v129_v26 = vld [vmem:[#allocation2 + $0x160] sm:$0xff] }
  0xbf   :  { %2559 = vmatprep.subr.bf16.mxu0 %v6731_v40  ;;  %v7452_v52 = vpack.c.bf16 %v222_v39, %v214_v38  ;;  %v239_v38 = vld [vmem:[#allocation2 + $0x4d0] sm:$0xff] }
  0xc0   :  { %v6741_v39 = vld [vmem:[#allocation4 + $0x540] ss:$16 sps:$4 sm:$0xff]   ;;  %v6746_v40 = vld [vmem:[#allocation4 + $0x564] ss:$16 sps:$4 sm:$0xff]  }
  0xc1   :  { %3010 = vmatpush1.bf16.msra.mxu1 %v6696_v46  ;;  %v7448_v46 = vpack.c.bf16 %v205_v30, %v197_v29  ;;  %v6743_v30 = vld [vmem:[#allocation4 + $0x544] ss:$16 sps:$4 sm:$0xff]  }
  0xc2   :  { %3011 = vmatprep.subr.bf16.mxu1 %v6707_v51  ;;  %v7450_v51 = vpack.c.bf16 %v207_v36, %v199_v35  ;;  %2560 = vmatpush1.bf16.msra.mxu0 %v6729_v45  ;;  %v229_v35 = vld [vmem:[#allocation2 + $0x480] sm:$0xff]  ;;  %v248_v45 = vld [vmem:[#allocation2 + $0x518] sm:$0xff] }
  0xc3   :  { %2182 = vmatmul.mubr.bf16.gmra.mrb[20].mxu1 %v7424_v55  ;;  %2561 = vmatprep.subr.bf16.mxu0 %v6734_v60  ;;  %v237_v36 = vld [vmem:[#allocation2 + $0x4c0] sm:$0xff]  ;;  %v256_v60 = vld [vmem:[#allocation2 + $0x558] sm:$0xff] }
  0xc4   :  { %2405 = vmatmul.mubr.bf16.gmra.mrb[20].mxu0 %v7426_v56  ;;  %2191 = vmatprep.mubr.bf16.mxu1 %v7428_v57  ;;  %9047 = vst [vmem:[#allocation19_spill] sm:$0xff] %v7450_v51  ;;  %v90_v56 = vld [vmem:[#allocation2 + $0x28] sm:$0xff]  ;;  %v6806_v28 = vld [vmem:[#allocation4 + $0x644] ss:$16 sps:$4 sm:$0xff]  }
  0xc5   :  { %2414 = vmatprep.mubr.bf16.mxu0 %v7430_v58  ;;  %3012 = vmatpush1.bf16.msra.mxu1 %v6705_v59  ;;  %v7454_v59 = vpack.c.bf16 %v224_v42, %v216_v41  ;;  %v6756_v41 = vld [vmem:[#allocation4 + $0x1e8] ss:$16 sps:$4 sm:$0xff]   ;;  %v6758_v42 = vld [vmem:[#allocation4 + $0x1ec] ss:$16 sps:$4 sm:$0xff]  }
  0xc6   :  { %3013 = vmatprep.subr.bf16.mxu1 %v6719_v6  ;;  %v6749_v6 = vld [vmem:[#allocation4 + $0x1cc] ss:$16 sps:$4 sm:$0xff]   ;;  %2562 = vmatpush1.bf16.msra.mxu0 %v6732_v63  ;;  %v7474_v63 = vpack.c.bf16 %v239_v38, %v231_v37  ;;  %v6753_v38 = vld [vmem:[#allocation4 + $0x5a0] ss:$16 sps:$4 sm:$0xff]  }
  0xc7   :  { %9048 = vst [vmem:[#allocation20_spill] sm:$0xff] %v7454_v59  ;;  %2563 = vmatprep.subr.bf16.mxu0 %v6737_v0  ;;  %v272_v37 = vld [vmem:[#allocation2 + $0x5d8] sm:$0xff]  ;;  %v382_v58 = vld [vmem:[#allocation2 + $0x948] sm:$0xff] }
  0xc8   :  { %9051 = vst [vmem:[#allocation23_spill] sm:$0xff] %v7474_v63 }
  0xc9   :  { %3014 = vmatpush1.bf16.msra.mxu1 %v6717_v12  ;;  %v240_v12 = vld [vmem:[#allocation2 + $0x4d8] sm:$0xff] }
  0xca   :  { %3015 = vmatprep.subr.bf16.mxu1 %v6728_v14  ;;  %v7460_v14 = vpack.c.bf16 %v221_v62, %v213_v61  ;;  %v7466_v29 = vpack.c.bf16 %v240_v12, %v232_v11  ;;  %2564 = vmatpush1.bf16.msra.mxu0 %v6735_v13  ;;  %v6744_v61 = vld [vmem:[#allocation4 + $0x560] ss:$16 sps:$4 sm:$0xff]   ;;  %v7472_v62 = vpack.c.bf16 %v237_v36, %v229_v35  ;;  %v6755_v13 = vld [vmem:[#allocation4 + $0x5a4] ss:$16 sps:$4 sm:$0xff]   ;;  %v270_v35 = vld [vmem:[#allocation2 + $0x5c8] sm:$0xff] }
  0xcb   :  { %2192 = vmatmul.mubr.bf16.gmra.mrb[24].mxu1 %v7436_v17  ;;  %2565 = vmatprep.subr.bf16.mxu0 %v6743_v30  ;;  %v247_v11 = vld [vmem:[#allocation2 + $0x510] sm:$0xff]  ;;  %v262_v30 = vld [vmem:[#allocation2 + $0x588] sm:$0xff]  ;;  %v264_v36 = vld [vmem:[#allocation2 + $0x598] sm:$0xff] }
  0xcc   :  { %2415 = vmatmul.mubr.bf16.gmra.mrb[24].mxu0 %v7438_v20  ;;  %2201 = vmatprep.mubr.bf16.mxu1 %v7440_v21  ;;  %9050 = vst [vmem:[#allocation22_spill] sm:$0xff] %v7466_v29  ;;  %v255_v12 = vld [vmem:[#allocation2 + $0x550] sm:$0xff]  ;;  %v360_v20 = vld [vmem:[#allocation2 + $0x898] sm:$0xff] }
  0xcd   :  { %2424 = vmatprep.mubr.bf16.mxu0 %v7442_v22  ;;  %3016 = vmatpush1.bf16.msra.mxu1 %v6726_v24  ;;  %v7464_v24 = vpack.c.bf16 %v238_v10, %v230_v9  ;;  %v6750_v9 = vld [vmem:[#allocation4 + $0x580] ss:$16 sps:$4 sm:$0xff]   ;;  %v6767_v10 = vld [vmem:[#allocation4 + $0x20c] ss:$16 sps:$4 sm:$0xff]  }
  0xce   :  { %3017 = vmatprep.subr.bf16.mxu1 %v6740_v44  ;;  %v254_v44 = vld [vmem:[#allocation2 + $0x548] sm:$0xff]  ;;  %2566 = vmatpush1.bf16.msra.mxu0 %v6741_v39  ;;  %v7484_v39 = vpack.c.bf16 %v253_v8, %v245_v7  ;;  %v6764_v7 = vld [vmem:[#allocation4 + $0x5e4] ss:$16 sps:$4 sm:$0xff]  }
  0xcf   :  { %2567 = vmatprep.subr.bf16.mxu0 %v6746_v40  ;;  %v7486_v40 = vpack.c.bf16 %v255_v12, %v247_v11  ;;  %v278_v8 = vld [vmem:[#allocation2 + $0x608] sm:$0xff]  ;;  %v288_v11 = vld [vmem:[#allocation2 + $0x658] sm:$0xff]  ;;  %v6762_v12 = vld [vmem:[#allocation4 + $0x5e0] ss:$16 sps:$4 sm:$0xff]  }
  0xd0   :  { %v358_v22 = vld [vmem:[#allocation2 + $0x888] sm:$0xff] }
  0xd1   :  { %3018 = vmatpush1.bf16.msra.mxu1 %v6738_v43  ;;  %v246_v43 = vld [vmem:[#allocation2 + $0x508] sm:$0xff]  ;;  %9053 = vst [vmem:[#allocation25_spill] sm:$0xff] %v7486_v40 }
  0xd2   :  { %3019 = vmatprep.subr.bf16.mxu1 %v6749_v6  ;;  %v7476_v0 = vpack.c.bf16 %v254_v44, %v246_v43  ;;  %v6752_v6 = vld [vmem:[#allocation4 + $0x584] ss:$16 sps:$4 sm:$0xff]   ;;  %2568 = vmatpush1.bf16.msra.mxu0 %v6744_v61 }
  0xd3   :  { %2202 = vmatmul.mubr.bf16.gmra.mrb[28].mxu1 %v7448_v46  ;;  %2569 = vmatprep.subr.bf16.mxu0 %v6752_v6  ;;  %v6761_v43 = vld [vmem:[#allocation4 + $0x5c4] ss:$16 sps:$4 sm:$0xff]  }
  0xd4   :  { %2425 = vmatmul.mubr.bf16.gmra.mrb[28].mxu0 %v7450_v51  ;;  %2211 = vmatprep.mubr.bf16.mxu1 %v7452_v52  ;;  %v261_v44 = vld [vmem:[#allocation2 + $0x580] sm:$0xff]  ;;  %v263_v61 = vld [vmem:[#allocation2 + $0x590] sm:$0xff]  ;;  %v350_v51 = vld [vmem:[#allocation2 + $0x848] sm:$0xff] }
  0xd5   :  { %2434 = vmatprep.mubr.bf16.mxu0 %v7454_v59  ;;  %3020 = vmatpush1.bf16.msra.mxu1 %v6747_v5  ;;  %v7478_v5 = vpack.c.bf16 %v256_v60, %v248_v45  ;;  %v269_v45 = vld [vmem:[#allocation2 + $0x5c0] sm:$0xff]  ;;  %v271_v6 = vld [vmem:[#allocation2 + $0x5d0] sm:$0xff]  ;;  %v342_v59 = vld [vmem:[#allocation2 + $0x808] sm:$0xff] }
  0xd6   :  { %3021 = vmatprep.subr.bf16.mxu1 %v6758_v42  ;;  %2570 = vmatpush1.bf16.msra.mxu0 %v6750_v9  ;;  %v7490_v42 = vpack.c.bf16 %v272_v37, %v264_v36  ;;  %v6759_v60 = vld [vmem:[#allocation4 + $0x5c0] ss:$16 sps:$4 sm:$0xff]   ;;  %v286_v9 = vld [vmem:[#allocation2 + $0x648] sm:$0xff] }
  0xd7   :  { %9052 = vst [vmem:[#allocation24_spill] sm:$0xff] %v7478_v5  ;;  %2571 = vmatprep.subr.bf16.mxu0 %v6755_v13  ;;  %v7496_v13 = vpack.c.bf16 %v269_v45, %v261_v44  ;;  %v277_v37 = vld [vmem:[#allocation2 + $0x600] sm:$0xff]  ;;  %v294_v44 = vld [vmem:[#allocation2 + $0x688] sm:$0xff] }
  0xd8   :  { %9054 = vst [vmem:[#allocation26_spill] sm:$0xff] %v7490_v42  ;;  %v302_v45 = vld [vmem:[#allocation2 + $0x6c8] sm:$0xff] }
  0xd9   :  { %3022 = vmatpush1.bf16.msra.mxu1 %v6756_v41  ;;  %v7488_v41 = vpack.c.bf16 %v270_v35, %v262_v30  ;;  %v7498_v30 = vpack.c.bf16 %v271_v6, %v263_v61  ;;  %v7500_v35 = vpack.c.bf16 %v286_v9, %v278_v8  ;;  %v304_v61 = vld [vmem:[#allocation2 + $0x6d8] sm:$0xff]  ;;  %v7512_v8 = vpack.c.bf16 %v302_v45, %v294_v44  ;;  %v309_v44 = vld [vmem:[#allocation2 + $0x700] sm:$0xff] }
  0xda   :  { %3214 = vmatprep.subr.bf16.mxu1 %v6767_v10  ;;  %2572 = vmatpush1.bf16.msra.mxu0 %v6753_v38  ;;  %v280_v10 = vld [vmem:[#allocation2 + $0x618] sm:$0xff]  ;;  %v285_v38 = vld [vmem:[#allocation2 + $0x640] sm:$0xff] }
  0xdb   :  { %2212 = vmatmul.mubr.bf16.gmra.mrb[32].mxu1 %v7460_v14  ;;  %2573 = vmatprep.subr.bf16.mxu0 %v6761_v43  ;;  %9055 = vst [vmem:[#allocation27_spill] sm:$0xff] %v7498_v30  ;;  %v7502_v36 = vpack.c.bf16 %v288_v11, %v280_v10  ;;  %v287_v43 = vld [vmem:[#allocation2 + $0x650] sm:$0xff]  ;;  %v7508_v6 = vpack.c.bf16 %v285_v38, %v277_v37  ;;  %v293_v10 = vld [vmem:[#allocation2 + $0x680] sm:$0xff] }
  0xdc   :  { %2435 = vmatmul.mubr.bf16.gmra.mrb[32].mxu0 %v7462_v23  ;;  %2221 = vmatprep.mubr.bf16.mxu1 %v7464_v24  ;;  %v301_v11 = vld [vmem:[#allocation2 + $0x6c0] sm:$0xff]  ;;  %v328_v23 = vld [vmem:[#allocation2 + $0x798] sm:$0xff] }
  0xdd   :  { %2444 = vmatprep.mubr.bf16.mxu0 %v7466_v29  ;;  %9056 = vst [vmem:[#allocation28_spill] sm:$0xff] %v7502_v36  ;;  %v317_v45 = vld [vmem:[#allocation2 + $0x740] sm:$0xff]  ;;  %v334_v29 = vld [vmem:[#allocation2 + $0x7c8] sm:$0xff] }
  0xde   :  { %2574 = vmatpush1.bf16.msra.mxu0 %v6759_v60  ;;  %v296_v60 = vld [vmem:[#allocation2 + $0x698] sm:$0xff] }
  0xdf   :  { %2575 = vmatprep.subr.bf16.mxu0 %v6764_v7  ;;  %v7514_v9 = vpack.c.bf16 %v304_v61, %v296_v60  ;;  %v311_v60 = vld [vmem:[#allocation2 + $0x710] sm:$0xff] }
  0xe0   :  { %v319_v61 = vld [vmem:[#allocation2 + $0x750] sm:$0xff] }
  0xe1   :  { %9058 = vst [vmem:[#allocation30_spill] sm:$0xff] %v7514_v9 }
  0xe2   :  { %2576 = vmatpush1.bf16.msra.mxu0 %v6762_v12  ;;  %v295_v12 = vld [vmem:[#allocation2 + $0x690] sm:$0xff] }
  0xe3   :  { %2222 = vmatmul.mubr.bf16.gmra.mrb[36].mxu1 %v7472_v62 }
  0xe4   :  { %2445 = vmatmul.mubr.bf16.gmra.mrb[36].mxu0 %v7474_v63  ;;  %2231 = vmatprep.mubr.bf16.mxu1 %v7476_v0  ;;  %v320_v63 = vld [vmem:[#allocation2 + $0x758] sm:$0xff] }
  0xe5   :  { %2454 = vmatprep.mubr.bf16.mxu0 %v7478_v5  ;;  %v312_v5 = vld [vmem:[#allocation2 + $0x718] sm:$0xff] }
  0xeb   :  { %2232 = vmatmul.mubr.bf16.gmra.mrb[40].mxu1 %v7484_v39 }
  0xec   :  { %2455 = vmatmul.mubr.bf16.gmra.mrb[40].mxu0 %v7486_v40  ;;  %2241 = vmatprep.mubr.bf16.mxu1 %v7488_v41  ;;  %v318_v40 = vld [vmem:[#allocation2 + $0x748] sm:$0xff] }
  0xed   :  { %2464 = vmatprep.mubr.bf16.mxu0 %v7490_v42  ;;  %v279_v42 = vld [vmem:[#allocation2 + $0x610] sm:$0xff] }
  0xee   :  { %v7510_v7 = vpack.c.bf16 %v287_v43, %v279_v42  ;;  %v7520_v42 = vpack.c.bf16 %v301_v11, %v293_v10  ;;  %v7526_v43 = vpack.c.bf16 %v320_v63, %v312_v5  ;;  %v7534_v63 = vpack.c.bf16 %v319_v61, %v311_v60  ;;  %v325_v10 = vld [vmem:[#allocation2 + $0x780] sm:$0xff]  ;;  %v343_v61 = vld [vmem:[#allocation2 + $0x810] sm:$0xff] }
  0xef   :  { %v333_v11 = vld [vmem:[#allocation2 + $0x7c0] sm:$0xff] }
  0xf0   :  { %9057 = vst [vmem:[#allocation29_spill] sm:$0xff] %v7510_v7  ;;  %9060 = vst [vmem:[#allocation32_spill] sm:$0xff] %v7526_v43  ;;  %v349_v60 = vld [vmem:[#allocation2 + $0x840] sm:$0xff] }
  0xf1   :  { %9061 = vst [vmem:[#allocation33_spill] sm:$0xff] %v7534_v63 }
  0xf3   :  { %2242 = vmatmul.mubr.bf16.gmra.mrb[44].mxu1 %v7496_v13 }
  0xf4   :  { %2465 = vmatmul.mubr.bf16.gmra.mrb[44].mxu0 %v7498_v30  ;;  %2251 = vmatprep.mubr.bf16.mxu1 %v7500_v35  ;;  %v303_v30 = vld [vmem:[#allocation2 + $0x6d0] sm:$0xff] }
  0xf5   :  { %2474 = vmatprep.mubr.bf16.mxu0 %v7502_v36  ;;  %v310_v36 = vld [vmem:[#allocation2 + $0x708] sm:$0xff]  ;;  %v7522_v37 = vpack.c.bf16 %v303_v30, %v295_v12  ;;  %v327_v12 = vld [vmem:[#allocation2 + $0x790] sm:$0xff] }
  0xf6   :  { %v7524_v38 = vpack.c.bf16 %v318_v40, %v310_v36  ;;  %v7532_v40 = vpack.c.bf16 %v317_v45, %v309_v44  ;;  %v6797_v36 = vld [vmem:[#allocation4 + $0x604] ss:$16 sps:$4 sm:$0xff]  }
  0xf7   :  { %9059 = vst [vmem:[#allocation31_spill] sm:$0xff] %v7522_v37  ;;  %2768 = vmatprep.subr.bf16.mxu0 %v6797_v36  ;;  %v341_v45 = vld [vmem:[#allocation2 + $0x800] sm:$0xff] }
  0xfb   :  { %2252 = vmatmul.mubr.bf16.gmra.mrb[48].mxu1 %v7508_v6 }
  0xfc   :  { %2475 = vmatmul.mubr.bf16.gmra.mrb[48].mxu0 %v7510_v7  ;;  %2261 = vmatprep.mubr.bf16.mxu1 %v7512_v8  ;;  %v326_v7 = vld [vmem:[#allocation2 + $0x788] sm:$0xff] }
  0xfd   :  { %2484 = vmatprep.mubr.bf16.mxu0 %v7514_v9  ;;  %v336_v9 = vld [vmem:[#allocation2 + $0x7d8] sm:$0xff]  ;;  %v7536_v5 = vpack.c.bf16 %v334_v29, %v326_v7 }
  0xfe   :  { %v7538_v30 = vpack.c.bf16 %v336_v9, %v328_v23  ;;  %v352_v29 = vld [vmem:[#allocation2 + $0x858] sm:$0xff]  ;;  %v7544_v23 = vpack.c.bf16 %v333_v11, %v325_v10  ;;  %v7548_v9 = vpack.c.bf16 %v350_v51, %v342_v59  ;;  %v7556_v51 = vpack.c.bf16 %v349_v60, %v341_v45  ;;  %v357_v10 = vld [vmem:[#allocation2 + $0x880] sm:$0xff] }
  0xff   :  { %v365_v11 = vld [vmem:[#allocation2 + $0x8c0] sm:$0xff] }
 0x100   :  { %9062 = vst [vmem:[#allocation34_spill] sm:$0xff] %v7538_v30  ;;  %v373_v60 = vld [vmem:[#allocation2 + $0x900] sm:$0xff] }
 0x103   :  { %2262 = vmatmul.mubr.bf16.gmra.mrb[52].mxu1 %v7520_v42 }
 0x104   :  { %2485 = vmatmul.mubr.bf16.gmra.mrb[52].mxu0 %v7522_v37  ;;  %2271 = vmatprep.mubr.bf16.mxu1 %v7524_v38  ;;  %v335_v37 = vld [vmem:[#allocation2 + $0x7d0] sm:$0xff] }
 0x105   :  { %2494 = vmatprep.mubr.bf16.mxu0 %v7526_v43  ;;  %v344_v43 = vld [vmem:[#allocation2 + $0x818] sm:$0xff]  ;;  %v7546_v7 = vpack.c.bf16 %v335_v37, %v327_v12  ;;  %v359_v12 = vld [vmem:[#allocation2 + $0x890] sm:$0xff] }
 0x106   :  { %v7550_v44 = vpack.c.bf16 %v352_v29, %v344_v43  ;;  %v368_v37 = vld [vmem:[#allocation2 + $0x8d8] sm:$0xff]  ;;  %v367_v29 = vld [vmem:[#allocation2 + $0x8d0] sm:$0xff] }
 0x107   :  { %9063 = vst [vmem:[#allocation35_spill] sm:$0xff] %v7546_v7  ;;  %v7562_v36 = vpack.c.bf16 %v368_v37, %v360_v20  ;;  %v7570_v20 = vpack.c.bf16 %v367_v29, %v359_v12  ;;  %v375_v37 = vld [vmem:[#allocation2 + $0x910] sm:$0xff]  ;;  %v97_v12 = vld [vmem:[#allocation2 + $0x60] sm:$0xff]  ;;  %v106_v29 = vld [vmem:[#allocation2 + $0xa8] sm:$0xff] }
 0x108   :  { %9064 = vst [vmem:[#allocation36_spill] sm:$0xff] %v7550_v44 }
 0x109   :  { %9066 = vst [vmem:[#allocation38_spill] sm:$0xff] %v7562_v36  ;;  %9067 = vst [vmem:[#allocation39_spill] sm:$0xff] %v7570_v20 }
 0x10b   :  { %2272 = vmatmul.mubr.bf16.gmra.mrb[56].mxu1 %v7532_v40 }
 0x10c   :  { %2495 = vmatmul.mubr.bf16.gmra.mrb[56].mxu0 %v7534_v63  ;;  %2281 = vmatprep.mubr.bf16.mxu1 %v7536_v5  ;;  %v351_v63 = vld [vmem:[#allocation2 + $0x850] sm:$0xff] }
 0x10d   :  { %2504 = vmatprep.mubr.bf16.mxu0 %v7538_v30  ;;  %v366_v30 = vld [vmem:[#allocation2 + $0x8c8] sm:$0xff]  ;;  %v7558_v59 = vpack.c.bf16 %v351_v63, %v343_v61  ;;  %v384_v63 = vld [vmem:[#allocation2 + $0x958] sm:$0xff]  ;;  %v381_v61 = vld [vmem:[#allocation2 + $0x940] sm:$0xff] }
 0x10e   :  { %v7560_v43 = vpack.c.bf16 %v366_v30, %v358_v22  ;;  %v7568_v22 = vpack.c.bf16 %v365_v11, %v357_v10  ;;  %v98_v10 = vld [vmem:[#allocation2 + $0x68] sm:$0xff]  ;;  %v7580_v11 = vpack.c.bf16 %v381_v61, %v373_v60 }
 0x10f   :  { %9065 = vst [vmem:[#allocation37_spill] sm:$0xff] %v7558_v59  ;;  %v6765_v60 = vld [vmem:[#allocation4 + $0x208] ss:$16 sps:$4 sm:$0xff]  }
 0x113   :  { %2282 = vmatmul.mubr.bf16.gmra.mrb[60].mxu1 %v7544_v23 }
 0x114   :  { %2505 = vmatmul.mubr.bf16.gmra.mrb[60].mxu0 %v7546_v7  ;;  %2291 = vmatprep.mubr.bf16.mxu1 %v7548_v9  ;;  %v374_v7 = vld [vmem:[#allocation2 + $0x908] sm:$0xff] }
 0x115   :  { %2514 = vmatprep.mubr.bf16.mxu0 %v7550_v44  ;;  %v376_v44 = vld [vmem:[#allocation2 + $0x918] sm:$0xff]  ;;  %v7572_v30 = vpack.c.bf16 %v382_v58, %v374_v7  ;;  %v7584_v7 = vpack.c.bf16 %v98_v10, %v90_v56  ;;  %v6795_v56 = vld [vmem:[#allocation4 + $0x600] ss:$16 sps:$4 sm:$0xff]  }
 0x116   :  { %v7574_v45 = vpack.c.bf16 %v384_v63, %v376_v44  ;;  %v89_v44 = vld [vmem:[#allocation2 + $0x20] sm:$0xff]  ;;  %v114_v63 = vld [vmem:[#allocation2 + $0xe8] sm:$0xff] }
 0x117   :  { %9070 = vst [vmem:[#allocation42_spill] sm:$0xff] %v7584_v7  ;;  %v7592_v61 = vpack.c.bf16 %v114_v63, %v106_v29  ;;  %v113_v10 = vld [vmem:[#allocation2 + $0xe0] sm:$0xff]  ;;  %v6771_v63 = vld [vmem:[#allocation4 + $0x248] ss:$16 sps:$4 sm:$0xff]  }
 0x118   :  { %9068 = vst [vmem:[#allocation40_spill] sm:$0xff] %v7574_v45 }
 0x119   :  { %9072 = vst [vmem:[#allocation44_spill] sm:$0xff] %v7592_v61 }
 0x11b   :  { %2292 = vmatmul.mubr.bf16.gmra.mrb[64].mxu1 %v7556_v51 }
 0x11c   :  { %2515 = vmatmul.mubr.bf16.gmra.mrb[64].mxu0 %v7558_v59  ;;  %2301 = vmatprep.mubr.bf16.mxu1 %v7560_v43  ;;  %v383_v59 = vld [vmem:[#allocation2 + $0x950] sm:$0xff] }
 0x11d   :  { %2524 = vmatprep.mubr.bf16.mxu0 %v7562_v36  ;;  %v7582_v58 = vpack.c.bf16 %v383_v59, %v375_v37  ;;  %v6770_v59 = vld [vmem:[#allocation4 + $0x22c] ss:$16 sps:$4 sm:$0xff]   ;;  %v105_v37 = vld [vmem:[#allocation2 + $0xa0] sm:$0xff] }
 0x11e   :  { %v6800_v36 = vld [vmem:[#allocation4 + $0x624] ss:$16 sps:$4 sm:$0xff]  }
 0x11f   :  { %9069 = vst [vmem:[#allocation41_spill] sm:$0xff] %v7582_v58 }
 0x123   :  { %2302 = vmatmul.mubr.bf16.gmra.mrb[68].mxu1 %v7568_v22 }
 0x124   :  { %2525 = vmatmul.mubr.bf16.gmra.mrb[68].mxu0 %v7570_v20  ;;  %2311 = vmatprep.mubr.bf16.mxu1 %v7572_v30  ;;  %v6768_v20 = vld [vmem:[#allocation4 + $0x228] ss:$16 sps:$4 sm:$0xff]  }
 0x125   :  { %2534 = vmatprep.mubr.bf16.mxu0 %v7574_v45  ;;  %v7590_v45 = vpack.c.bf16 %v97_v12, %v89_v44  ;;  %v6798_v44 = vld [vmem:[#allocation4 + $0x620] ss:$16 sps:$4 sm:$0xff]   ;;  %v7598_v12 = vpack.c.bf16 %v113_v10, %v105_v37  ;;  %v6777_v37 = vld [vmem:[#allocation4 + $0x288] ss:$16 sps:$4 sm:$0xff]  }
 0x126   :  { %v137_v10 = vld [vmem:[#allocation2 + $0x1a0] sm:$0xff] }
 0x127   :  { %9071 = vst [vmem:[#allocation43_spill] sm:$0xff] %v7590_v45 }
 0x12b   :  { %2312 = vmatmul.mubr.bf16.gmra.mrb[72].mxu1 %v7580_v11 }
 0x12c   :  { %2535 = vmatmul.mubr.bf16.gmra.mrb[72].mxu0 %v7582_v58  ;;  %3023 = vmatprep.mubr.bf16.mxu1 %v7358_v53  ;;  %v122_v58 = vld [vmem:[#allocation2 + $0x128] sm:$0xff] }
 0x12d   :  { %2577 = vmatprep.mubr.bf16.mxu0 %v7584_v7  ;;  %v130_v7 = vld [vmem:[#allocation2 + $0x168] sm:$0xff] }
 0x12e   :  { %v6773_v53 = vld [vmem:[#allocation4 + $0x24c] ss:$16 sps:$4 sm:$0xff]   ;;  %v7600_v29 = vpack.c.bf16 %v130_v7, %v122_v58 }
 0x133   :  { %3024 = vmatmul.mubr.bf16.vlgmr.msra.gmra.mrb[76].mxu1 %v7364_v15  ;;  %v6776_v15 = vld [vmem:[#allocation4 + $0x26c] ss:$16 sps:$4 sm:$0xff]  }
 0x134   :  { %2578 = vmatmul.mubr.bf16.vlgmr.msra.gmra.mrb[0].mxu0 %v7590_v45  ;;  %3215 = vmatpush1.bf16.msra.mxu1 %v6765_v60  ;;  %v6804_v45 = vld [vmem:[#allocation4 + $0x640] ss:$16 sps:$4 sm:$0xff]  }
 0x135   :  { %2587 = vmatprep.mubr.bf16.mxu0 %v7592_v61  ;;  %3033 = vmatprep.mubr.bf16.mxu1 %v7368_v18  ;;  %v121_v60 = vld [vmem:[#allocation2 + $0x120] sm:$0xff]  ;;  %v138_v18 = vld [vmem:[#allocation2 + $0x1a8] sm:$0xff] }
 0x136   :  { %3216 = vmatprep.subr.bf16.mxu1 %v6770_v59  ;;  %2769 = vmatpush1.bf16.msra.mxu0 %v6795_v56  ;;  %v6809_v61 = vld [vmem:[#allocation4 + $0x664] ss:$16 sps:$4 sm:$0xff]   ;;  %v146_v59 = vld [vmem:[#allocation2 + $0x1e8] sm:$0xff]  ;;  %v7606_v58 = vpack.c.bf16 %v129_v26, %v121_v60 }
 0x137   :  { %2770 = vmatprep.subr.bf16.mxu0 %v6800_v36  ;;  %v6774_v56 = vld [vmem:[#allocation4 + $0x268] ss:$16 sps:$4 sm:$0xff]   ;;  %v6779_v36 = vld [vmem:[#allocation4 + $0x28c] ss:$16 sps:$4 sm:$0xff]   ;;  %v7608_v7 = vpack.c.bf16 %v146_v59, %v138_v18 }
 0x138   :  { %3217 = vmatpush1.bf16.msra.mxu1 %v6768_v20  ;;  %v6807_v20 = vld [vmem:[#allocation4 + $0x660] ss:$16 sps:$4 sm:$0xff]   ;;  %v162_v26 = vld [vmem:[#allocation2 + $0x268] sm:$0xff] }
 0x139   :  { %3218 = vmatprep.subr.bf16.mxu1 %v6773_v53  ;;  %9073 = vst [vmem:[#allocation45_spill] sm:$0xff] %v7608_v7  ;;  %v145_v53 = vld [vmem:[#allocation2 + $0x1e0] sm:$0xff]  ;;  %v6783_v18 = vld [vmem:[#allocation4 + $0x2c8] ss:$16 sps:$4 sm:$0xff]  }
 0x13a   :  { %2771 = vmatpush1.bf16.msra.mxu0 %v6798_v44  ;;  %v6782_v44 = vld [vmem:[#allocation4 + $0x2ac] ss:$16 sps:$4 sm:$0xff]   ;;  %v7614_v60 = vpack.c.bf16 %v145_v53, %v137_v10  ;;  %v6827_v10 = vld [vmem:[#allocation4 + $0x6e4] ss:$16 sps:$4 sm:$0xff]  }
 0x13b   :  { %3034 = vmatmul.mubr.bf16.gmra.mrb[80].mxu1 %v7376_v31  ;;  %2772 = vmatprep.subr.bf16.mxu0 %v6806_v28  ;;  %v6812_v31 = vld [vmem:[#allocation4 + $0x684] ss:$16 sps:$4 sm:$0xff]   ;;  %v154_v28 = vld [vmem:[#allocation2 + $0x228] sm:$0xff] }
 0x13c   :  { %2588 = vmatmul.mubr.bf16.gmra.mrb[4].mxu0 %v7598_v12  ;;  %3043 = vmatprep.mubr.bf16.mxu1 %v7380_v33  ;;  %v6810_v33 = vld [vmem:[#allocation4 + $0x680] ss:$16 sps:$4 sm:$0xff]   ;;  %v7616_v59 = vpack.c.bf16 %v162_v26, %v154_v28  ;;  %v6791_v53 = vld [vmem:[#allocation4 + $0x30c] ss:$16 sps:$4 sm:$0xff]   ;;  %v6830_v28 = vld [vmem:[#allocation4 + $0x704] ss:$16 sps:$4 sm:$0xff]  }
 0x13d   :  { %2597 = vmatprep.mubr.bf16.mxu0 %v7600_v29  ;;  %3219 = vmatpush1.bf16.msra.mxu1 %v6771_v63  ;;  %v6818_v63 = vld [vmem:[#allocation4 + $0x6a4] ss:$16 sps:$4 sm:$0xff]   ;;  %v6794_v26 = vld [vmem:[#allocation4 + $0x32c] ss:$16 sps:$4 sm:$0xff]  }
 0x13e   :  { %3220 = vmatprep.subr.bf16.mxu1 %v6776_v15  ;;  %2773 = vmatpush1.bf16.msra.mxu0 %v6804_v45  ;;  %v6780_v45 = vld [vmem:[#allocation4 + $0x2a8] ss:$16 sps:$4 sm:$0xff]   ;;  %v6816_v15 = vld [vmem:[#allocation4 + $0x6a0] ss:$16 sps:$4 sm:$0xff]  }
 0x13f   :  { %2774 = vmatprep.subr.bf16.mxu0 %v6809_v61  ;;  %v6785_v61 = vld [vmem:[#allocation4 + $0x2cc] ss:$16 sps:$4 sm:$0xff]  }
 0x141   :  { %3221 = vmatpush1.bf16.msra.mxu1 %v6774_v56  ;;  %v6819_v56 = vld [vmem:[#allocation4 + $0x6c0] ss:$16 sps:$4 sm:$0xff]  }
 0x142   :  { %3222 = vmatprep.subr.bf16.mxu1 %v6779_v36  ;;  %2775 = vmatpush1.bf16.msra.mxu0 %v6807_v20  ;;  %v6821_v36 = vld [vmem:[#allocation4 + $0x6c4] ss:$16 sps:$4 sm:$0xff]  }
 0x143   :  { %3044 = vmatmul.mubr.bf16.gmra.mrb[84].mxu1 %v7388_v47  ;;  %2776 = vmatprep.subr.bf16.mxu0 %v6812_v31  ;;  %v6788_v47 = vld [vmem:[#allocation4 + $0x2ec] ss:$16 sps:$4 sm:$0xff]   ;;  %v153_v20 = vld [vmem:[#allocation2 + $0x220] sm:$0xff]  ;;  %v6786_v31 = vld [vmem:[#allocation4 + $0x2e8] ss:$16 sps:$4 sm:$0xff]  }
 0x144   :  { %2598 = vmatmul.mubr.bf16.gmra.mrb[8].mxu0 %v7606_v58  ;;  %3053 = vmatprep.mubr.bf16.mxu1 %v7392_v49  ;;  %v170_v49 = vld [vmem:[#allocation2 + $0x2a8] sm:$0xff] }
 0x145   :  { %2607 = vmatprep.mubr.bf16.mxu0 %v7608_v7  ;;  %3223 = vmatpush1.bf16.msra.mxu1 %v6777_v37  ;;  %v161_v7 = vld [vmem:[#allocation2 + $0x260] sm:$0xff]  ;;  %v178_v37 = vld [vmem:[#allocation2 + $0x2e8] sm:$0xff] }
 0x146   :  { %3224 = vmatprep.subr.bf16.mxu1 %v6782_v44  ;;  %2777 = vmatpush1.bf16.msra.mxu0 %v6810_v33  ;;  %v6825_v44 = vld [vmem:[#allocation4 + $0x6e0] ss:$16 sps:$4 sm:$0xff]   ;;  %v7622_v33 = vpack.c.bf16 %v161_v7, %v153_v20 }
 0x147   :  { %2778 = vmatprep.subr.bf16.mxu0 %v6818_v63  ;;  %v7624_v63 = vpack.c.bf16 %v178_v37, %v170_v49  ;;  %v169_v7 = vld [vmem:[#allocation2 + $0x2a0] sm:$0xff]  ;;  %v6801_v49 = vld [vmem:[#allocation4 + $0x348] ss:$16 sps:$4 sm:$0xff]  }
 0x148   :  { %v6839_v37 = vld [vmem:[#allocation4 + $0x744] ss:$16 sps:$4 sm:$0xff]  }
 0x149   :  { %3225 = vmatpush1.bf16.msra.mxu1 %v6780_v45  ;;  %v6828_v45 = vld [vmem:[#allocation4 + $0x700] ss:$16 sps:$4 sm:$0xff]  }
 0x14a   :  { %3226 = vmatprep.subr.bf16.mxu1 %v6785_v61  ;;  %2779 = vmatpush1.bf16.msra.mxu0 %v6816_v15  ;;  %v177_v61 = vld [vmem:[#allocation2 + $0x2e0] sm:$0xff]  ;;  %v186_v15 = vld [vmem:[#allocation2 + $0x328] sm:$0xff] }
 0x14b   :  { %3054 = vmatmul.mubr.bf16.gmra.mrb[88].mxu1 %v7400_v1  ;;  %2780 = vmatprep.subr.bf16.mxu0 %v6821_v36  ;;  %v6789_v1 = vld [vmem:[#allocation4 + $0x308] ss:$16 sps:$4 sm:$0xff]   ;;  %v6831_v36 = vld [vmem:[#allocation4 + $0x720] ss:$16 sps:$4 sm:$0xff]   ;;  %v7630_v20 = vpack.c.bf16 %v177_v61, %v169_v7 }
 0x14c   :  { %2608 = vmatmul.mubr.bf16.gmra.mrb[12].mxu0 %v7614_v60  ;;  %3063 = vmatprep.mubr.bf16.mxu1 %v7404_v3  ;;  %v6833_v3 = vld [vmem:[#allocation4 + $0x724] ss:$16 sps:$4 sm:$0xff]   ;;  %v6822_v61 = vld [vmem:[#allocation4 + $0x388] ss:$16 sps:$4 sm:$0xff]  }
 0x14d   :  { %2617 = vmatprep.mubr.bf16.mxu0 %v7616_v59  ;;  %3227 = vmatpush1.bf16.msra.mxu1 %v6783_v18  ;;  %v194_v18 = vld [vmem:[#allocation2 + $0x368] sm:$0xff] }
 0x14e   :  { %3228 = vmatprep.subr.bf16.mxu1 %v6788_v47  ;;  %2781 = vmatpush1.bf16.msra.mxu0 %v6819_v56  ;;  %v6792_v47 = vld [vmem:[#allocation4 + $0x328] ss:$16 sps:$4 sm:$0xff]   ;;  %v6803_v56 = vld [vmem:[#allocation4 + $0x34c] ss:$16 sps:$4 sm:$0xff]  }
 0x14f   :  { %2782 = vmatprep.subr.bf16.mxu0 %v6827_v10  ;;  %v6842_v10 = vld [vmem:[#allocation4 + $0x764] ss:$16 sps:$4 sm:$0xff]  }
 0x151   :  { %3229 = vmatpush1.bf16.msra.mxu1 %v6786_v31  ;;  %v6837_v31 = vld [vmem:[#allocation4 + $0x740] ss:$16 sps:$4 sm:$0xff]  }
 0x152   :  { %3230 = vmatprep.subr.bf16.mxu1 %v6791_v53  ;;  %2783 = vmatpush1.bf16.msra.mxu0 %v6825_v44  ;;  %v185_v53 = vld [vmem:[#allocation2 + $0x320] sm:$0xff] }
 0x153   :  { %3064 = vmatmul.mubr.bf16.gmra.mrb[92].mxu1 %v7412_v25  ;;  %2784 = vmatprep.subr.bf16.mxu0 %v6830_v28  ;;  %v7632_v25 = vpack.c.bf16 %v194_v18, %v186_v15  ;;  %v193_v44 = vld [vmem:[#allocation2 + $0x360] sm:$0xff]  ;;  %v210_v28 = vld [vmem:[#allocation2 + $0x3e8] sm:$0xff] }
 0x154   :  { %2618 = vmatmul.mubr.bf16.gmra.mrb[16].mxu0 %v7622_v33  ;;  %3073 = vmatprep.mubr.bf16.mxu1 %v7416_v27  ;;  %v6815_v27 = vld [vmem:[#allocation4 + $0x36c] ss:$16 sps:$4 sm:$0xff]   ;;  %v7638_v7 = vpack.c.bf16 %v193_v44, %v185_v53  ;;  %v6848_v15 = vld [vmem:[#allocation4 + $0x784] ss:$16 sps:$4 sm:$0xff]   ;;  %v6846_v18 = vld [vmem:[#allocation4 + $0x780] ss:$16 sps:$4 sm:$0xff]  }
 0x155   :  { %2627 = vmatprep.mubr.bf16.mxu0 %v7624_v63  ;;  %3231 = vmatpush1.bf16.msra.mxu1 %v6789_v1  ;;  %v202_v1 = vld [vmem:[#allocation2 + $0x3a8] sm:$0xff] }
 0x156   :  { %3232 = vmatprep.subr.bf16.mxu1 %v6794_v26  ;;  %2785 = vmatpush1.bf16.msra.mxu0 %v6828_v45  ;;  %v6813_v26 = vld [vmem:[#allocation4 + $0x368] ss:$16 sps:$4 sm:$0xff]   ;;  %v6824_v45 = vld [vmem:[#allocation4 + $0x38c] ss:$16 sps:$4 sm:$0xff]  }
 0x157   :  { %2786 = vmatprep.subr.bf16.mxu0 %v6833_v3  ;;  %v6840_v3 = vld [vmem:[#allocation4 + $0x760] ss:$16 sps:$4 sm:$0xff]   ;;  %v6843_v44 = vld [vmem:[#allocation4 + $0x3c8] ss:$16 sps:$4 sm:$0xff]  }
 0x159   :  { %3233 = vmatpush1.bf16.msra.mxu1 %v6792_v47  ;;  %v6851_v47 = vld [vmem:[#allocation4 + $0x7a4] ss:$16 sps:$4 sm:$0xff]  }
 0x15a   :  { %3234 = vmatprep.subr.bf16.mxu1 %v6803_v56  ;;  %2787 = vmatpush1.bf16.msra.mxu0 %v6831_v36  ;;  %v201_v56 = vld [vmem:[#allocation2 + $0x3a0] sm:$0xff] }
 0x15b   :  { %3074 = vmatmul.mubr.bf16.gmra.mrb[96].mxu1 %v7424_v55  ;;  %2788 = vmatprep.subr.bf16.mxu0 %v6839_v37  ;;  %v7640_v55 = vpack.c.bf16 %v210_v28, %v202_v1  ;;  %v209_v36 = vld [vmem:[#allocation2 + $0x3e0] sm:$0xff]  ;;  %v226_v37 = vld [vmem:[#allocation2 + $0x468] sm:$0xff] }
 0x15c   :  { %2628 = vmatmul.mubr.bf16.gmra.mrb[20].mxu0 %v7630_v20  ;;  %3083 = vmatprep.mubr.bf16.mxu1 %v7428_v57  ;;  %v6836_v57 = vld [vmem:[#allocation4 + $0x3ac] ss:$16 sps:$4 sm:$0xff]   ;;  %v7646_v53 = vpack.c.bf16 %v209_v36, %v201_v56  ;;  %v6857_v1 = vld [vmem:[#allocation4 + $0x7c4] ss:$16 sps:$4 sm:$0xff]   ;;  %v6855_v28 = vld [vmem:[#allocation4 + $0x7c0] ss:$16 sps:$4 sm:$0xff]  }
 0x15d   :  { %2637 = vmatprep.mubr.bf16.mxu0 %v7632_v25  ;;  %3235 = vmatpush1.bf16.msra.mxu1 %v6801_v49  ;;  %v218_v49 = vld [vmem:[#allocation2 + $0x428] sm:$0xff] }
 0x15e   :  { %3236 = vmatprep.subr.bf16.mxu1 %v6815_v27  ;;  %2789 = vmatpush1.bf16.msra.mxu0 %v6837_v31  ;;  %v6834_v27 = vld [vmem:[#allocation4 + $0x3a8] ss:$16 sps:$4 sm:$0xff]   ;;  %v6845_v31 = vld [vmem:[#allocation4 + $0x3cc] ss:$16 sps:$4 sm:$0xff]  }
 0x15f   :  { %2790 = vmatprep.subr.bf16.mxu0 %v6842_v10  ;;  %v6849_v10 = vld [vmem:[#allocation4 + $0x7a0] ss:$16 sps:$4 sm:$0xff]   ;;  %v6863_v56 = vld [vmem:[#allocation4 + $0x40c] ss:$16 sps:$4 sm:$0xff]  }
 0x161   :  { %3237 = vmatpush1.bf16.msra.mxu1 %v6813_v26  ;;  %v6860_v26 = vld [vmem:[#allocation4 + $0x7e4] ss:$16 sps:$4 sm:$0xff]  }
 0x162   :  { %3238 = vmatprep.subr.bf16.mxu1 %v6824_v45  ;;  %2791 = vmatpush1.bf16.msra.mxu0 %v6840_v3  ;;  %v217_v45 = vld [vmem:[#allocation2 + $0x420] sm:$0xff] }
 0x163   :  { %3084 = vmatmul.mubr.bf16.gmra.mrb[100].mxu1 %v7436_v17  ;;  %2792 = vmatprep.subr.bf16.mxu0 %v6848_v15  ;;  %v7648_v17 = vpack.c.bf16 %v226_v37, %v218_v49  ;;  %v225_v3 = vld [vmem:[#allocation2 + $0x460] sm:$0xff]  ;;  %v242_v15 = vld [vmem:[#allocation2 + $0x4e8] sm:$0xff] }
 0x164   :  { %2638 = vmatmul.mubr.bf16.gmra.mrb[24].mxu0 %v7638_v7  ;;  %3093 = vmatprep.mubr.bf16.mxu1 %v7440_v21  ;;  %v6854_v21 = vld [vmem:[#allocation4 + $0x3ec] ss:$16 sps:$4 sm:$0xff]  }
 0x165   :  { %2647 = vmatprep.mubr.bf16.mxu0 %v7640_v55  ;;  %3239 = vmatpush1.bf16.msra.mxu1 %v6822_v61  ;;  %v234_v61 = vld [vmem:[#allocation2 + $0x4a8] sm:$0xff] }
 0x166   :  { %3240 = vmatprep.subr.bf16.mxu1 %v6836_v57  ;;  %2793 = vmatpush1.bf16.msra.mxu0 %v6846_v18  ;;  %v6852_v57 = vld [vmem:[#allocation4 + $0x3e8] ss:$16 sps:$4 sm:$0xff]  }
 0x167   :  { %2794 = vmatprep.subr.bf16.mxu0 %v6851_v47  ;;  %v6858_v47 = vld [vmem:[#allocation4 + $0x7e0] ss:$16 sps:$4 sm:$0xff]  }
 0x169   :  { %3241 = vmatpush1.bf16.msra.mxu1 %v6834_v27  ;;  %v233_v27 = vld [vmem:[#allocation2 + $0x4a0] sm:$0xff] }
 0x16a   :  { %3242 = vmatprep.subr.bf16.mxu1 %v6845_v31  ;;  %2795 = vmatpush1.bf16.msra.mxu0 %v6849_v10  ;;  %v241_v31 = vld [vmem:[#allocation2 + $0x4e0] sm:$0xff]  ;;  %v250_v10 = vld [vmem:[#allocation2 + $0x528] sm:$0xff] }
 0x16b   :  { %3094 = vmatmul.mubr.bf16.gmra.mrb[104].mxu1 %v7448_v46  ;;  %2796 = vmatprep.subr.bf16.mxu0 %v6857_v1  ;;  %v7658_v46 = vpack.c.bf16 %v225_v3, %v217_v45 }
 0x16c   :  { %2648 = vmatmul.mubr.bf16.gmra.mrb[28].mxu0 %v7646_v53  ;;  %3103 = vmatprep.mubr.bf16.mxu1 %v7452_v52  ;;  %v7662_v52 = vpack.c.bf16 %v242_v15, %v234_v61  ;;  %v266_v61 = vld [vmem:[#allocation2 + $0x5a8] sm:$0xff] }
 0x16d   :  { %2657 = vmatprep.mubr.bf16.mxu0 %v7648_v17  ;;  %3243 = vmatpush1.bf16.msra.mxu1 %v6843_v44  ;;  %v258_v44 = vld [vmem:[#allocation2 + $0x568] sm:$0xff] }
 0x16e   :  { %v7654_v18 = vpop.f32.mrb[0].mxu1  ;;  %3244 = vmatprep.subr.bf16.mxu1 %v6854_v21  ;;  %2797 = vmatpush1.bf16.msra.mxu0 %v6855_v28  ;;  %v7674_v28 = vpack.c.bf16 %v241_v31, %v233_v27  ;;  %v7678_v45 = vpack.c.bf16 %v258_v44, %v250_v10  ;;  %v274_v15 = vld [vmem:[#allocation2 + $0x5e8] sm:$0xff] }
 0x16f   :  { %v7656_v36 = vpop.f32.mrb[1].mxu1  ;;  %2798 = vmatprep.subr.bf16.mxu0 %v6860_v26  ;;  %v7694_v31 = vpack.c.bf16 %v274_v15, %v266_v61  ;;  %v282_v44 = vld [vmem:[#allocation2 + $0x628] sm:$0xff] }
 0x170   :  { %v7660_v49 = vpop.f32.mrb[2].mxu1 }
 0x171   :  { %v7664_v37 = vpop.f32.mrb[3].mxu1  ;;  %3245 = vmatpush1.bf16.msra.mxu1 %v6852_v57 }
 0x172   :  { %2799 = vmatpush1.bf16.msra.mxu0 %v6858_v47  ;;  %3437 = vmatprep.subr.bf16.mxu1 %v6863_v56 }
 0x173   :  { %3104 = vmatmul.mubr.bf16.gmra.mrb[108].mxu1 %v7460_v14  ;;  %v249_v14 = vld [vmem:[#allocation2 + $0x520] sm:$0xff] }
 0x174   :  { %2658 = vmatmul.mubr.bf16.gmra.mrb[32].mxu0 %v7658_v46  ;;  %3113 = vmatprep.mubr.bf16.mxu1 %v7464_v24  ;;  %v257_v24 = vld [vmem:[#allocation2 + $0x560] sm:$0xff] }
 0x175   :  { %2667 = vmatprep.mubr.bf16.mxu0 %v7662_v52  ;;  %v7690_v56 = vpack.c.bf16 %v257_v24, %v249_v14 }
 0x176   :  { %v7670_v1 = vpop.f32.mrb[4].mxu1 }
 0x177   :  { %v7672_v21 = vpop.f32.mrb[5].mxu1  ;;  %9075 = vst [vmem:[#allocation47_spill] sm:$0xff] %v7690_v56 }
 0x178   :  { %v7676_v26 = vpop.f32.mrb[6].mxu1 }
 0x179   :  { %v7680_v3 = vpop.f32.mrb[7].mxu1 }
 0x17b   :  { %3114 = vmatmul.mubr.bf16.gmra.mrb[112].mxu1 %v7472_v62  ;;  %v265_v62 = vld [vmem:[#allocation2 + $0x5a0] sm:$0xff] }
 0x17c   :  { %2668 = vmatmul.mubr.bf16.gmra.mrb[36].mxu0 %v7674_v28  ;;  %3123 = vmatprep.mubr.bf16.mxu1 %v7476_v0  ;;  %v273_v0 = vld [vmem:[#allocation2 + $0x5e0] sm:$0xff] }
 0x17d   :  { %2677 = vmatprep.mubr.bf16.mxu0 %v7678_v45  ;;  %v7706_v61 = vpack.c.bf16 %v273_v0, %v265_v62 }
 0x17e   :  { %v7686_v57 = vpop.f32.mrb[8].mxu1 }
 0x17f   :  { %v7688_v47 = vpop.f32.mrb[9].mxu1  ;;  %9079 = vst [vmem:[#allocation51_spill] sm:$0xff] %v7706_v61 }
 0x180   :  { %9074 = vst [vmem:[#allocation46_spill] sm:$0xff] %v7688_v47  ;;  %v7692_v27 = vpop.f32.mrb[10].mxu1  ;;  %v290_v47 = vld [vmem:[#allocation2 + $0x668] sm:$0xff] }
 0x181   :  { %v7696_v10 = vpop.f32.mrb[11].mxu1 }
 0x182   :  { %9076 = vst [vmem:[#allocation48_spill] sm:$0xff] %v7696_v10  ;;  %v7710_v10 = vpack.c.bf16 %v290_v47, %v282_v44 }
 0x183   :  { %3124 = vmatmul.mubr.bf16.gmra.mrb[116].mxu1 %v7484_v39  ;;  %v281_v39 = vld [vmem:[#allocation2 + $0x620] sm:$0xff] }
 0x184   :  { %2678 = vmatmul.mubr.bf16.gmra.mrb[40].mxu0 %v7690_v56  ;;  %3133 = vmatprep.mubr.bf16.mxu1 %v7488_v41  ;;  %v289_v41 = vld [vmem:[#allocation2 + $0x660] sm:$0xff] }
 0x185   :  { %2687 = vmatprep.mubr.bf16.mxu0 %v7694_v31  ;;  %v7722_v47 = vpack.c.bf16 %v289_v41, %v281_v39 }
 0x186   :  { %v7702_v14 = vpop.f32.mrb[12].mxu1 }
 0x187   :  { %9077 = vst [vmem:[#allocation49_spill] sm:$0xff] %v7702_v14  ;;  %v7704_v24 = vpop.f32.mrb[13].mxu1  ;;  %v298_v14 = vld [vmem:[#allocation2 + $0x6a8] sm:$0xff]  ;;  %9083 = vst [vmem:[#allocation55_spill] sm:$0xff] %v7722_v47 }
 0x188   :  { %9078 = vst [vmem:[#allocation50_spill] sm:$0xff] %v7704_v24  ;;  %v7708_v15 = vpop.f32.mrb[14].mxu1  ;;  %v306_v24 = vld [vmem:[#allocation2 + $0x6e8] sm:$0xff] }
 0x189   :  { %v7712_v56 = vpop.f32.mrb[15].mxu1 }
 0x18a   :  { %9080 = vst [vmem:[#allocation52_spill] sm:$0xff] %v7712_v56  ;;  %v7726_v56 = vpack.c.bf16 %v306_v24, %v298_v14 }
 0x18b   :  { %3134 = vmatmul.mubr.bf16.gmra.mrb[120].mxu1 %v7496_v13  ;;  %v297_v13 = vld [vmem:[#allocation2 + $0x6a0] sm:$0xff] }
 0x18c   :  { %2688 = vmatmul.mubr.bf16.gmra.mrb[44].mxu0 %v7706_v61  ;;  %3143 = vmatprep.mubr.bf16.mxu1 %v7500_v35  ;;  %v305_v35 = vld [vmem:[#allocation2 + $0x6e0] sm:$0xff] }
 0x18d   :  { %2697 = vmatprep.mubr.bf16.mxu0 %v7710_v10  ;;  %v7738_v14 = vpack.c.bf16 %v305_v35, %v297_v13 }
 0x18e   :  { %v7718_v62 = vpop.f32.mrb[16].mxu1 }
 0x18f   :  { %9081 = vst [vmem:[#allocation53_spill] sm:$0xff] %v7718_v62  ;;  %v7720_v0 = vpop.f32.mrb[17].mxu1  ;;  %v314_v62 = vld [vmem:[#allocation2 + $0x728] sm:$0xff]  ;;  %9087 = vst [vmem:[#allocation59_spill] sm:$0xff] %v7738_v14 }
 0x190   :  { %9082 = vst [vmem:[#allocation54_spill] sm:$0xff] %v7720_v0  ;;  %v7724_v44 = vpop.f32.mrb[18].mxu1  ;;  %v322_v0 = vld [vmem:[#allocation2 + $0x768] sm:$0xff] }
 0x191   :  { %v7728_v61 = vpop.f32.mrb[19].mxu1 }
 0x192   :  { %9084 = vst [vmem:[#allocation56_spill] sm:$0xff] %v7728_v61  ;;  %v7742_v61 = vpack.c.bf16 %v322_v0, %v314_v62 }
 0x193   :  { %3144 = vmatmul.mubr.bf16.gmra.mrb[124].mxu1 %v7508_v6  ;;  %v313_v6 = vld [vmem:[#allocation2 + $0x720] sm:$0xff] }
 0x194   :  { %2698 = vmatmul.mubr.bf16.gmra.mrb[48].mxu0 %v7722_v47  ;;  %3153 = vmatprep.mubr.bf16.mxu1 %v7512_v8  ;;  %v321_v8 = vld [vmem:[#allocation2 + $0x760] sm:$0xff] }
 0x195   :  { %2707 = vmatprep.mubr.bf16.mxu0 %v7726_v56  ;;  %v7754_v62 = vpack.c.bf16 %v321_v8, %v313_v6 }
 0x196   :  { %v7734_v39 = vpop.f32.mrb[20].mxu1 }
 0x197   :  { %9085 = vst [vmem:[#allocation57_spill] sm:$0xff] %v7734_v39  ;;  %v7736_v41 = vpop.f32.mrb[21].mxu1  ;;  %v330_v39 = vld [vmem:[#allocation2 + $0x7a8] sm:$0xff]  ;;  %9091 = vst [vmem:[#allocation63_spill] sm:$0xff] %v7754_v62 }
 0x198   :  { %9086 = vst [vmem:[#allocation58_spill] sm:$0xff] %v7736_v41  ;;  %v7740_v24 = vpop.f32.mrb[22].mxu1  ;;  %v338_v41 = vld [vmem:[#allocation2 + $0x7e8] sm:$0xff] }
 0x199   :  { %v7744_v47 = vpop.f32.mrb[23].mxu1 }
 0x19a   :  { %9088 = vst [vmem:[#allocation60_spill] sm:$0xff] %v7744_v47  ;;  %v7758_v47 = vpack.c.bf16 %v338_v41, %v330_v39 }
 0x19b   :  { %3154 = vmatmul.mubr.bf16.gmra.mrb[128].mxu1 %v7520_v42  ;;  %v329_v42 = vld [vmem:[#allocation2 + $0x7a0] sm:$0xff] }
 0x19c   :  { %2708 = vmatmul.mubr.bf16.gmra.mrb[52].mxu0 %v7738_v14  ;;  %3163 = vmatprep.mubr.bf16.mxu1 %v7524_v38  ;;  %v337_v38 = vld [vmem:[#allocation2 + $0x7e0] sm:$0xff] }
 0x19d   :  { %2717 = vmatprep.mubr.bf16.mxu0 %v7742_v61  ;;  %v7770_v39 = vpack.c.bf16 %v337_v38, %v329_v42 }
 0x19e   :  { %v7750_v13 = vpop.f32.mrb[24].mxu1 }
 0x19f   :  { %9089 = vst [vmem:[#allocation61_spill] sm:$0xff] %v7750_v13  ;;  %v7752_v35 = vpop.f32.mrb[25].mxu1  ;;  %v346_v13 = vld [vmem:[#allocation2 + $0x828] sm:$0xff]  ;;  %9095 = vst [vmem:[#allocation67_spill] sm:$0xff] %v7770_v39 }
 0x1a0   :  { %9090 = vst [vmem:[#allocation62_spill] sm:$0xff] %v7752_v35  ;;  %v7756_v0 = vpop.f32.mrb[26].mxu1  ;;  %v354_v35 = vld [vmem:[#allocation2 + $0x868] sm:$0xff] }
 0x1a1   :  { %v7760_v14 = vpop.f32.mrb[27].mxu1 }
 0x1a2   :  { %9092 = vst [vmem:[#allocation64_spill] sm:$0xff] %v7760_v14  ;;  %v7774_v14 = vpack.c.bf16 %v354_v35, %v346_v13 }
 0x1a3   :  { %3164 = vmatmul.mubr.bf16.gmra.mrb[132].mxu1 %v7532_v40  ;;  %v345_v40 = vld [vmem:[#allocation2 + $0x820] sm:$0xff] }
 0x1a4   :  { %2718 = vmatmul.mubr.bf16.gmra.mrb[56].mxu0 %v7754_v62  ;;  %3173 = vmatprep.mubr.bf16.mxu1 %v7536_v5  ;;  %v353_v5 = vld [vmem:[#allocation2 + $0x860] sm:$0xff] }
 0x1a5   :  { %2727 = vmatprep.mubr.bf16.mxu0 %v7758_v47  ;;  %v7786_v13 = vpack.c.bf16 %v353_v5, %v345_v40 }
 0x1a6   :  { %v7766_v6 = vpop.f32.mrb[28].mxu1 }
 0x1a7   :  { %9093 = vst [vmem:[#allocation65_spill] sm:$0xff] %v7766_v6  ;;  %v7768_v8 = vpop.f32.mrb[29].mxu1  ;;  %v362_v6 = vld [vmem:[#allocation2 + $0x8a8] sm:$0xff]  ;;  %9099 = vst [vmem:[#allocation71_spill] sm:$0xff] %v7786_v13 }
 0x1a8   :  { %9094 = vst [vmem:[#allocation66_spill] sm:$0xff] %v7768_v8  ;;  %v7772_v41 = vpop.f32.mrb[30].mxu1  ;;  %v370_v8 = vld [vmem:[#allocation2 + $0x8e8] sm:$0xff] }
 0x1a9   :  { %v7776_v62 = vpop.f32.mrb[31].mxu1 }
 0x1aa   :  { %9096 = vst [vmem:[#allocation68_spill] sm:$0xff] %v7776_v62  ;;  %v7790_v62 = vpack.c.bf16 %v370_v8, %v362_v6 }
 0x1ab   :  { %3174 = vmatmul.mubr.bf16.gmra.mrb[136].mxu1 %v7544_v23  ;;  %v361_v23 = vld [vmem:[#allocation2 + $0x8a0] sm:$0xff] }
 0x1ac   :  { %2728 = vmatmul.mubr.bf16.gmra.mrb[60].mxu0 %v7770_v39  ;;  %3183 = vmatprep.mubr.bf16.mxu1 %v7548_v9  ;;  %v369_v9 = vld [vmem:[#allocation2 + $0x8e0] sm:$0xff] }
 0x1ad   :  { %2737 = vmatprep.mubr.bf16.mxu0 %v7774_v14  ;;  %v7802_v6 = vpack.c.bf16 %v369_v9, %v361_v23 }
 0x1ae   :  { %v7782_v42 = vpop.f32.mrb[32].mxu1 }
 0x1af   :  { %9097 = vst [vmem:[#allocation69_spill] sm:$0xff] %v7782_v42  ;;  %v7784_v38 = vpop.f32.mrb[33].mxu1  ;;  %v378_v42 = vld [vmem:[#allocation2 + $0x928] sm:$0xff]  ;;  %9103 = vst [vmem:[#allocation75_spill] sm:$0xff] %v7802_v6 }
 0x1b0   :  { %9098 = vst [vmem:[#allocation70_spill] sm:$0xff] %v7784_v38  ;;  %v7788_v35 = vpop.f32.mrb[34].mxu1  ;;  %v386_v38 = vld [vmem:[#allocation2 + $0x968] sm:$0xff] }
 0x1b1   :  { %v7792_v39 = vpop.f32.mrb[35].mxu1 }
 0x1b2   :  { %9100 = vst [vmem:[#allocation72_spill] sm:$0xff] %v7792_v39  ;;  %v7806_v39 = vpack.c.bf16 %v386_v38, %v378_v42 }
 0x1b3   :  { %3184 = vmatmul.mubr.bf16.gmra.mrb[140].mxu1 %v7556_v51  ;;  %v377_v51 = vld [vmem:[#allocation2 + $0x920] sm:$0xff] }
 0x1b4   :  { %2738 = vmatmul.mubr.bf16.gmra.mrb[64].mxu0 %v7786_v13  ;;  %3193 = vmatprep.mubr.bf16.mxu1 %v7560_v43  ;;  %v385_v43 = vld [vmem:[#allocation2 + $0x960] sm:$0xff] }
 0x1b5   :  { %2747 = vmatprep.mubr.bf16.mxu0 %v7790_v62  ;;  %v7818_v42 = vpack.c.bf16 %v385_v43, %v377_v51 }
 0x1b6   :  { %v7798_v40 = vpop.f32.mrb[36].mxu1 }
 0x1b7   :  { %9101 = vst [vmem:[#allocation73_spill] sm:$0xff] %v7798_v40  ;;  %v7800_v5 = vpop.f32.mrb[37].mxu1  ;;  %v92_v40 = vld [vmem:[#allocation2 + $0x38] sm:$0xff]  ;;  %9107 = vst [vmem:[#allocation79_spill] sm:$0xff] %v7818_v42 }
 0x1b8   :  { %9102 = vst [vmem:[#allocation74_spill] sm:$0xff] %v7800_v5  ;;  %v7804_v8 = vpop.f32.mrb[38].mxu1  ;;  %v100_v5 = vld [vmem:[#allocation2 + $0x78] sm:$0xff] }
 0x1b9   :  { %v7808_v13 = vpop.f32.mrb[39].mxu1 }
 0x1ba   :  { %9104 = vst [vmem:[#allocation76_spill] sm:$0xff] %v7808_v13  ;;  %v7822_v13 = vpack.c.bf16 %v100_v5, %v92_v40 }
 0x1bb   :  { %3194 = vmatmul.mubr.bf16.gmra.mrb[144].mxu1 %v7568_v22  ;;  %v91_v22 = vld [vmem:[#allocation2 + $0x30] sm:$0xff] }
 0x1bc   :  { %2748 = vmatmul.mubr.bf16.gmra.mrb[68].mxu0 %v7802_v6  ;;  %3203 = vmatprep.mubr.bf16.mxu1 %v7572_v30  ;;  %9108 = vst [vmem:[#allocation80_spill] sm:$0xff] %v7822_v13  ;;  %v99_v30 = vld [vmem:[#allocation2 + $0x70] sm:$0xff] }
 0x1bd   :  { %2757 = vmatprep.mubr.bf16.mxu0 %v7806_v39  ;;  %v7834_v40 = vpack.c.bf16 %v99_v30, %v91_v22  ;;  %v124_v22 = vld [vmem:[#allocation2 + $0x138] sm:$0xff] }
 0x1be   :  { %v7814_v23 = vpop.f32.mrb[40].mxu1  ;;  %v132_v30 = vld [vmem:[#allocation2 + $0x178] sm:$0xff] }
 0x1bf   :  { %9105 = vst [vmem:[#allocation77_spill] sm:$0xff] %v7814_v23  ;;  %v7816_v9 = vpop.f32.mrb[41].mxu1  ;;  %v108_v23 = vld [vmem:[#allocation2 + $0xb8] sm:$0xff]  ;;  %9112 = vst [vmem:[#allocation84_spill] sm:$0xff] %v7834_v40 }
 0x1c0   :  { %9106 = vst [vmem:[#allocation78_spill] sm:$0xff] %v7816_v9  ;;  %v7820_v38 = vpop.f32.mrb[42].mxu1  ;;  %v116_v9 = vld [vmem:[#allocation2 + $0xf8] sm:$0xff] }
 0x1c1   :  { %v7824_v6 = vpop.f32.mrb[43].mxu1 }
 0x1c2   :  { %9109 = vst [vmem:[#allocation81_spill] sm:$0xff] %v7824_v6  ;;  %v6861_v6 = vld [vmem:[#allocation4 + $0x408] ss:$16 sps:$4 sm:$0xff]  }
 0x1c3   :  { %3204 = vmatmul.mubr.bf16.gmra.mrb[148].mxu1 %v7580_v11 }
 0x1c4   :  { %2758 = vmatmul.mubr.bf16.gmra.mrb[72].mxu0 %v7818_v42  ;;  %3246 = vmatprep.mubr.bf16.mxu1 %v7360_v54  ;;  %v7838_v42 = vpack.c.bf16 %v116_v9, %v108_v23  ;;  %v107_v54 = vld [vmem:[#allocation2 + $0xb0] sm:$0xff]  ;;  %v6869_v23 = vld [vmem:[#allocation4 + $0x44c] ss:$16 sps:$4 sm:$0xff]  }
 0x1c5   :  { %2800 = vmatprep.mubr.bf16.mxu0 %v7822_v13  ;;  %v6866_v13 = vld [vmem:[#allocation4 + $0x42c] ss:$16 sps:$4 sm:$0xff]  }
 0x1c6   :  { %v7830_v51 = vpop.f32.mrb[44].mxu1  ;;  %9114 = vst [vmem:[#allocation86_spill] sm:$0xff] %v7838_v42 }
 0x1c7   :  { %9110 = vst [vmem:[#allocation82_spill] sm:$0xff] %v7830_v51  ;;  %v7832_v43 = vpop.f32.mrb[45].mxu1  ;;  %v115_v51 = vld [vmem:[#allocation2 + $0xf0] sm:$0xff] }
 0x1c8   :  { %9111 = vst [vmem:[#allocation83_spill] sm:$0xff] %v7832_v43  ;;  %v7836_v5 = vpop.f32.mrb[46].mxu1  ;;  %v6864_v43 = vld [vmem:[#allocation4 + $0x428] ss:$16 sps:$4 sm:$0xff]  }
 0x1c9   :  { %9113 = vst [vmem:[#allocation85_spill] sm:$0xff] %v7836_v5  ;;  %v7840_v11 = vpop.f32.mrb[47].mxu1  ;;  %v7850_v5 = vpack.c.bf16 %v115_v51, %v107_v54  ;;  %v131_v51 = vld [vmem:[#allocation2 + $0x170] sm:$0xff]  ;;  %v140_v54 = vld [vmem:[#allocation2 + $0x1b8] sm:$0xff] }
 0x1ca   :  { %9115 = vst [vmem:[#allocation87_spill] sm:$0xff] %v7840_v11 }
 0x1cb   :  { %3247 = vmatmul.mubr.bf16.vlgmr.msra.gmra.mrb[76].mxu1 %v7366_v16  ;;  %9116 = vst [vmem:[#allocation88_spill] sm:$0xff] %v7850_v5  ;;  %v7854_v16 = vpack.c.bf16 %v132_v30, %v124_v22  ;;  %v6870_v22 = vld [vmem:[#allocation4 + $0x468] ss:$16 sps:$4 sm:$0xff]  }
 0x1cc   :  { %2801 = vmatmul.mubr.bf16.vlgmr.msra.gmra.mrb[0].mxu0 %v7834_v40  ;;  %3438 = vmatpush1.bf16.msra.mxu1 %v6861_v6 }
 0x1cd   :  { %2810 = vmatprep.mubr.bf16.mxu0 %v7838_v42  ;;  %3256 = vmatprep.mubr.bf16.mxu1 %v7370_v19  ;;  %9118 = vst [vmem:[#allocation90_spill] sm:$0xff] %v7854_v16  ;;  %v6867_v42 = vld [vmem:[#allocation4 + $0x448] ss:$16 sps:$4 sm:$0xff]   ;;  %v6872_v19 = vld [vmem:[#allocation4 + $0x46c] ss:$16 sps:$4 sm:$0xff]  }
 0x1ce   :  { %3439 = vmatprep.subr.bf16.mxu1 %v6866_v13  ;;  %v7846_v9 = vpop.f32.mrb[48].mxu1  ;;  %v123_v13 = vld [vmem:[#allocation2 + $0x130] sm:$0xff] }
 0x1cf   :  { %v7848_v11 = vpop.f32.mrb[49].mxu1 }
 0x1d0   :  { %v7852_v40 = vpop.f32.mrb[50].mxu1  ;;  %3440 = vmatpush1.bf16.msra.mxu1 %v6864_v43  ;;  %v148_v43 = vld [vmem:[#allocation2 + $0x1f8] sm:$0xff] }
 0x1d1   :  { %9117 = vst [vmem:[#allocation89_spill] sm:$0xff] %v7852_v40  ;;  %v7856_v6 = vpop.f32.mrb[51].mxu1  ;;  %3441 = vmatprep.subr.bf16.mxu1 %v6869_v23  ;;  %v7866_v40 = vpack.c.bf16 %v131_v51, %v123_v13  ;;  %v147_v13 = vld [vmem:[#allocation2 + $0x1f0] sm:$0xff]  ;;  %v156_v51 = vld [vmem:[#allocation2 + $0x238] sm:$0xff] }
 0x1d2   :  { %9119 = vst [vmem:[#allocation91_spill] sm:$0xff] %v7856_v6  ;;  %v6875_v6 = vld [vmem:[#allocation4 + $0x48c] ss:$16 sps:$4 sm:$0xff]  }
 0x1d3   :  { %3257 = vmatmul.mubr.bf16.gmra.mrb[80].mxu1 %v7378_v32  ;;  %9121 = vst [vmem:[#allocation93_spill] sm:$0xff] %v7866_v40  ;;  %v7870_v32 = vpack.c.bf16 %v148_v43, %v140_v54  ;;  %v6876_v54 = vld [vmem:[#allocation4 + $0x4a8] ss:$16 sps:$4 sm:$0xff]  }
 0x1d4   :  { %2811 = vmatmul.mubr.bf16.gmra.mrb[4].mxu0 %v7850_v5  ;;  %3266 = vmatprep.mubr.bf16.mxu1 %v7382_v34  ;;  %v6873_v34 = vld [vmem:[#allocation4 + $0x488] ss:$16 sps:$4 sm:$0xff]  }
 0x1d5   :  { %2820 = vmatprep.mubr.bf16.mxu0 %v7854_v16  ;;  %3442 = vmatpush1.bf16.msra.mxu1 %v6867_v42  ;;  %9123 = vst [vmem:[#allocation95_spill] sm:$0xff] %v7870_v32  ;;  %v6878_v42 = vld [vmem:[#allocation4 + $0x4ac] ss:$16 sps:$4 sm:$0xff]  }
 0x1d6   :  { %v7862_v30 = vpop.f32.mrb[52].mxu1  ;;  %3443 = vmatprep.subr.bf16.mxu1 %v6872_v19  ;;  %v139_v19 = vld [vmem:[#allocation2 + $0x1b0] sm:$0xff] }
 0x1d7   :  { %v7864_v23 = vpop.f32.mrb[53].mxu1 }
 0x1d8   :  { %9120 = vst [vmem:[#allocation92_spill] sm:$0xff] %v7864_v23  ;;  %v7868_v5 = vpop.f32.mrb[54].mxu1  ;;  %v6884_v23 = vld [vmem:[#allocation4 + $0x4ec] ss:$16 sps:$4 sm:$0xff]  }
 0x1d9   :  { %9122 = vst [vmem:[#allocation94_spill] sm:$0xff] %v7868_v5  ;;  %v7872_v16 = vpop.f32.mrb[55].mxu1  ;;  %3444 = vmatpush1.bf16.msra.mxu1 %v6870_v22  ;;  %v164_v5 = vld [vmem:[#allocation2 + $0x278] sm:$0xff] }
 0x1da   :  { %9124 = vst [vmem:[#allocation96_spill] sm:$0xff] %v7872_v16  ;;  %3445 = vmatprep.subr.bf16.mxu1 %v6875_v6  ;;  %v6881_v22 = vld [vmem:[#allocation4 + $0x4cc] ss:$16 sps:$4 sm:$0xff]   ;;  %v7882_v16 = vpack.c.bf16 %v147_v13, %v139_v19  ;;  %v6912_v19 = vld [vmem:[#allocation7] sm:$0xff]  }
 0x1db   :  { %3267 = vmatmul.mubr.bf16.gmra.mrb[84].mxu1 %v7390_v48  ;;  %v7886_v48 = vpack.c.bf16 %v164_v5, %v156_v51  ;;  %v172_v13 = vld [vmem:[#allocation2 + $0x2b8] sm:$0xff] }
 0x1dc   :  { %2821 = vmatmul.mubr.bf16.gmra.mrb[8].mxu0 %v7866_v40  ;;  %3276 = vmatprep.mubr.bf16.mxu1 %v7394_v50  ;;  %9126 = vst [vmem:[#allocation98_spill] sm:$0xff] %v7882_v16  ;;  %v6879_v50 = vld [vmem:[#allocation4 + $0x4c8] ss:$16 sps:$4 sm:$0xff]  }
 0x1dd   :  { %2830 = vmatprep.mubr.bf16.mxu0 %v7870_v32  ;;  %3446 = vmatpush1.bf16.msra.mxu1 %v6873_v34  ;;  %9128 = vst [vmem:[#allocation100_spill] sm:$0xff] %v7886_v48  ;;  %v155_v34 = vld [vmem:[#allocation2 + $0x230] sm:$0xff]  ;;  %v180_v5 = vld [vmem:[#allocation2 + $0x2f8] sm:$0xff] }
 0x1de   :  { %v7878_v43 = vpop.f32.mrb[56].mxu1  ;;  %3447 = vmatprep.subr.bf16.mxu1 %v6878_v42  ;;  %v163_v42 = vld [vmem:[#allocation2 + $0x270] sm:$0xff]  ;;  %v6882_v51 = vld [vmem:[#allocation4 + $0x4e8] ss:$16 sps:$4 sm:$0xff]  }
 0x1df   :  { %v7880_v6 = vpop.f32.mrb[57].mxu1 }
 0x1e0   :  { %9125 = vst [vmem:[#allocation97_spill] sm:$0xff] %v7880_v6  ;;  %v7884_v40 = vpop.f32.mrb[58].mxu1  ;;  %v6890_v6 = vld [vmem:[#allocation4 + $0x52c] ss:$16 sps:$4 sm:$0xff]  }
 0x1e1   :  { %9127 = vst [vmem:[#allocation99_spill] sm:$0xff] %v7884_v40  ;;  %v7888_v32 = vpop.f32.mrb[59].mxu1  ;;  %3448 = vmatpush1.bf16.msra.mxu1 %v6876_v54  ;;  %v6885_v40 = vld [vmem:[#allocation4 + $0x508] ss:$16 sps:$4 sm:$0xff]  }
 0x1e2   :  { %9129 = vst [vmem:[#allocation101_spill] sm:$0xff] %v7888_v32  ;;  %3449 = vmatprep.subr.bf16.mxu1 %v6881_v22  ;;  %v9013_v32 = vmov 0   ;;  %v6887_v22 = vld [vmem:[#allocation4 + $0x50c] ss:$16 sps:$4 sm:$0xff]  }
 0x1e3   :  { %3277 = vmatmul.mubr.bf16.gmra.mrb[88].mxu1 %v7402_v2  ;;  %4374 = vmatprep.subr.bf16.mxu0 %v9013_v32 }
 0x1e4   :  { %2831 = vmatmul.mubr.bf16.gmra.mrb[12].mxu0 %v7882_v16  ;;  %3286 = vmatprep.mubr.bf16.mxu1 %v7406_v4  ;;  %v7904_v16 = vpack.c.bf16 %v180_v5, %v172_v13  ;;  %v196_v13 = vld [vmem:[#allocation2 + $0x378] sm:$0xff] }
 0x1e5   :  { %2840 = vmatprep.mubr.bf16.mxu0 %v7886_v48  ;;  %3450 = vmatpush1.bf16.msra.mxu1 %v6879_v50  ;;  %v7899_v48 = vpack.c.bf16 %v163_v42, %v155_v34  ;;  %v9137_v34 = vld [vmem:[#allocation14_spill] sm:$0xff]  ;;  %v6888_v5 = vld [vmem:[#allocation4 + $0x528] ss:$16 sps:$4 sm:$0xff]  }
 0x1e6   :  { %v7895_v54 = vpop.f32.mrb[60].mxu1  ;;  %3451 = vmatprep.subr.bf16.mxu1 %v6884_v23  ;;  %4375 = vmatpush1.bf16.msra.mxu0 %v6912_v19  ;;  %9134 = vst [vmem:[#allocation106_spill] sm:$0xff] %v7904_v16  ;;  %v9136_v23 = vld [vmem:[#allocation13_spill] sm:$0xff]  ;;  %v171_v42 = vld [vmem:[#allocation2 + $0x2b0] sm:$0xff] }
 0x1e7   :  { %9130 = vst [vmem:[#allocation102_spill] sm:$0xff] %v7895_v54  ;;  %v7897_v2 = vpop.f32.mrb[61].mxu1  ;;  %9132 = vst [vmem:[#allocation104_spill] sm:$0xff] %v7899_v48  ;;  %4376 = vmatprep.subr.bf16.mxu0 %v9013_v32  ;;  %v6916_v19 = vld [vmem:[#allocation7 + $0x8] sm:$0xff]  }
 0x1e8   :  { %9131 = vst [vmem:[#allocation103_spill] sm:$0xff] %v7897_v2  ;;  %v7902_v4 = vpop.f32.mrb[62].mxu1  ;;  %v179_v32 = vld [vmem:[#allocation2 + $0x2f0] sm:$0xff] }
 0x1e9   :  { %9133 = vst [vmem:[#allocation105_spill] sm:$0xff] %v7902_v4  ;;  %v7906_v50 = vpop.f32.mrb[63].mxu1  ;;  %3452 = vmatpush1.bf16.msra.mxu1 %v6882_v51  ;;  %v188_v4 = vld [vmem:[#allocation2 + $0x338] sm:$0xff]  ;;  %v7917_v2 = vpack.c.bf16 %v179_v32, %v171_v42  ;;  %v195_v42 = vld [vmem:[#allocation2 + $0x370] sm:$0xff] }
 0x1ea   :  { %9135 = vst [vmem:[#allocation107_spill] sm:$0xff] %v7906_v50  ;;  %3453 = vmatprep.subr.bf16.mxu1 %v6887_v22  ;;  %4377 = vmatpush1.bf16.msra.mxu0 %v6916_v19  ;;  %v6917_v51 = vld [vmem:[#allocation7 + $0x10] sm:$0xff]   ;;  %v6893_v22 = vld [vmem:[#allocation4 + $0x54c] ss:$16 sps:$4 sm:$0xff]  }
 0x1eb   :  { %3287 = vmatmul.mubr.bf16.gmra.mrb[92].mxu1 %v9136_v23  ;;  %9141 = vst [vmem:[#allocation108_spill] sm:$0xff] %v7917_v2  ;;  %v6896_v19 = vld [vmem:[#allocation4 + $0x56c] ss:$16 sps:$4 sm:$0xff]  }
 0x1ec   :  { %2841 = vmatmul.mubr.bf16.gmra.mrb[16].mxu0 %v7899_v48  ;;  %3296 = vmatprep.mubr.bf16.mxu1 %v9137_v34  ;;  %v9139_v48 = vmov 0   ;;  %v7921_v34 = vpack.c.bf16 %v196_v13, %v188_v4  ;;  %v9146_v32 = vld [vmem:[#allocation16_spill] sm:$0xff]  ;;  %v187_v4 = vld [vmem:[#allocation2 + $0x330] sm:$0xff] }
 0x1ed   :  { %2850 = vmatprep.mubr.bf16.mxu0 %v7904_v16  ;;  %3454 = vmatpush1.bf16.msra.mxu1 %v6885_v40  ;;  %v6891_v40 = vld [vmem:[#allocation4 + $0x548] ss:$16 sps:$4 sm:$0xff]  }
 0x1ee   :  { %v7912_v50 = vpop.f32.mrb[64].mxu1  ;;  %3455 = vmatprep.subr.bf16.mxu1 %v6890_v6  ;;  %4378 = vmatprep.subr.bf16.mxu0 %v9139_v48  ;;  %9143 = vst [vmem:[#allocation110_spill] sm:$0xff] %v7921_v34  ;;  %v9145_v6 = vld [vmem:[#allocation15_spill] sm:$0xff] }
 0x1ef   :  { %9138 = vst [vmem:[#allocation13_spill] sm:$0xff] %v7912_v50  ;;  %v7915_v23 = vpop.f32.mrb[65].mxu1  ;;  %4379 = vmatpush1.bf16.msra.mxu0 %v6917_v51  ;;  %v204_v13 = vld [vmem:[#allocation2 + $0x3b8] sm:$0xff]  ;;  %v6922_v51 = vld [vmem:[#allocation7 + $0x20] sm:$0xff]  }
 0x1f0   :  { %9140 = vst [vmem:[#allocation14_spill] sm:$0xff] %v7915_v23  ;;  %v7919_v16 = vpop.f32.mrb[66].mxu1  ;;  %4380 = vmatprep.subr.bf16.mxu0 %v9139_v48  ;;  %v6921_v23 = vld [vmem:[#allocation7 + $0x18] sm:$0xff]  }
 0x1f1   :  { %9142 = vst [vmem:[#allocation109_spill] sm:$0xff] %v7919_v16  ;;  %v7923_v54 = vpop.f32.mrb[67].mxu1  ;;  %3456 = vmatpush1.bf16.msra.mxu1 %v6888_v5  ;;  %v6894_v5 = vld [vmem:[#allocation4 + $0x568] ss:$16 sps:$4 sm:$0xff]   ;;  %v6899_v16 = vld [vmem:[#allocation4 + $0x58c] ss:$16 sps:$4 sm:$0xff]  }
 0x1f2   :  { %9144 = vst [vmem:[#allocation111_spill] sm:$0xff] %v7923_v54  ;;  %3457 = vmatprep.subr.bf16.mxu1 %v6893_v22  ;;  %v212_v54 = vld [vmem:[#allocation2 + $0x3f8] sm:$0xff] }
 0x1f3   :  { %3297 = vmatmul.mubr.bf16.gmra.mrb[96].mxu1 %v9145_v6  ;;  %4381 = vmatpush1.bf16.msra.mxu0 %v6921_v23  ;;  %v6902_v23 = vld [vmem:[#allocation4 + $0x5ac] ss:$16 sps:$4 sm:$0xff]  }
 0x1f4   :  { %2851 = vmatmul.mubr.bf16.gmra.mrb[20].mxu0 %v7917_v2  ;;  %3306 = vmatprep.mubr.bf16.mxu1 %v9146_v32  ;;  %v7935_v2 = vpack.c.bf16 %v195_v42, %v187_v4  ;;  %v7939_v32 = vpack.c.bf16 %v212_v54, %v204_v13  ;;  %v9154_v4 = vld [vmem:[#allocation18_spill] sm:$0xff]  ;;  %v220_v13 = vld [vmem:[#allocation2 + $0x438] sm:$0xff] }
 0x1f5   :  { %2860 = vmatprep.mubr.bf16.mxu0 %v7921_v34  ;;  %3458 = vmatpush1.bf16.msra.mxu1 %v6891_v40  ;;  %v6897_v40 = vld [vmem:[#allocation4 + $0x588] ss:$16 sps:$4 sm:$0xff]   ;;  %v203_v54 = vld [vmem:[#allocation2 + $0x3b0] sm:$0xff] }
 0x1f6   :  { %v7930_v22 = vpop.f32.mrb[68].mxu1  ;;  %3459 = vmatprep.subr.bf16.mxu1 %v6896_v19  ;;  %4382 = vmatprep.subr.bf16.mxu0 %v9139_v48  ;;  %9149 = vst [vmem:[#allocation112_spill] sm:$0xff] %v7935_v2  ;;  %9151 = vst [vmem:[#allocation114_spill] sm:$0xff] %v7939_v32  ;;  %v9153_v19 = vld [vmem:[#allocation17_spill] sm:$0xff]  ;;  %v211_v42 = vld [vmem:[#allocation2 + $0x3f0] sm:$0xff] }
 0x1f7   :  { %9147 = vst [vmem:[#allocation15_spill] sm:$0xff] %v7930_v22  ;;  %v7933_v6 = vpop.f32.mrb[69].mxu1  ;;  %4383 = vmatpush1.bf16.msra.mxu0 %v6922_v51 }
 0x1f8   :  { %9148 = vst [vmem:[#allocation16_spill] sm:$0xff] %v7933_v6  ;;  %v7937_v34 = vpop.f32.mrb[70].mxu1  ;;  %4384 = vmatprep.subr.bf16.mxu0 %v9139_v48  ;;  %v6923_v6 = vld [vmem:[#allocation7 + $0x28] sm:$0xff]  }
 0x1f9   :  { %9150 = vst [vmem:[#allocation113_spill] sm:$0xff] %v7937_v34  ;;  %v7941_v50 = vpop.f32.mrb[71].mxu1  ;;  %3460 = vmatpush1.bf16.msra.mxu1 %v6894_v5  ;;  %v6900_v5 = vld [vmem:[#allocation4 + $0x5a8] ss:$16 sps:$4 sm:$0xff]   ;;  %v6905_v34 = vld [vmem:[#allocation4 + $0x5cc] ss:$16 sps:$4 sm:$0xff]  }
 0x1fa   :  { %9152 = vst [vmem:[#allocation115_spill] sm:$0xff] %v7941_v50  ;;  %3461 = vmatprep.subr.bf16.mxu1 %v6899_v16  ;;  %v228_v50 = vld [vmem:[#allocation2 + $0x478] sm:$0xff] }
 0x1fb   :  { %3307 = vmatmul.mubr.bf16.gmra.mrb[100].mxu1 %v9153_v19  ;;  %4385 = vmatpush1.bf16.msra.mxu0 %v6923_v6  ;;  %v6927_v16 = vld [vmem:[#allocation7 + $0x30] sm:$0xff]   ;;  %v6908_v6 = vld [vmem:[#allocation4 + $0x5ec] ss:$16 sps:$4 sm:$0xff]  }
 0x1fc   :  { %2861 = vmatmul.mubr.bf16.gmra.mrb[24].mxu0 %v7935_v2  ;;  %3316 = vmatprep.mubr.bf16.mxu1 %v9154_v4  ;;  %v7953_v2 = vpack.c.bf16 %v211_v42, %v203_v54  ;;  %v7957_v4 = vpack.c.bf16 %v228_v50, %v220_v13  ;;  %v9160_v54 = vld [vmem:[#allocation20_spill] sm:$0xff]  ;;  %v219_v50 = vld [vmem:[#allocation2 + $0x430] sm:$0xff] }
 0x1fd   :  { %2870 = vmatprep.mubr.bf16.mxu0 %v7939_v32  ;;  %3462 = vmatpush1.bf16.msra.mxu1 %v6897_v40  ;;  %v6903_v40 = vld [vmem:[#allocation4 + $0x5c8] ss:$16 sps:$4 sm:$0xff]   ;;  %v227_v42 = vld [vmem:[#allocation2 + $0x470] sm:$0xff] }
 0x1fe   :  { %v7948_v51 = vpop.f32.mrb[72].mxu1  ;;  %3463 = vmatprep.subr.bf16.mxu1 %v6902_v23  ;;  %4386 = vmatprep.subr.bf16.mxu0 %v9139_v48  ;;  %9156 = vst [vmem:[#allocation18_spill] sm:$0xff] %v7953_v2  ;;  %9157 = vst [vmem:[#allocation116_spill] sm:$0xff] %v7957_v4  ;;  %v9159_v23 = vld [vmem:[#allocation19_spill] sm:$0xff] }
 0x1ff   :  { %v7951_v19 = vpop.f32.mrb[73].mxu1  ;;  %4387 = vmatpush1.bf16.msra.mxu0 %v6927_v16  ;;  %v236_v13 = vld [vmem:[#allocation2 + $0x4b8] sm:$0xff] }
 0x200   :  { %9155 = vst [vmem:[#allocation17_spill] sm:$0xff] %v7951_v19  ;;  %v7955_v32 = vpop.f32.mrb[74].mxu1  ;;  %4388 = vmatprep.subr.bf16.mxu0 %v9139_v48  ;;  %v6928_v19 = vld [vmem:[#allocation7 + $0x38] sm:$0xff]  }
 0x201   :  { %v7959_v22 = vpop.f32.mrb[75].mxu1  ;;  %3464 = vmatpush1.bf16.msra.mxu1 %v6900_v5  ;;  %v6906_v5 = vld [vmem:[#allocation4 + $0x5e8] ss:$16 sps:$4 sm:$0xff]   ;;  %v6911_v16 = vld [vmem:[#allocation4 + $0x60c] ss:$16 sps:$4 sm:$0xff]  }
 0x202   :  { %9158 = vst [vmem:[#allocation117_spill] sm:$0xff] %v7959_v22  ;;  %3465 = vmatprep.subr.bf16.mxu1 %v6905_v34  ;;  %v244_v22 = vld [vmem:[#allocation2 + $0x4f8] sm:$0xff]  ;;  %v6932_v34 = vld [vmem:[#allocation7 + $0x40] sm:$0xff]  }
 0x203   :  { %3317 = vmatmul.mubr.bf16.gmra.mrb[104].mxu1 %v9159_v23  ;;  %4389 = vmatpush1.bf16.msra.mxu0 %v6928_v19  ;;  %v7969_v23 = vpack.c.bf16 %v244_v22, %v236_v13  ;;  %v9164_v19 = vld [vmem:[#allocation22_spill] sm:$0xff] }
 0x204   :  { %2871 = vmatmul.mubr.bf16.gmra.mrb[28].mxu0 %v7953_v2  ;;  %3326 = vmatprep.mubr.bf16.mxu1 %v9160_v54  ;;  %v7967_v2 = vpack.c.bf16 %v227_v42, %v219_v50  ;;  %v9163_v54 = vld [vmem:[#allocation21_spill] sm:$0xff]  ;;  %v252_v50 = vld [vmem:[#allocation2 + $0x538] sm:$0xff] }
 0x205   :  { %2880 = vmatprep.mubr.bf16.mxu0 %v7957_v4  ;;  %3466 = vmatpush1.bf16.msra.mxu1 %v6903_v40  ;;  %9162 = vst [vmem:[#allocation20_spill] sm:$0xff] %v7969_v23  ;;  %v6933_v40 = vld [vmem:[#allocation7 + $0x48] sm:$0xff]   ;;  %v260_v42 = vld [vmem:[#allocation2 + $0x578] sm:$0xff] }
 0x206   :  { %3467 = vmatprep.subr.bf16.mxu1 %v6908_v6  ;;  %4390 = vmatprep.subr.bf16.mxu0 %v9139_v48  ;;  %9161 = vst [vmem:[#allocation19_spill] sm:$0xff] %v7967_v2  ;;  %v235_v6 = vld [vmem:[#allocation2 + $0x4b0] sm:$0xff] }
 0x207   :  { %4391 = vmatpush1.bf16.msra.mxu0 %v6932_v34  ;;  %v243_v4 = vld [vmem:[#allocation2 + $0x4f0] sm:$0xff] }
 0x208   :  { %4392 = vmatprep.subr.bf16.mxu0 %v9139_v48  ;;  %v6934_v22 = vld [vmem:[#allocation7 + $0x50] sm:$0xff]   ;;  %v7977_v13 = vpack.c.bf16 %v243_v4, %v235_v6  ;;  %v6939_v4 = vld [vmem:[#allocation7 + $0x60] sm:$0xff]  }
 0x209   :  { %3468 = vmatpush1.bf16.msra.mxu1 %v6906_v5  ;;  %v7979_v5 = vpack.c.bf16 %v260_v42, %v252_v50  ;;  %v9167_v34 = vld [vmem:[#allocation23_spill] sm:$0xff]  ;;  %v9171_v42 = vld [vmem:[#allocation25_spill] sm:$0xff] }
 0x20a   :  { %3660 = vmatprep.subr.bf16.mxu1 %v6911_v16  ;;  %9165 = vst [vmem:[#allocation21_spill] sm:$0xff] %v7977_v13  ;;  %v6938_v16 = vld [vmem:[#allocation7 + $0x58] sm:$0xff]  }
 0x20b   :  { %3327 = vmatmul.mubr.bf16.gmra.mrb[108].mxu1 %v9163_v54  ;;  %4393 = vmatpush1.bf16.msra.mxu0 %v6933_v40  ;;  %9166 = vst [vmem:[#allocation22_spill] sm:$0xff] %v7979_v5  ;;  %v9168_v54 = vld [vmem:[#allocation24_spill] sm:$0xff]  ;;  %v251_v40 = vld [vmem:[#allocation2 + $0x530] sm:$0xff] }
 0x20c   :  { %2881 = vmatmul.mubr.bf16.gmra.mrb[32].mxu0 %v7967_v2  ;;  %3336 = vmatprep.mubr.bf16.mxu1 %v9164_v19  ;;  %v259_v19 = vld [vmem:[#allocation2 + $0x570] sm:$0xff]  ;;  %v276_v2 = vld [vmem:[#allocation2 + $0x5f8] sm:$0xff] }
 0x20d   :  { %2890 = vmatprep.mubr.bf16.mxu0 %v7969_v23  ;;  %4394 = vmatprep.subr.bf16.mxu0 %v9139_v48  ;;  %v268_v23 = vld [vmem:[#allocation2 + $0x5b8] sm:$0xff]  ;;  %v7987_v6 = vpack.c.bf16 %v259_v19, %v251_v40 }
 0x20e   :  { %v7989_v50 = vpack.c.bf16 %v276_v2, %v268_v23  ;;  %v6944_v23 = vld [vmem:[#allocation7 + $0x70] sm:$0xff]  }
 0x20f   :  { %4395 = vmatpush1.bf16.msra.mxu0 %v6934_v22  ;;  %9169 = vst [vmem:[#allocation23_spill] sm:$0xff] %v7987_v6  ;;  %v9172_v22 = vld [vmem:[#allocation26_spill] sm:$0xff]  ;;  %v9175_v19 = vld [vmem:[#allocation27_spill] sm:$0xff] }
 0x210   :  { %4396 = vmatprep.subr.bf16.mxu0 %v9139_v48  ;;  %9170 = vst [vmem:[#allocation24_spill] sm:$0xff] %v7989_v50 }
 0x213   :  { %3337 = vmatmul.mubr.bf16.gmra.mrb[112].mxu1 %v9167_v34  ;;  %4397 = vmatpush1.bf16.msra.mxu0 %v6938_v16  ;;  %v267_v34 = vld [vmem:[#allocation2 + $0x5b0] sm:$0xff] }
 0x214   :  { %2891 = vmatmul.mubr.bf16.gmra.mrb[36].mxu0 %v7977_v13  ;;  %3346 = vmatprep.mubr.bf16.mxu1 %v9168_v54  ;;  %v275_v16 = vld [vmem:[#allocation2 + $0x5f0] sm:$0xff]  ;;  %v292_v13 = vld [vmem:[#allocation2 + $0x678] sm:$0xff] }
 0x215   :  { %2900 = vmatprep.mubr.bf16.mxu0 %v7979_v5  ;;  %4398 = vmatprep.subr.bf16.mxu0 %v9139_v48  ;;  %v6943_v54 = vld [vmem:[#allocation7 + $0x68] sm:$0xff]   ;;  %v284_v5 = vld [vmem:[#allocation2 + $0x638] sm:$0xff]  ;;  %v7996_v40 = vpack.c.bf16 %v275_v16, %v267_v34 }
 0x216   :  { %v7999_v2 = vpack.c.bf16 %v292_v13, %v284_v5  ;;  %v308_v34 = vld [vmem:[#allocation2 + $0x6f8] sm:$0xff]  ;;  %v9179_v16 = vld [vmem:[#allocation29_spill] sm:$0xff] }
 0x217   :  { %4399 = vmatpush1.bf16.msra.mxu0 %v6939_v4  ;;  %9173 = vst [vmem:[#allocation25_spill] sm:$0xff] %v7996_v40  ;;  %v9176_v4 = vld [vmem:[#allocation28_spill] sm:$0xff] }
 0x218   :  { %4400 = vmatprep.subr.bf16.mxu0 %v9139_v48  ;;  %9174 = vst [vmem:[#allocation26_spill] sm:$0xff] %v7999_v2 }
 0x21b   :  { %3347 = vmatmul.mubr.bf16.gmra.mrb[116].mxu1 %v9171_v42  ;;  %4401 = vmatpush1.bf16.msra.mxu0 %v6943_v54  ;;  %v283_v42 = vld [vmem:[#allocation2 + $0x630] sm:$0xff]  ;;  %v300_v54 = vld [vmem:[#allocation2 + $0x6b8] sm:$0xff] }
 0x21c   :  { %2901 = vmatmul.mubr.bf16.gmra.mrb[40].mxu0 %v7987_v6  ;;  %3356 = vmatprep.mubr.bf16.mxu1 %v9172_v22  ;;  %v291_v22 = vld [vmem:[#allocation2 + $0x670] sm:$0xff]  ;;  %v8009_v5 = vpack.c.bf16 %v308_v34, %v300_v54 }
 0x21d   :  { %2910 = vmatprep.mubr.bf16.mxu0 %v7989_v50  ;;  %4402 = vmatprep.subr.bf16.mxu0 %v9139_v48  ;;  %v6948_v50 = vld [vmem:[#allocation7 + $0x78] sm:$0xff]   ;;  %v8006_v13 = vpack.c.bf16 %v291_v22, %v283_v42  ;;  %v315_v54 = vld [vmem:[#allocation2 + $0x730] sm:$0xff] }
 0x21e   :  { %9178 = vst [vmem:[#allocation28_spill] sm:$0xff] %v8009_v5  ;;  %v9183_v42 = vld [vmem:[#allocation31_spill] sm:$0xff]  ;;  %v9184_v22 = vld [vmem:[#allocation32_spill] sm:$0xff] }
 0x21f   :  { %4403 = vmatpush1.bf16.msra.mxu0 %v6944_v23  ;;  %9177 = vst [vmem:[#allocation27_spill] sm:$0xff] %v8006_v13  ;;  %v9180_v23 = vld [vmem:[#allocation30_spill] sm:$0xff] }
 0x220   :  { %4404 = vmatprep.subr.bf16.mxu0 %v9139_v48  ;;  %v323_v34 = vld [vmem:[#allocation2 + $0x770] sm:$0xff] }
 0x223   :  { %3357 = vmatmul.mubr.bf16.gmra.mrb[120].mxu1 %v9175_v19  ;;  %4405 = vmatpush1.bf16.msra.mxu0 %v6948_v50  ;;  %v299_v19 = vld [vmem:[#allocation2 + $0x6b0] sm:$0xff] }
 0x224   :  { %2911 = vmatmul.mubr.bf16.gmra.mrb[44].mxu0 %v7996_v40  ;;  %3366 = vmatprep.mubr.bf16.mxu1 %v9176_v4  ;;  %v307_v4 = vld [vmem:[#allocation2 + $0x6f0] sm:$0xff]  ;;  %v324_v40 = vld [vmem:[#allocation2 + $0x778] sm:$0xff] }
 0x225   :  { %2920 = vmatprep.mubr.bf16.mxu0 %v7999_v2  ;;  %4559 = vmatprep.subr.bf16.mxu0 %v9139_v48  ;;  %v316_v2 = vld [vmem:[#allocation2 + $0x738] sm:$0xff]  ;;  %v8015_v6 = vpack.c.bf16 %v307_v4, %v299_v19  ;;  %v331_v19 = vld [vmem:[#allocation2 + $0x7b0] sm:$0xff] }
 0x226   :  { %v8017_v50 = vpack.c.bf16 %v324_v40, %v316_v2  ;;  %v9187_v40 = vld [vmem:[#allocation33_spill] sm:$0xff]  ;;  %v9188_v2 = vld [vmem:[#allocation34_spill] sm:$0xff] }
 0x227   :  { %9181 = vst [vmem:[#allocation29_spill] sm:$0xff] %v8015_v6  ;;  %v339_v4 = vld [vmem:[#allocation2 + $0x7f0] sm:$0xff] }
 0x228   :  { %9182 = vst [vmem:[#allocation30_spill] sm:$0xff] %v8017_v50 }
 0x22b   :  { %3367 = vmatmul.mubr.bf16.gmra.mrb[124].mxu1 %v9179_v16  ;;  %v332_v16 = vld [vmem:[#allocation2 + $0x7b8] sm:$0xff] }
 0x22c   :  { %2921 = vmatmul.mubr.bf16.gmra.mrb[48].mxu0 %v8006_v13  ;;  %3376 = vmatprep.mubr.bf16.mxu1 %v9180_v23  ;;  %v340_v23 = vld [vmem:[#allocation2 + $0x7f8] sm:$0xff] }
 0x22d   :  { %2930 = vmatprep.mubr.bf16.mxu0 %v8009_v5  ;;  %v8023_v5 = vpack.c.bf16 %v323_v34, %v315_v54  ;;  %v8025_v13 = vpack.c.bf16 %v340_v23, %v332_v16  ;;  %v9191_v54 = vld [vmem:[#allocation35_spill] sm:$0xff]  ;;  %v9192_v34 = vld [vmem:[#allocation36_spill] sm:$0xff] }
 0x22e   :  { %v347_v16 = vld [vmem:[#allocation2 + $0x830] sm:$0xff] }
 0x22f   :  { %9185 = vst [vmem:[#allocation31_spill] sm:$0xff] %v8023_v5  ;;  %9186 = vst [vmem:[#allocation32_spill] sm:$0xff] %v8025_v13  ;;  %v355_v23 = vld [vmem:[#allocation2 + $0x870] sm:$0xff] }
 0x233   :  { %3377 = vmatmul.mubr.bf16.gmra.mrb[128].mxu1 %v9183_v42  ;;  %v348_v42 = vld [vmem:[#allocation2 + $0x838] sm:$0xff] }
 0x234   :  { %2931 = vmatmul.mubr.bf16.gmra.mrb[52].mxu0 %v8015_v6  ;;  %3386 = vmatprep.mubr.bf16.mxu1 %v9184_v22  ;;  %v356_v22 = vld [vmem:[#allocation2 + $0x878] sm:$0xff] }
 0x235   :  { %2940 = vmatprep.mubr.bf16.mxu0 %v8017_v50  ;;  %v8031_v50 = vpack.c.bf16 %v339_v4, %v331_v19  ;;  %v8033_v6 = vpack.c.bf16 %v356_v22, %v348_v42  ;;  %v9193_v19 = vld [vmem:[#allocation37_spill] sm:$0xff]  ;;  %v9194_v4 = vld [vmem:[#allocation38_spill] sm:$0xff] }
 0x236   :  { %v363_v42 = vld [vmem:[#allocation2 + $0x8b0] sm:$0xff] }
 0x237   :  { %9189 = vst [vmem:[#allocation33_spill] sm:$0xff] %v8031_v50  ;;  %9190 = vst [vmem:[#allocation34_spill] sm:$0xff] %v8033_v6  ;;  %v371_v22 = vld [vmem:[#allocation2 + $0x8f0] sm:$0xff] }
 0x23b   :  { %3387 = vmatmul.mubr.bf16.gmra.mrb[132].mxu1 %v9187_v40  ;;  %v364_v40 = vld [vmem:[#allocation2 + $0x8b8] sm:$0xff] }
 0x23c   :  { %2941 = vmatmul.mubr.bf16.gmra.mrb[56].mxu0 %v8023_v5  ;;  %3396 = vmatprep.mubr.bf16.mxu1 %v9188_v2  ;;  %v372_v2 = vld [vmem:[#allocation2 + $0x8f8] sm:$0xff] }
 0x23d   :  { %2950 = vmatprep.mubr.bf16.mxu0 %v8025_v13  ;;  %v8039_v13 = vpack.c.bf16 %v355_v23, %v347_v16  ;;  %v8041_v5 = vpack.c.bf16 %v372_v2, %v364_v40  ;;  %v9197_v16 = vld [vmem:[#allocation39_spill] sm:$0xff]  ;;  %v9198_v23 = vld [vmem:[#allocation40_spill] sm:$0xff] }
 0x23e   :  { %v379_v40 = vld [vmem:[#allocation2 + $0x930] sm:$0xff] }
 0x23f   :  { %v387_v2 = vld [vmem:[#allocation2 + $0x970] sm:$0xff] }
 0x243   :  { %3397 = vmatmul.mubr.bf16.gmra.mrb[136].mxu1 %v9191_v54  ;;  %v380_v54 = vld [vmem:[#allocation2 + $0x938] sm:$0xff] }
 0x244   :  { %2951 = vmatmul.mubr.bf16.gmra.mrb[60].mxu0 %v8031_v50  ;;  %3406 = vmatprep.mubr.bf16.mxu1 %v9192_v34  ;;  %v388_v34 = vld [vmem:[#allocation2 + $0x978] sm:$0xff] }
 0x245   :  { %2960 = vmatprep.mubr.bf16.mxu0 %v8033_v6  ;;  %v8047_v6 = vpack.c.bf16 %v371_v22, %v363_v42  ;;  %v8049_v50 = vpack.c.bf16 %v388_v34, %v380_v54  ;;  %v9200_v42 = vld [vmem:[#allocation42_spill] sm:$0xff]  ;;  %v6909_v22 = vld [vmem:[#allocation4 + $0x608] ss:$16 sps:$4 sm:$0xff]  }
 0x246   :  { %v6915_v54 = vld [vmem:[#allocation4 + $0x62c] ss:$16 sps:$4 sm:$0xff]  }
 0x247   :  { %9195 = vst [vmem:[#allocation35_spill] sm:$0xff] %v8047_v6  ;;  %9196 = vst [vmem:[#allocation36_spill] sm:$0xff] %v8049_v50  ;;  %v9201_v34 = vld [vmem:[#allocation43_spill] sm:$0xff] }
 0x24b   :  { %3407 = vmatmul.mubr.bf16.gmra.mrb[140].mxu1 %v9193_v19  ;;  %v8055_v19 = vpack.c.bf16 %v387_v2, %v379_v40  ;;  %v6926_v40 = vld [vmem:[#allocation4 + $0x66c] ss:$16 sps:$4 sm:$0xff]   ;;  %v6924_v2 = vld [vmem:[#allocation4 + $0x668] ss:$16 sps:$4 sm:$0xff]  }
 0x24c   :  { %2961 = vmatmul.mubr.bf16.gmra.mrb[64].mxu0 %v8039_v13  ;;  %3416 = vmatprep.mubr.bf16.mxu1 %v9194_v4  ;;  %v9199_v4 = vld [vmem:[#allocation41_spill] sm:$0xff] }
 0x24d   :  { %2970 = vmatprep.mubr.bf16.mxu0 %v8041_v5 }
 0x253   :  { %3417 = vmatmul.mubr.bf16.gmra.mrb[144].mxu1 %v9197_v16  ;;  %v9202_v16 = vld [vmem:[#allocation44_spill] sm:$0xff] }
 0x254   :  { %2971 = vmatmul.mubr.bf16.gmra.mrb[68].mxu0 %v8047_v6  ;;  %3426 = vmatprep.mubr.bf16.mxu1 %v9198_v23  ;;  %v6920_v23 = vld [vmem:[#allocation4 + $0x64c] ss:$16 sps:$4 sm:$0xff]   ;;  %v6918_v6 = vld [vmem:[#allocation4 + $0x648] ss:$16 sps:$4 sm:$0xff]  }
 0x255   :  { %2980 = vmatprep.mubr.bf16.mxu0 %v8049_v50  ;;  %v6913_v50 = vld [vmem:[#allocation4 + $0x628] ss:$16 sps:$4 sm:$0xff]  }
 0x25b   :  { %3427 = vmatmul.mubr.bf16.gmra.mrb[148].mxu1 %v9199_v4  ;;  %v6931_v4 = vld [vmem:[#allocation4 + $0x68c] ss:$16 sps:$4 sm:$0xff]  }
 0x25c   :  { %2981 = vmatmul.mubr.bf16.gmra.mrb[72].mxu0 %v8055_v19  ;;  %3469 = vmatprep.mubr.bf16.mxu1 %v9200_v42  ;;  %v6929_v42 = vld [vmem:[#allocation4 + $0x688] ss:$16 sps:$4 sm:$0xff]  }
 0x263   :  { %3470 = vmatmul.mubr.bf16.vlgmr.msra.gmra.mrb[76].mxu1 %v9201_v34  ;;  %v6942_v34 = vld [vmem:[#allocation4 + $0x6cc] ss:$16 sps:$4 sm:$0xff]  }
 0x264   :  { %3661 = vmatpush1.bf16.msra.mxu1 %v6909_v22  ;;  %3479 = vmatprep.mubr.bf16.mxu1 %v9202_v16  ;;  %v6937_v22 = vld [vmem:[#allocation4 + $0x6ac] ss:$16 sps:$4 sm:$0xff]  }
 0x265   :  { %3662 = vmatprep.subr.bf16.mxu1 %v6915_v54  ;;  %v9203_v54 = vld [vmem:[#allocation45_spill] sm:$0xff] }
 0x266   :  { %v6951_v16 = vld [vmem:[#allocation4 + $0x70c] ss:$16 sps:$4 sm:$0xff]  }
 0x268   :  { %3663 = vmatpush1.bf16.msra.mxu1 %v6913_v50  ;;  %v6935_v50 = vld [vmem:[#allocation4 + $0x6a8] ss:$16 sps:$4 sm:$0xff]  }
 0x269   :  { %3664 = vmatprep.subr.bf16.mxu1 %v6920_v23  ;;  %v6954_v23 = vld [vmem:[#allocation4 + $0x72c] ss:$16 sps:$4 sm:$0xff]  }
 0x26b   :  { %3480 = vmatmul.mubr.bf16.gmra.mrb[80].mxu1 %v7598_v12  ;;  %v6940_v12 = vld [vmem:[#allocation4 + $0x6c8] ss:$16 sps:$4 sm:$0xff]  }
 0x26c   :  { %3489 = vmatprep.mubr.bf16.mxu1 %v7600_v29  ;;  %3665 = vmatpush1.bf16.msra.mxu1 %v6918_v6  ;;  %v6947_v29 = vld [vmem:[#allocation4 + $0x6ec] ss:$16 sps:$4 sm:$0xff]   ;;  %v6945_v6 = vld [vmem:[#allocation4 + $0x6e8] ss:$16 sps:$4 sm:$0xff]  }
 0x26d   :  { %3666 = vmatprep.subr.bf16.mxu1 %v6926_v40  ;;  %v6952_v40 = vld [vmem:[#allocation4 + $0x728] ss:$16 sps:$4 sm:$0xff]  }
 0x270   :  { %3667 = vmatpush1.bf16.msra.mxu1 %v6924_v2  ;;  %v6957_v2 = vld [vmem:[#allocation4 + $0x74c] ss:$16 sps:$4 sm:$0xff]  }
 0x271   :  { %3668 = vmatprep.subr.bf16.mxu1 %v6931_v4  ;;  %v6958_v4 = vld [vmem:[#allocation4 + $0x768] ss:$16 sps:$4 sm:$0xff]  }
 0x273   :  { %3490 = vmatmul.mubr.bf16.gmra.mrb[84].mxu1 %v7606_v58  ;;  %v6949_v58 = vld [vmem:[#allocation4 + $0x708] ss:$16 sps:$4 sm:$0xff]  }
 0x274   :  { %3499 = vmatprep.mubr.bf16.mxu1 %v9203_v54  ;;  %3669 = vmatpush1.bf16.msra.mxu1 %v6929_v42  ;;  %v799_v42 = vlaneseq  ;;  %v6966_v54 = vld [vmem:[#allocation4 + $0x7ac] ss:$16 sps:$4 sm:$0xff]  }
 0x275   :  { %3670 = vmatprep.subr.bf16.mxu1 %v6937_v22  ;;  %v6963_v22 = vld [vmem:[#allocation4 + $0x78c] ss:$16 sps:$4 sm:$0xff]  }
 0x278   :  { %3671 = vmatpush1.bf16.msra.mxu1 %v6935_v50  ;;  %v6969_v50 = vld [vmem:[#allocation4 + $0x7cc] ss:$16 sps:$4 sm:$0xff]  }
 0x279   :  { %3672 = vmatprep.subr.bf16.mxu1 %v6942_v34  ;;  %v8078_v34 = vld [vmem:[#allocation6] sm:$0xf] }
 0x27b   :  { %3500 = vmatmul.mubr.bf16.gmra.mrb[88].mxu1 %v7614_v60  ;;  %v6955_v60 = vld [vmem:[#allocation4 + $0x748] ss:$16 sps:$4 sm:$0xff]  }
 0x27c   :  { %3509 = vmatprep.mubr.bf16.mxu1 %v7616_v59  ;;  %3673 = vmatpush1.bf16.msra.mxu1 %v6940_v12  ;;  %v6960_v59 = vld [vmem:[#allocation4 + $0x76c] ss:$16 sps:$4 sm:$0xff]  }
 0x27d   :  { %3674 = vmatprep.subr.bf16.mxu1 %v6947_v29  ;;  %v6967_v29 = vld [vmem:[#allocation4 + $0x7c8] ss:$16 sps:$4 sm:$0xff]  }
 0x280   :  { %3675 = vmatpush1.bf16.msra.mxu1 %v6945_v6 }
 0x281   :  { %3676 = vmatprep.subr.bf16.mxu1 %v6951_v16  ;;  %v6972_v16 = vld [vmem:[#allocation4 + $0x7ec] ss:$16 sps:$4 sm:$0xff]  }
 0x283   :  { %3510 = vmatmul.mubr.bf16.gmra.mrb[92].mxu1 %v7622_v33  ;;  %v6961_v33 = vld [vmem:[#allocation4 + $0x788] ss:$16 sps:$4 sm:$0xff]  }
 0x284   :  { %3519 = vmatprep.mubr.bf16.mxu1 %v7624_v63  ;;  %3677 = vmatpush1.bf16.msra.mxu1 %v6949_v58  ;;  %v8073_v63 = vshrl.u32 %v799_v42, 7 }
 0x285   :  { %3678 = vmatprep.subr.bf16.mxu1 %v6954_v23 }
 0x286   :  { %v805_v12 = vsub.s32 1, %v8073_v63 }
 0x288   :  { %3679 = vmatpush1.bf16.msra.mxu1 %v6952_v40 }
 0x289   :  { %3680 = vmatprep.subr.bf16.mxu1 %v6957_v2 }
 0x28b   :  { %3520 = vmatmul.mubr.bf16.gmra.mrb[96].mxu1 %v7630_v20  ;;  %v6964_v20 = vld [vmem:[#allocation4 + $0x7a8] ss:$16 sps:$4 sm:$0xff]  }
 0x28c   :  { %3529 = vmatprep.mubr.bf16.mxu1 %v7632_v25  ;;  %3681 = vmatpush1.bf16.msra.mxu1 %v6955_v60  ;;  %v801_v25 = vsub.s32 0, %v8073_v63 }
 0x28d   :  { %3682 = vmatprep.subr.bf16.mxu1 %v6960_v59 }
 0x28e   :  { %v8082_v6 = vrot.slane %v8078_v34, %v801_v25 }
 0x290   :  { %3683 = vmatpush1.bf16.msra.mxu1 %v6958_v4  ;;  %v2134_v58 = vadd.f32 %v7654_v18, %v8082_v6  ;;  %v2138_v2 = vadd.f32 %v7660_v49, %v8082_v6  ;;  %v2144_v49 = vadd.f32 %v7670_v1, %v8082_v6 }
 0x291   :  { %3684 = vmatprep.subr.bf16.mxu1 %v6963_v22 }
 0x293   :  { %3530 = vmatmul.mubr.bf16.gmra.mrb[100].mxu1 %v7638_v7  ;;  %v8085_v7 = vrot.slane %v8078_v34, %v805_v12 }
 0x294   :  { %3539 = vmatprep.mubr.bf16.mxu1 %v7640_v55  ;;  %3685 = vmatpush1.bf16.msra.mxu1 %v6961_v33  ;;  %v6970_v55 = vld [vmem:[#allocation4 + $0x7e8] ss:$16 sps:$4 sm:$0xff]  }
 0x295   :  { %3686 = vmatprep.subr.bf16.mxu1 %v6966_v54  ;;  %v2136_v23 = vadd.f32 %v7656_v36, %v8085_v7 }
 0x298   :  { %3687 = vmatpush1.bf16.msra.mxu1 %v6964_v20 }
 0x299   :  { %3688 = vmatprep.subr.bf16.mxu1 %v6969_v50 }
 0x29b   :  { %3540 = vmatmul.mubr.bf16.gmra.mrb[104].mxu1 %v7646_v53  ;;  %v2140_v53 = vadd.f32 %v7664_v37, %v8085_v7  ;;  %v2146_v37 = vadd.f32 %v7672_v21, %v8085_v7 }
 0x29c   :  { %3549 = vmatprep.mubr.bf16.mxu1 %v7648_v17  ;;  %3689 = vmatpush1.bf16.msra.mxu1 %v6967_v29 }
 0x29d   :  { %3690 = vmatprep.subr.bf16.mxu1 %v6972_v16  ;;  %v2148_v16 = vadd.f32 %v7676_v26, %v8082_v6  ;;  %v2154_v26 = vadd.f32 %v7686_v57, %v8082_v6 }
 0x29f   :  { %v2802_v40 = vpop.f32.mrb[0].mxu0 }
 0x2a0   :  { %v5841_v60 = vadd.f32 %v2802_v40, %v2134_v58  ;;  %v2804_v59 = vpop.f32.mrb[1].mxu0  ;;  %3691 = vmatpush1.bf16.msra.mxu1 %v6970_v55 }
 0x2a1   :  { %v5843_v4 = vadd.f32 %v2804_v59, %v2136_v23  ;;  %v2806_v17 = vpop.f32.mrb[2].mxu0 }
 0x2a2   :  { %v5845_v22 = vadd.f32 %v2806_v17, %v2138_v2  ;;  %v2808_v33 = vpop.f32.mrb[3].mxu0  ;;  %v3883_v18 = vmax.f32 %v5841_v60, 0.0 }
 0x2a3   :  { %v5847_v54 = vadd.f32 %v2808_v33, %v2140_v53  ;;  %3550 = vmatmul.mubr.bf16.gmra.mrb[108].mxu1 %v7658_v46  ;;  %v3884_v36 = vmax.f32 %v5843_v4, 0.0  ;;  %v2150_v46 = vadd.f32 %v7680_v3, %v8085_v7  ;;  %v9204_v3 = vld [vmem:[#allocation46_spill] sm:$0xff] }
 0x2a4   :  { %v3887_v20 = vmax.f32 %v5845_v22, 0.0  ;;  %3559 = vmatprep.mubr.bf16.mxu1 %v7662_v52  ;;  %v2156_v17 = vadd.f32 %v9204_v3, %v8085_v7 }
 0x2a5   :  { %v3888_v25 = vmax.f32 %v5847_v54, 0.0  ;;  %v2158_v54 = vadd.f32 %v7692_v27, %v8082_v6  ;;  %v9207_v27 = vld [vmem:[#allocation49_spill] sm:$0xff] }
 0x2a6   :  { %v4035_v50 = vpack.c.bf16 %v3887_v20, %v3883_v18 }
 0x2a7   :  { %v4036_v12 = vpack.c.bf16 %v3888_v25, %v3884_v36  ;;  %v2812_v29 = vpop.f32.mrb[4].mxu0 }
 0x2a8   :  { %v5849_v55 = vadd.f32 %v2812_v29, %v2144_v49  ;;  %v2814_v58 = vpop.f32.mrb[5].mxu0  ;;  %v9206_v29 = vld [vmem:[#allocation47_spill] sm:$0xff] }
 0x2a9   :  { %v5851_v23 = vadd.f32 %v2814_v58, %v2146_v37  ;;  %v2816_v40 = vpop.f32.mrb[6].mxu0  ;;  %4406 = vmatprep.mubr.bf16.mxu0 %v4036_v12  ;;  %v2164_v58 = vadd.f32 %v9207_v27, %v8082_v6 }
 0x2aa   :  { %v5853_v52 = vadd.f32 %v2816_v40, %v2148_v16  ;;  %v2818_v2 = vpop.f32.mrb[7].mxu0  ;;  %4407 = vmatmul.mubr.bf16.vlgmr.msra.gmra.mrb[76].mxu0 %v4035_v50  ;;  %v3891_v60 = vmax.f32 %v5849_v55, 0.0 }
 0x2ab   :  { %v5855_v1 = vadd.f32 %v2818_v2, %v2150_v46  ;;  %3560 = vmatmul.mubr.bf16.gmra.mrb[112].mxu1 %v7674_v28  ;;  %v3892_v21 = vmax.f32 %v5851_v23, 0.0  ;;  %v9205_v28 = vld [vmem:[#allocation48_spill] sm:$0xff]  ;;  %v9208_v23 = vld [vmem:[#allocation50_spill] sm:$0xff] }
 0x2ac   :  { %v3895_v59 = vmax.f32 %v5853_v52, 0.0  ;;  %3569 = vmatprep.mubr.bf16.mxu1 %v7678_v45  ;;  %v2160_v36 = vadd.f32 %v9205_v28, %v8085_v7  ;;  %v2166_v40 = vadd.f32 %v9208_v23, %v8085_v7  ;;  %v9211_v28 = vld [vmem:[#allocation53_spill] sm:$0xff] }
 0x2ad   :  { %v3896_v53 = vmax.f32 %v5855_v1, 0.0  ;;  %v2168_v1 = vadd.f32 %v7708_v15, %v8082_v6  ;;  %v6973_v15 = vld [vmem:[#allocation7 + $0x80] sm:$0xff]  }
 0x2ae   :  { %v4039_v4 = vpack.c.bf16 %v3895_v59, %v3891_v60  ;;  %4560 = vmatpush1.bf16.msra.mxu0 %v6973_v15 }
 0x2af   :  { %v4040_v22 = vpack.c.bf16 %v3896_v53, %v3892_v21  ;;  %v2822_v33 = vpop.f32.mrb[8].mxu0  ;;  %v9209_v21 = vld [vmem:[#allocation52_spill] sm:$0xff]  ;;  %4561 = vmatprep.subr.bf16.mxu0 %v9139_v48 }
 0x2b0   :  { %v5857_v18 = vadd.f32 %v2822_v33, %v2154_v26  ;;  %v2824_v20 = vpop.f32.mrb[9].mxu0  ;;  %v2170_v53 = vadd.f32 %v9209_v21, %v8085_v7 }
 0x2b1   :  { %v5859_v25 = vadd.f32 %v2824_v20, %v2156_v17  ;;  %v2826_v49 = vpop.f32.mrb[10].mxu0  ;;  %4414 = vmatprep.mubr.bf16.mxu0 %v4040_v22 }
 0x2b2   :  { %v5861_v45 = vadd.f32 %v2826_v49, %v2158_v54  ;;  %v2828_v50 = vpop.f32.mrb[11].mxu0  ;;  %4415 = vmatmul.mubr.bf16.gmra.mrb[80].mxu0 %v4039_v4  ;;  %v3899_v37 = vmax.f32 %v5857_v18, 0.0  ;;  %v9210_v54 = vld [vmem:[#allocation51_spill] sm:$0xff]  ;;  %v9212_v49 = vld [vmem:[#allocation54_spill] sm:$0xff] }
 0x2b3   :  { %v5863_v57 = vadd.f32 %v2828_v50, %v2160_v36  ;;  %3570 = vmatmul.mubr.bf16.gmra.mrb[116].mxu1 %v9206_v29  ;;  %v3900_v16 = vmax.f32 %v5859_v25, 0.0  ;;  %v2174_v36 = vadd.f32 %v9211_v28, %v8082_v6 }
 0x2b4   :  { %v3903_v12 = vmax.f32 %v5861_v45, 0.0  ;;  %3579 = vmatprep.mubr.bf16.mxu1 %v7694_v31  ;;  %v2176_v45 = vadd.f32 %v9212_v49, %v8085_v7  ;;  %v9218_v49 = vld [vmem:[#allocation59_spill] sm:$0xff] }
 0x2b5   :  { %v3904_v55 = vmax.f32 %v5863_v57, 0.0 }
 0x2b6   :  { %v4043_v46 = vpack.c.bf16 %v3903_v12, %v3899_v37  ;;  %v2178_v37 = vadd.f32 %v7724_v44, %v8082_v6 }
 0x2b7   :  { %v4044_v52 = vpack.c.bf16 %v3904_v55, %v3900_v16  ;;  %v2832_v2 = vpop.f32.mrb[12].mxu0 }
 0x2b8   :  { %v5865_v60 = vadd.f32 %v2832_v2, %v2164_v58  ;;  %v2834_v59 = vpop.f32.mrb[13].mxu0  ;;  %v9214_v2 = vld [vmem:[#allocation55_spill] sm:$0xff] }
 0x2b9   :  { %v5867_v26 = vadd.f32 %v2834_v59, %v2166_v40  ;;  %v2836_v4 = vpop.f32.mrb[14].mxu0  ;;  %4422 = vmatprep.mubr.bf16.mxu0 %v4044_v52 }
 0x2ba   :  { %v5869_v31 = vadd.f32 %v2836_v4, %v2168_v1  ;;  %v2838_v3 = vpop.f32.mrb[15].mxu0  ;;  %4423 = vmatmul.mubr.bf16.gmra.mrb[84].mxu0 %v4043_v46  ;;  %v3907_v22 = vmax.f32 %v5865_v60, 0.0  ;;  %v9215_v60 = vld [vmem:[#allocation57_spill] sm:$0xff] }
 0x2bb   :  { %v5871_v17 = vadd.f32 %v2838_v3, %v2170_v53  ;;  %3580 = vmatmul.mubr.bf16.gmra.mrb[120].mxu1 %v9210_v54  ;;  %v3908_v18 = vmax.f32 %v5867_v26, 0.0  ;;  %v2184_v59 = vadd.f32 %v9215_v60, %v8082_v6  ;;  %v9216_v53 = vld [vmem:[#allocation58_spill] sm:$0xff]  ;;  %v2188_v3 = vadd.f32 %v7740_v24, %v8082_v6  ;;  %v9219_v24 = vld [vmem:[#allocation61_spill] sm:$0xff] }
 0x2bc   :  { %v3911_v33 = vmax.f32 %v5869_v31, 0.0  ;;  %3589 = vmatprep.mubr.bf16.mxu1 %v7710_v10  ;;  %v9213_v10 = vld [vmem:[#allocation56_spill] sm:$0xff]  ;;  %v2186_v26 = vadd.f32 %v9216_v53, %v8085_v7  ;;  %v6975_v53 = vld [vmem:[#allocation7 + $0x90] sm:$0xff]  }
 0x2bd   :  { %v3912_v20 = vmax.f32 %v5871_v17, 0.0  ;;  %v2180_v16 = vadd.f32 %v9213_v10, %v8085_v7 }
 0x2be   :  { %v4047_v25 = vpack.c.bf16 %v3911_v33, %v3907_v22  ;;  %v9217_v33 = vld [vmem:[#allocation60_spill] sm:$0xff] }
 0x2bf   :  { %v4048_v50 = vpack.c.bf16 %v3912_v20, %v3908_v18  ;;  %v2842_v57 = vpop.f32.mrb[16].mxu0  ;;  %v2190_v54 = vadd.f32 %v9217_v33, %v8085_v7 }
 0x2c0   :  { %v5873_v12 = vadd.f32 %v2842_v57, %v2174_v36  ;;  %v2844_v29 = vpop.f32.mrb[17].mxu0 }
 0x2c1   :  { %v5875_v55 = vadd.f32 %v2844_v29, %v2176_v45  ;;  %v2846_v27 = vpop.f32.mrb[18].mxu0  ;;  %4430 = vmatprep.mubr.bf16.mxu0 %v4048_v50  ;;  %v6974_v45 = vld [vmem:[#allocation7 + $0x88] sm:$0xff]  }
 0x2c2   :  { %v5877_v58 = vadd.f32 %v2846_v27, %v2178_v37  ;;  %v2848_v46 = vpop.f32.mrb[19].mxu0  ;;  %4431 = vmatmul.mubr.bf16.gmra.mrb[88].mxu0 %v4047_v25  ;;  %v3915_v40 = vmax.f32 %v5873_v12, 0.0  ;;  %v2194_v37 = vadd.f32 %v9219_v24, %v8082_v6  ;;  %v9220_v29 = vld [vmem:[#allocation62_spill] sm:$0xff]  ;;  %v2198_v27 = vadd.f32 %v7756_v0, %v8082_v6  ;;  %v9223_v0 = vld [vmem:[#allocation65_spill] sm:$0xff]  ;;  %v9226_v24 = vld [vmem:[#allocation67_spill] sm:$0xff] }
 0x2c3   :  { %v5879_v23 = vadd.f32 %v2848_v46, %v2180_v16  ;;  %3590 = vmatmul.mubr.bf16.gmra.mrb[124].mxu1 %v9214_v2  ;;  %v3916_v1 = vmax.f32 %v5875_v55, 0.0  ;;  %4562 = vmatpush1.bf16.msra.mxu0 %v6974_v45  ;;  %v2196_v10 = vadd.f32 %v9220_v29, %v8085_v7 }
 0x2c4   :  { %v3919_v52 = vmax.f32 %v5877_v58, 0.0  ;;  %3599 = vmatprep.mubr.bf16.mxu1 %v7726_v56  ;;  %4563 = vmatprep.subr.bf16.mxu0 %v9139_v48 }
 0x2c5   :  { %v3920_v44 = vmax.f32 %v5879_v23, 0.0  ;;  %v9221_v23 = vld [vmem:[#allocation64_spill] sm:$0xff] }
 0x2c6   :  { %v4051_v21 = vpack.c.bf16 %v3919_v52, %v3915_v40 }
 0x2c7   :  { %v4052_v4 = vpack.c.bf16 %v3920_v44, %v3916_v1  ;;  %v2852_v31 = vpop.f32.mrb[20].mxu0  ;;  %4564 = vmatpush1.bf16.msra.mxu0 %v6975_v53 }
 0x2c8   :  { %v5881_v17 = vadd.f32 %v2852_v31, %v2184_v59  ;;  %v2854_v22 = vpop.f32.mrb[21].mxu0  ;;  %v2204_v31 = vadd.f32 %v9223_v0, %v8082_v6  ;;  %4565 = vmatprep.subr.bf16.mxu0 %v9139_v48 }
 0x2c9   :  { %v5883_v18 = vadd.f32 %v2854_v22, %v2186_v26  ;;  %v2856_v20 = vpop.f32.mrb[22].mxu0  ;;  %4438 = vmatprep.mubr.bf16.mxu0 %v4052_v4 }
 0x2ca   :  { %v5885_v56 = vadd.f32 %v2856_v20, %v2188_v3  ;;  %v2858_v15 = vpop.f32.mrb[23].mxu0  ;;  %4439 = vmatmul.mubr.bf16.gmra.mrb[92].mxu0 %v4051_v21  ;;  %v3923_v36 = vmax.f32 %v5881_v17, 0.0  ;;  %v9222_v21 = vld [vmem:[#allocation63_spill] sm:$0xff]  ;;  %v9224_v17 = vld [vmem:[#allocation66_spill] sm:$0xff] }
 0x2cb   :  { %v5887_v28 = vadd.f32 %v2858_v15, %v2190_v54  ;;  %3600 = vmatmul.mubr.bf16.gmra.mrb[128].mxu1 %v9218_v49  ;;  %v3924_v50 = vmax.f32 %v5883_v18, 0.0  ;;  %v2206_v22 = vadd.f32 %v9224_v17, %v8085_v7  ;;  %v2208_v18 = vadd.f32 %v7772_v41, %v8082_v6  ;;  %v9225_v15 = vld [vmem:[#allocation68_spill] sm:$0xff]  ;;  %v9227_v41 = vld [vmem:[#allocation69_spill] sm:$0xff] }
 0x2cc   :  { %v3927_v25 = vmax.f32 %v5885_v56, 0.0  ;;  %3609 = vmatprep.mubr.bf16.mxu1 %v7742_v61  ;;  %v2200_v61 = vadd.f32 %v9221_v23, %v8085_v7  ;;  %v2218_v23 = vadd.f32 %v7788_v35, %v8082_v6  ;;  %v9231_v35 = vld [vmem:[#allocation73_spill] sm:$0xff] }
 0x2cd   :  { %v3928_v57 = vmax.f32 %v5887_v28, 0.0 }
 0x2ce   :  { %v4055_v12 = vpack.c.bf16 %v3927_v25, %v3923_v36 }
 0x2cf   :  { %v4056_v16 = vpack.c.bf16 %v3928_v57, %v3924_v50  ;;  %v2862_v55 = vpop.f32.mrb[24].mxu0 }
 0x2d0   :  { %v5889_v58 = vadd.f32 %v2862_v55, %v2194_v37  ;;  %v2864_v46 = vpop.f32.mrb[25].mxu0  ;;  %v6976_v37 = vld [vmem:[#allocation7 + $0x98] sm:$0xff]   ;;  %v9228_v55 = vld [vmem:[#allocation70_spill] sm:$0xff] }
 0x2d1   :  { %v5891_v40 = vadd.f32 %v2864_v46, %v2196_v10  ;;  %v2866_v52 = vpop.f32.mrb[26].mxu0  ;;  %4446 = vmatprep.mubr.bf16.mxu0 %v4056_v16  ;;  %v2214_v10 = vadd.f32 %v9227_v41, %v8082_v6  ;;  %4566 = vmatpush1.bf16.msra.mxu0 %v6976_v37 }
 0x2d2   :  { %v5893_v2 = vadd.f32 %v2866_v52, %v2198_v27  ;;  %v2868_v1 = vpop.f32.mrb[27].mxu0  ;;  %4447 = vmatmul.mubr.bf16.gmra.mrb[96].mxu0 %v4055_v12  ;;  %v3931_v60 = vmax.f32 %v5889_v58, 0.0  ;;  %v2216_v27 = vadd.f32 %v9228_v55, %v8085_v7  ;;  %4567 = vmatprep.subr.bf16.mxu0 %v9139_v48  ;;  %v9229_v52 = vld [vmem:[#allocation72_spill] sm:$0xff] }
 0x2d3   :  { %v5895_v44 = vadd.f32 %v2868_v1, %v2200_v61  ;;  %3610 = vmatmul.mubr.bf16.gmra.mrb[132].mxu1 %v9222_v21  ;;  %v3932_v26 = vmax.f32 %v5891_v40, 0.0 }
 0x2d4   :  { %v3935_v59 = vmax.f32 %v5893_v2, 0.0  ;;  %3619 = vmatprep.mubr.bf16.mxu1 %v7758_v47  ;;  %v2210_v47 = vadd.f32 %v9225_v15, %v8085_v7 }
 0x2d5   :  { %v3936_v4 = vmax.f32 %v5895_v44, 0.0 }
 0x2d6   :  { %v4059_v3 = vpack.c.bf16 %v3935_v59, %v3931_v60 }
 0x2d7   :  { %v4060_v33 = vpack.c.bf16 %v3936_v4, %v3932_v26  ;;  %v2872_v54 = vpop.f32.mrb[28].mxu0  ;;  %v9230_v26 = vld [vmem:[#allocation71_spill] sm:$0xff]  ;;  %v6977_v4 = vld [vmem:[#allocation7 + $0xa0] sm:$0xff]  }
 0x2d8   :  { %v5897_v20 = vadd.f32 %v2872_v54, %v2204_v31  ;;  %v2874_v56 = vpop.f32.mrb[29].mxu0  ;;  %4568 = vmatpush1.bf16.msra.mxu0 %v6977_v4  ;;  %v9240_v4 = vld [vmem:[#allocation82_spill] sm:$0xff] }
 0x2d9   :  { %v5899_v28 = vadd.f32 %v2874_v56, %v2206_v22  ;;  %v2876_v36 = vpop.f32.mrb[30].mxu0  ;;  %4454 = vmatprep.mubr.bf16.mxu0 %v4060_v33  ;;  %v9232_v22 = vld [vmem:[#allocation74_spill] sm:$0xff]  ;;  %4569 = vmatprep.subr.bf16.mxu0 %v9139_v48 }
 0x2da   :  { %v5901_v25 = vadd.f32 %v2876_v36, %v2208_v18  ;;  %v2878_v49 = vpop.f32.mrb[31].mxu0  ;;  %4455 = vmatmul.mubr.bf16.gmra.mrb[100].mxu0 %v4059_v3  ;;  %v3939_v50 = vmax.f32 %v5897_v20, 0.0  ;;  %v2224_v3 = vadd.f32 %v9231_v35, %v8082_v6  ;;  %v2226_v33 = vadd.f32 %v9232_v22, %v8085_v7  ;;  %v9241_v35 = vld [vmem:[#allocation83_spill] sm:$0xff] }
 0x2db   :  { %v5903_v45 = vadd.f32 %v2878_v49, %v2210_v47  ;;  %3620 = vmatmul.mubr.bf16.gmra.mrb[136].mxu1 %v9226_v24  ;;  %v3940_v12 = vmax.f32 %v5899_v28, 0.0  ;;  %v2228_v20 = vadd.f32 %v7804_v8, %v8082_v6  ;;  %v9233_v47 = vld [vmem:[#allocation76_spill] sm:$0xff]  ;;  %v9234_v24 = vld [vmem:[#allocation75_spill] sm:$0xff]  ;;  %v6978_v8 = vld [vmem:[#allocation7 + $0xa8] sm:$0xff]  }
 0x2dc   :  { %v3943_v57 = vmax.f32 %v5901_v25, 0.0  ;;  %3629 = vmatprep.mubr.bf16.mxu1 %v7774_v14  ;;  %v2220_v14 = vadd.f32 %v9229_v52, %v8085_v7  ;;  %4570 = vmatpush1.bf16.msra.mxu0 %v6978_v8  ;;  %v2254_v8 = vadd.f32 %v7846_v9, %v8082_v6 }
 0x2dd   :  { %v3944_v29 = vmax.f32 %v5903_v45, 0.0  ;;  %4571 = vmatprep.subr.bf16.mxu0 %v9139_v48 }
 0x2de   :  { %v4063_v16 = vpack.c.bf16 %v3943_v57, %v3939_v50 }
 0x2df   :  { %v4064_v58 = vpack.c.bf16 %v3944_v29, %v3940_v12  ;;  %v2882_v46 = vpop.f32.mrb[32].mxu0  ;;  %v9235_v29 = vld [vmem:[#allocation77_spill] sm:$0xff] }
 0x2e0   :  { %v5905_v61 = vadd.f32 %v2882_v46, %v2214_v10  ;;  %v2884_v40 = vpop.f32.mrb[33].mxu0  ;;  %v2234_v41 = vadd.f32 %v9235_v29, %v8082_v6  ;;  %v2238_v46 = vadd.f32 %v7820_v38, %v8082_v6 }
 0x2e1   :  { %v5907_v2 = vadd.f32 %v2884_v40, %v2216_v27  ;;  %v2886_v1 = vpop.f32.mrb[34].mxu0  ;;  %4462 = vmatprep.mubr.bf16.mxu0 %v4064_v58 }
 0x2e2   :  { %v5909_v44 = vadd.f32 %v2886_v1, %v2218_v23  ;;  %v2888_v60 = vpop.f32.mrb[35].mxu0  ;;  %4463 = vmatmul.mubr.bf16.gmra.mrb[104].mxu0 %v4063_v16  ;;  %v3947_v21 = vmax.f32 %v5905_v61, 0.0  ;;  %v9236_v16 = vld [vmem:[#allocation78_spill] sm:$0xff] }
 0x2e3   :  { %v5911_v59 = vadd.f32 %v2888_v60, %v2220_v14  ;;  %3630 = vmatmul.mubr.bf16.gmra.mrb[140].mxu1 %v9230_v26  ;;  %v3948_v0 = vmax.f32 %v5907_v2, 0.0  ;;  %v2236_v55 = vadd.f32 %v9236_v16, %v8085_v7  ;;  %v9239_v26 = vld [vmem:[#allocation80_spill] sm:$0xff] }
 0x2e4   :  { %v3951_v53 = vmax.f32 %v5909_v44, 0.0  ;;  %3639 = vmatprep.mubr.bf16.mxu1 %v7790_v62  ;;  %v2230_v62 = vadd.f32 %v9233_v47, %v8085_v7 }
 0x2e5   :  { %v3952_v31 = vmax.f32 %v5911_v59, 0.0 }
 0x2e6   :  { %v4067_v17 = vpack.c.bf16 %v3951_v53, %v3947_v21  ;;  %v9238_v21 = vld [vmem:[#allocation79_spill] sm:$0xff] }
 0x2e7   :  { %v4068_v54 = vpack.c.bf16 %v3952_v31, %v3948_v0  ;;  %v2892_v18 = vpop.f32.mrb[36].mxu0  ;;  %v2244_v0 = vadd.f32 %v9240_v4, %v8082_v6 }
 0x2e8   :  { %v5913_v56 = vadd.f32 %v2892_v18, %v2224_v3  ;;  %v2894_v15 = vpop.f32.mrb[37].mxu0  ;;  %v2246_v3 = vadd.f32 %v9241_v35, %v8085_v7  ;;  %v9251_v35 = vld [vmem:[#allocation94_spill] sm:$0xff] }
 0x2e9   :  { %v5915_v28 = vadd.f32 %v2894_v15, %v2226_v33  ;;  %v2896_v36 = vpop.f32.mrb[38].mxu0  ;;  %4470 = vmatprep.mubr.bf16.mxu0 %v4068_v54  ;;  %v9242_v33 = vld [vmem:[#allocation85_spill] sm:$0xff] }
 0x2ea   :  { %v5917_v25 = vadd.f32 %v2896_v36, %v2228_v20  ;;  %v2898_v49 = vpop.f32.mrb[39].mxu0  ;;  %4471 = vmatmul.mubr.bf16.gmra.mrb[108].mxu0 %v4067_v17  ;;  %v3955_v50 = vmax.f32 %v5913_v56, 0.0  ;;  %v2248_v54 = vadd.f32 %v9242_v33, %v8082_v6  ;;  %v9243_v56 = vld [vmem:[#allocation87_spill] sm:$0xff]  ;;  %v9252_v33 = vld [vmem:[#allocation96_spill] sm:$0xff] }
 0x2eb   :  { %v5919_v45 = vadd.f32 %v2898_v49, %v2230_v62  ;;  %3640 = vmatmul.mubr.bf16.gmra.mrb[144].mxu1 %v9234_v24  ;;  %v3956_v37 = vmax.f32 %v5915_v28, 0.0  ;;  %v2250_v15 = vadd.f32 %v9243_v56, %v8085_v7 }
 0x2ec   :  { %v3959_v57 = vmax.f32 %v5917_v25, 0.0  ;;  %3649 = vmatprep.mubr.bf16.mxu1 %v7806_v39  ;;  %v9237_v39 = vld [vmem:[#allocation81_spill] sm:$0xff] }
 0x2ed   :  { %v3960_v12 = vmax.f32 %v5919_v45, 0.0  ;;  %v2240_v40 = vadd.f32 %v9237_v39, %v8085_v7 }
 0x2ee   :  { %v4071_v10 = vpack.c.bf16 %v3959_v57, %v3955_v50  ;;  %v9244_v50 = vld [vmem:[#allocation84_spill] sm:$0xff]  ;;  %v6979_v57 = vld [vmem:[#allocation7 + $0xb0] sm:$0xff]  }
 0x2ef   :  { %v4072_v27 = vpack.c.bf16 %v3960_v12, %v3956_v37  ;;  %v2902_v58 = vpop.f32.mrb[40].mxu0  ;;  %v9245_v12 = vld [vmem:[#allocation86_spill] sm:$0xff]  ;;  %4572 = vmatpush1.bf16.msra.mxu0 %v6979_v57 }
 0x2f0   :  { %v5921_v23 = vadd.f32 %v2902_v58, %v2234_v41  ;;  %v2904_v61 = vpop.f32.mrb[41].mxu0  ;;  %v2256_v41 = vadd.f32 %v7848_v11, %v8085_v7  ;;  %4573 = vmatprep.subr.bf16.mxu0 %v9139_v48 }
 0x2f1   :  { %v5923_v52 = vadd.f32 %v2904_v61, %v2236_v55  ;;  %v2906_v14 = vpop.f32.mrb[42].mxu0  ;;  %4478 = vmatprep.mubr.bf16.mxu0 %v4072_v27  ;;  %v9246_v55 = vld [vmem:[#allocation89_spill] sm:$0xff] }
 0x2f2   :  { %v5925_v2 = vadd.f32 %v2906_v14, %v2238_v46  ;;  %v2908_v1 = vpop.f32.mrb[43].mxu0  ;;  %4479 = vmatmul.mubr.bf16.gmra.mrb[112].mxu0 %v4071_v10  ;;  %v3963_v60 = vmax.f32 %v5921_v23, 0.0  ;;  %v2258_v27 = vadd.f32 %v9246_v55, %v8082_v6  ;;  %v9247_v23 = vld [vmem:[#allocation91_spill] sm:$0xff] }
 0x2f3   :  { %v5927_v44 = vadd.f32 %v2908_v1, %v2240_v40  ;;  %3650 = vmatmul.mubr.bf16.gmra.mrb[148].mxu1 %v9238_v21  ;;  %v3964_v53 = vmax.f32 %v5923_v52, 0.0  ;;  %v2260_v61 = vadd.f32 %v9247_v23, %v8085_v7  ;;  %v9248_v1 = vld [vmem:[#allocation88_spill] sm:$0xff]  ;;  %v9249_v21 = vld [vmem:[#allocation90_spill] sm:$0xff] }
 0x2f4   :  { %v3967_v59 = vmax.f32 %v5925_v2, 0.0  ;;  %3692 = vmatprep.mubr.bf16.mxu1 %v9239_v26  ;;  %v9250_v26 = vld [vmem:[#allocation92_spill] sm:$0xff] }
 0x2f5   :  { %v3968_v38 = vmax.f32 %v5927_v44, 0.0  ;;  %v6980_v44 = vld [vmem:[#allocation7 + $0xb8] sm:$0xff]   ;;  %v2266_v4 = vadd.f32 %v9250_v26, %v8085_v7 }
 0x2f6   :  { %v4075_v31 = vpack.c.bf16 %v3967_v59, %v3963_v60  ;;  %4574 = vmatpush1.bf16.msra.mxu0 %v6980_v44  ;;  %v9260_v44 = vld [vmem:[#allocation102_spill] sm:$0xff] }
 0x2f7   :  { %v4076_v17 = vpack.c.bf16 %v3968_v38, %v3964_v53  ;;  %v2912_v22 = vpop.f32.mrb[44].mxu0  ;;  %v2264_v53 = vadd.f32 %v7862_v30, %v8082_v6  ;;  %4575 = vmatprep.subr.bf16.mxu0 %v9139_v48 }
 0x2f8   :  { %v5929_v18 = vadd.f32 %v2912_v22, %v2244_v0  ;;  %v2914_v20 = vpop.f32.mrb[45].mxu0 }
 0x2f9   :  { %v5931_v47 = vadd.f32 %v2914_v20, %v2246_v3  ;;  %v2916_v62 = vpop.f32.mrb[46].mxu0  ;;  %4486 = vmatprep.mubr.bf16.mxu0 %v4076_v17  ;;  %v2268_v3 = vadd.f32 %v9251_v35, %v8082_v6 }
 0x2fa   :  { %v5933_v28 = vadd.f32 %v2916_v62, %v2248_v54  ;;  %v2918_v36 = vpop.f32.mrb[47].mxu0  ;;  %4487 = vmatmul.mubr.bf16.gmra.mrb[116].mxu0 %v4075_v31  ;;  %v3971_v49 = vmax.f32 %v5929_v18, 0.0  ;;  %v2270_v54 = vadd.f32 %v9252_v33, %v8085_v7 }
 0x2fb   :  { %v5935_v25 = vadd.f32 %v2918_v36, %v2250_v15  ;;  %3693 = vmatmul.mubr.bf16.vlgmr.msra.gmra.mrb[76].mxu1 %v9244_v50  ;;  %v3972_v24 = vmax.f32 %v5931_v47, 0.0  ;;  %v6981_v36 = vld [vmem:[#allocation7 + $0xc0] sm:$0xff]   ;;  %v2274_v50 = vadd.f32 %v7878_v43, %v8082_v6 }
 0x2fc   :  { %v3975_v45 = vmax.f32 %v5933_v28, 0.0  ;;  %3702 = vmatprep.mubr.bf16.mxu1 %v9245_v12  ;;  %v9253_v28 = vld [vmem:[#allocation93_spill] sm:$0xff]  ;;  %4576 = vmatpush1.bf16.msra.mxu0 %v6981_v36 }
 0x2fd   :  { %v3976_v37 = vmax.f32 %v5935_v25, 0.0  ;;  %4577 = vmatprep.subr.bf16.mxu0 %v9139_v48 }
 0x2fe   :  { %v4079_v29 = vpack.c.bf16 %v3975_v45, %v3971_v49  ;;  %v9254_v45 = vld [vmem:[#allocation95_spill] sm:$0xff] }
 0x2ff   :  { %v4080_v10 = vpack.c.bf16 %v3976_v37, %v3972_v24  ;;  %v2922_v16 = vpop.f32.mrb[48].mxu0  ;;  %v9255_v24 = vld [vmem:[#allocation97_spill] sm:$0xff] }
 0x300   :  { %v5937_v58 = vadd.f32 %v2922_v16, %v2254_v8  ;;  %v2924_v46 = vpop.f32.mrb[49].mxu0  ;;  %v2276_v37 = vadd.f32 %v9255_v24, %v8085_v7 }
 0x301   :  { %v5939_v39 = vadd.f32 %v2924_v46, %v2256_v41  ;;  %v2926_v40 = vpop.f32.mrb[50].mxu0  ;;  %4494 = vmatprep.mubr.bf16.mxu0 %v4080_v10  ;;  %v9256_v41 = vld [vmem:[#allocation99_spill] sm:$0xff] }
 0x302   :  { %v5941_v9 = vadd.f32 %v2926_v40, %v2258_v27  ;;  %v2928_v52 = vpop.f32.mrb[51].mxu0  ;;  %4495 = vmatmul.mubr.bf16.gmra.mrb[120].mxu0 %v4079_v29  ;;  %v3979_v11 = vmax.f32 %v5937_v58, 0.0  ;;  %v6982_v29 = vld [vmem:[#allocation7 + $0xc8] sm:$0xff]   ;;  %v2278_v10 = vadd.f32 %v9256_v41, %v8082_v6  ;;  %v6983_v40 = vld [vmem:[#allocation7 + $0xd0] sm:$0xff]  }
 0x303   :  { %v5943_v14 = vadd.f32 %v2928_v52, %v2260_v61  ;;  %3703 = vmatmul.mubr.bf16.gmra.mrb[80].mxu1 %v9248_v1  ;;  %v3980_v60 = vmax.f32 %v5939_v39, 0.0  ;;  %v9257_v27 = vld [vmem:[#allocation101_spill] sm:$0xff]  ;;  %4578 = vmatpush1.bf16.msra.mxu0 %v6982_v29  ;;  %v9259_v1 = vld [vmem:[#allocation100_spill] sm:$0xff] }
 0x304   :  { %v3983_v2 = vmax.f32 %v5941_v9, 0.0  ;;  %3712 = vmatprep.mubr.bf16.mxu1 %v9249_v21  ;;  %v2280_v58 = vadd.f32 %v9257_v27, %v8085_v7  ;;  %4579 = vmatprep.subr.bf16.mxu0 %v9139_v48  ;;  %v9261_v21 = vld [vmem:[#allocation103_spill] sm:$0xff]  ;;  %v9268_v29 = vld [vmem:[#allocation109_spill] sm:$0xff] }
 0x305   :  { %v3984_v59 = vmax.f32 %v5943_v14, 0.0  ;;  %v9258_v14 = vld [vmem:[#allocation98_spill] sm:$0xff]  ;;  %v2298_v41 = vadd.f32 %v9268_v29, %v8082_v6 }
 0x306   :  { %v4083_v38 = vpack.c.bf16 %v3983_v2, %v3979_v11 }
 0x307   :  { %v4084_v0 = vpack.c.bf16 %v3984_v59, %v3980_v60  ;;  %v2932_v31 = vpop.f32.mrb[52].mxu0  ;;  %v2284_v60 = vadd.f32 %v9260_v44, %v8082_v6  ;;  %4580 = vmatpush1.bf16.msra.mxu0 %v6983_v40 }
 0x308   :  { %v5945_v17 = vadd.f32 %v2932_v31, %v2264_v53  ;;  %v2934_v22 = vpop.f32.mrb[53].mxu0  ;;  %v2286_v53 = vadd.f32 %v9261_v21, %v8085_v7  ;;  %4581 = vmatprep.subr.bf16.mxu0 %v9139_v48 }
 0x309   :  { %v5947_v18 = vadd.f32 %v2934_v22, %v2266_v4  ;;  %v2936_v20 = vpop.f32.mrb[54].mxu0  ;;  %4502 = vmatprep.mubr.bf16.mxu0 %v4084_v0  ;;  %v6984_v4 = vld [vmem:[#allocation7 + $0xd8] sm:$0xff]   ;;  %v9262_v0 = vld [vmem:[#allocation105_spill] sm:$0xff] }
 0x30a   :  { %v5949_v30 = vadd.f32 %v2936_v20, %v2268_v3  ;;  %v2938_v56 = vpop.f32.mrb[55].mxu0  ;;  %4503 = vmatmul.mubr.bf16.gmra.mrb[124].mxu0 %v4083_v38  ;;  %v3987_v47 = vmax.f32 %v5945_v17, 0.0  ;;  %v2288_v31 = vadd.f32 %v9262_v0, %v8082_v6  ;;  %v9263_v17 = vld [vmem:[#allocation107_spill] sm:$0xff] }
 0x30b   :  { %v5951_v15 = vadd.f32 %v2938_v56, %v2270_v54  ;;  %3713 = vmatmul.mubr.bf16.gmra.mrb[84].mxu1 %v9253_v28  ;;  %v3988_v25 = vmax.f32 %v5947_v18, 0.0  ;;  %v2290_v22 = vadd.f32 %v9263_v17, %v8085_v7  ;;  %4582 = vmatpush1.bf16.msra.mxu0 %v6984_v4  ;;  %v6985_v56 = vld [vmem:[#allocation7 + $0xe0] sm:$0xff]  }
 0x30c   :  { %v3991_v62 = vmax.f32 %v5949_v30, 0.0  ;;  %3722 = vmatprep.mubr.bf16.mxu1 %v9254_v45  ;;  %4583 = vmatprep.subr.bf16.mxu0 %v9139_v48 }
 0x30d   :  { %v3992_v49 = vmax.f32 %v5951_v15, 0.0 }
 0x30e   :  { %v4087_v57 = vpack.c.bf16 %v3991_v62, %v3987_v47  ;;  %v9264_v62 = vld [vmem:[#allocation104_spill] sm:$0xff] }
 0x30f   :  { %v4088_v12 = vpack.c.bf16 %v3992_v49, %v3988_v25  ;;  %v2942_v8 = vpop.f32.mrb[56].mxu0  ;;  %v9265_v25 = vld [vmem:[#allocation106_spill] sm:$0xff]  ;;  %v9266_v49 = vld [vmem:[#allocation13_spill] sm:$0xff]  ;;  %4584 = vmatpush1.bf16.msra.mxu0 %v6985_v56  ;;  %v9276_v56 = vld [vmem:[#allocation112_spill] sm:$0xff] }
 0x310   :  { %v5953_v16 = vadd.f32 %v2942_v8, %v2274_v50  ;;  %v2944_v55 = vpop.f32.mrb[57].mxu0  ;;  %v2294_v45 = vadd.f32 %v9266_v49, %v8082_v6  ;;  %v6986_v8 = vld [vmem:[#allocation7 + $0xe8] sm:$0xff]   ;;  %4585 = vmatprep.subr.bf16.mxu0 %v9139_v48 }
 0x311   :  { %v5955_v46 = vadd.f32 %v2944_v55, %v2276_v37  ;;  %v2946_v43 = vpop.f32.mrb[58].mxu0  ;;  %4510 = vmatprep.mubr.bf16.mxu0 %v4088_v12  ;;  %v9269_v55 = vld [vmem:[#allocation111_spill] sm:$0xff] }
 0x312   :  { %v5957_v23 = vadd.f32 %v2946_v43, %v2278_v10  ;;  %v2948_v61 = vpop.f32.mrb[59].mxu0  ;;  %4511 = vmatmul.mubr.bf16.gmra.mrb[128].mxu0 %v4087_v57  ;;  %v3995_v9 = vmax.f32 %v5953_v16, 0.0  ;;  %v9267_v57 = vld [vmem:[#allocation14_spill] sm:$0xff]  ;;  %v2300_v27 = vadd.f32 %v9269_v55, %v8085_v7 }
 0x313   :  { %v5959_v39 = vadd.f32 %v2948_v61, %v2280_v58  ;;  %3723 = vmatmul.mubr.bf16.gmra.mrb[88].mxu1 %v9258_v14  ;;  %v3996_v11 = vmax.f32 %v5955_v46, 0.0  ;;  %v2296_v24 = vadd.f32 %v9267_v57, %v8085_v7  ;;  %4586 = vmatpush1.bf16.msra.mxu0 %v6986_v8 }
 0x314   :  { %v3999_v52 = vmax.f32 %v5957_v23, 0.0  ;;  %3732 = vmatprep.mubr.bf16.mxu1 %v9259_v1  ;;  %4587 = vmatprep.subr.bf16.mxu0 %v9139_v48  ;;  %v9272_v1 = vld [vmem:[#allocation15_spill] sm:$0xff] }
 0x315   :  { %v4000_v2 = vmax.f32 %v5959_v39, 0.0  ;;  %v6987_v39 = vld [vmem:[#allocation7 + $0xf0] sm:$0xff]   ;;  %v2304_v44 = vadd.f32 %v9272_v1, %v8082_v6  ;;  %v9291_v1 = vld [vmem:[#allocation28_spill] sm:$0xff] }
 0x316   :  { %v4091_v59 = vpack.c.bf16 %v3999_v52, %v3995_v9  ;;  %v9270_v52 = vld [vmem:[#allocation108_spill] sm:$0xff] }
 0x317   :  { %v4092_v38 = vpack.c.bf16 %v4000_v2, %v3996_v11  ;;  %v2952_v26 = vpop.f32.mrb[60].mxu0  ;;  %v9271_v2 = vld [vmem:[#allocation110_spill] sm:$0xff]  ;;  %4588 = vmatpush1.bf16.msra.mxu0 %v6987_v39 }
 0x318   :  { %v5961_v35 = vadd.f32 %v2952_v26, %v2284_v60  ;;  %v2954_v3 = vpop.f32.mrb[61].mxu0  ;;  %v9274_v26 = vld [vmem:[#allocation113_spill] sm:$0xff]  ;;  %4589 = vmatprep.subr.bf16.mxu0 %v9139_v48  ;;  %v2314_v48 = vadd.f32 %v7948_v51, %v8082_v6  ;;  %v9285_v39 = vld [vmem:[#allocation22_spill] sm:$0xff] }
 0x319   :  { %v5963_v33 = vadd.f32 %v2954_v3, %v2286_v53  ;;  %v2956_v54 = vpop.f32.mrb[62].mxu0  ;;  %4518 = vmatprep.mubr.bf16.mxu0 %v4092_v38  ;;  %v2308_v4 = vadd.f32 %v9274_v26, %v8082_v6  ;;  %v9298_v26 = vld [vmem:[#allocation35_spill] sm:$0xff] }
 0x31a   :  { %v5965_v18 = vadd.f32 %v2956_v54, %v2288_v31  ;;  %v2958_v20 = vpop.f32.mrb[63].mxu0  ;;  %4519 = vmatmul.mubr.bf16.gmra.mrb[132].mxu0 %v4091_v59  ;;  %v4003_v15 = vmax.f32 %v5961_v35, 0.0  ;;  %v9273_v59 = vld [vmem:[#allocation16_spill] sm:$0xff]  ;;  %v9275_v35 = vld [vmem:[#allocation115_spill] sm:$0xff] }
 0x31b   :  { %v5967_v30 = vadd.f32 %v2958_v20, %v2290_v22  ;;  %3733 = vmatmul.mubr.bf16.gmra.mrb[92].mxu1 %v9264_v62  ;;  %v4004_v28 = vmax.f32 %v5963_v33, 0.0  ;;  %v2306_v21 = vadd.f32 %v9273_v59, %v8085_v7  ;;  %v2310_v3 = vadd.f32 %v9275_v35, %v8085_v7  ;;  %v9277_v62 = vld [vmem:[#allocation114_spill] sm:$0xff]  ;;  %v9294_v59 = vld [vmem:[#allocation31_spill] sm:$0xff] }
 0x31c   :  { %v4007_v47 = vmax.f32 %v5965_v18, 0.0  ;;  %3742 = vmatprep.mubr.bf16.mxu1 %v9265_v25 }
 0x31d   :  { %v4008_v36 = vmax.f32 %v5967_v30, 0.0 }
 0x31e   :  { %v4095_v50 = vpack.c.bf16 %v4007_v47, %v4003_v15 }
 0x31f   :  { %v4096_v37 = vpack.c.bf16 %v4008_v36, %v4004_v28  ;;  %v2962_v12 = vpop.f32.mrb[64].mxu0  ;;  %v9278_v36 = vld [vmem:[#allocation17_spill] sm:$0xff] }
 0x320   :  { %v5969_v10 = vadd.f32 %v2962_v12, %v2294_v45  ;;  %v2964_v16 = vpop.f32.mrb[65].mxu0  ;;  %v2316_v25 = vadd.f32 %v9278_v36, %v8085_v7 }
 0x321   :  { %v5971_v58 = vadd.f32 %v2964_v16, %v2296_v24  ;;  %v2966_v46 = vpop.f32.mrb[66].mxu0  ;;  %4526 = vmatprep.mubr.bf16.mxu0 %v4096_v37  ;;  %v9279_v37 = vld [vmem:[#allocation117_spill] sm:$0xff] }
 0x322   :  { %v5973_v43 = vadd.f32 %v2966_v46, %v2298_v41  ;;  %v2968_v23 = vpop.f32.mrb[67].mxu0  ;;  %4527 = vmatmul.mubr.bf16.gmra.mrb[136].mxu0 %v4095_v50  ;;  %v4011_v40 = vmax.f32 %v5969_v10, 0.0  ;;  %v2318_v50 = vadd.f32 %v7955_v32, %v8082_v6  ;;  %v2320_v12 = vadd.f32 %v9279_v37, %v8085_v7  ;;  %v9282_v7 = vld [vmem:[#allocation19_spill] sm:$0xff] }
 0x323   :  { %v5975_v61 = vadd.f32 %v2968_v23, %v2300_v27  ;;  %3743 = vmatmul.mubr.bf16.gmra.mrb[96].mxu1 %v9270_v52  ;;  %v4012_v14 = vmax.f32 %v5971_v58, 0.0  ;;  %v9280_v27 = vld [vmem:[#allocation18_spill] sm:$0xff]  ;;  %v9283_v23 = vld [vmem:[#allocation20_spill] sm:$0xff]  ;;  %v9288_v52 = vld [vmem:[#allocation25_spill] sm:$0xff] }
 0x324   :  { %v4015_v9 = vmax.f32 %v5973_v43, 0.0  ;;  %3752 = vmatprep.mubr.bf16.mxu1 %v9271_v2  ;;  %v9281_v43 = vld [vmem:[#allocation116_spill] sm:$0xff]  ;;  %v9290_v2 = vld [vmem:[#allocation27_spill] sm:$0xff] }
 0x325   :  { %v4016_v11 = vmax.f32 %v5975_v61, 0.0  ;;  %v9284_v61 = vld [vmem:[#allocation21_spill] sm:$0xff] }
 0x326   :  { %v4099_v60 = vpack.c.bf16 %v4015_v9, %v4011_v40  ;;  %v9286_v40 = vld [vmem:[#allocation23_spill] sm:$0xff]  ;;  %v9287_v9 = vld [vmem:[#allocation24_spill] sm:$0xff] }
 0x327   :  { %v4100_v53 = vpack.c.bf16 %v4016_v11, %v4012_v14  ;;  %v2972_v38 = vpop.f32.mrb[68].mxu0  ;;  %v9289_v14 = vld [vmem:[#allocation26_spill] sm:$0xff]  ;;  %v6988_v11 = vld [vmem:[#allocation7 + $0xf8] sm:$0xff]  }
 0x328   :  { %v5977_v0 = vadd.f32 %v2972_v38, %v2304_v44  ;;  %v2974_v31 = vpop.f32.mrb[69].mxu0  ;;  %4590 = vmatpush1.bf16.msra.mxu0 %v6988_v11  ;;  %v9292_v44 = vld [vmem:[#allocation29_spill] sm:$0xff]  ;;  %v9297_v38 = vld [vmem:[#allocation34_spill] sm:$0xff] }
 0x329   :  { %v5979_v17 = vadd.f32 %v2974_v31, %v2306_v21  ;;  %v2976_v22 = vpop.f32.mrb[70].mxu0  ;;  %4534 = vmatprep.mubr.bf16.mxu0 %v4100_v53  ;;  %v9295_v21 = vld [vmem:[#allocation32_spill] sm:$0xff]  ;;  %v9296_v53 = vld [vmem:[#allocation33_spill] sm:$0xff]  ;;  %v813_v31 = vsub.s32 3, %v8073_v63 }
 0x32a   :  { %v5981_v33 = vadd.f32 %v2976_v22, %v2308_v4  ;;  %v2978_v54 = vpop.f32.mrb[71].mxu0  ;;  %4535 = vmatmul.mubr.bf16.gmra.mrb[140].mxu0 %v4099_v60  ;;  %v4019_v20 = vmax.f32 %v5977_v0, 0.0  ;;  %v9293_v60 = vld [vmem:[#allocation30_spill] sm:$0xff]  ;;  %v9299_v4 = vld [vmem:[#allocation36_spill] sm:$0xff]  ;;  %v809_v0 = vsub.s32 2, %v8073_v63 }
 0x32b   :  { %v5983_v18 = vadd.f32 %v2978_v54, %v2310_v3  ;;  %3753 = vmatmul.mubr.bf16.gmra.mrb[100].mxu1 %v9276_v56  ;;  %v4020_v15 = vmax.f32 %v5979_v17, 0.0  ;;  %v8321_v3 = vrot.slane %v8078_v34, %v813_v31 }
 0x32c   :  { %v4023_v30 = vmax.f32 %v5981_v33, 0.0  ;;  %3762 = vmatprep.mubr.bf16.mxu1 %v9277_v62  ;;  %v8318_v35 = vrot.slane %v8078_v34, %v809_v0 }
 0x32d   :  { %v4024_v47 = vmax.f32 %v5983_v18, 0.0 }
 0x32e   :  { %v4103_v28 = vpack.c.bf16 %v4023_v30, %v4019_v20 }
 0x32f   :  { %v4104_v49 = vpack.c.bf16 %v4024_v47, %v4020_v15  ;;  %v2982_v45 = vpop.f32.mrb[72].mxu0 }
 0x330   :  { %v5985_v57 = vadd.f32 %v2982_v45, %v2314_v48  ;;  %v2984_v24 = vpop.f32.mrb[73].mxu0 }
 0x331   :  { %v5987_v8 = vadd.f32 %v2984_v24, %v2316_v25  ;;  %v2986_v29 = vpop.f32.mrb[74].mxu0  ;;  %4542 = vmatprep.mubr.bf16.mxu0 %v4104_v49 }
 0x332   :  { %v5989_v41 = vadd.f32 %v2986_v29, %v2318_v50  ;;  %v2988_v10 = vpop.f32.mrb[75].mxu0  ;;  %4543 = vmatmul.mubr.bf16.gmra.mrb[144].mxu0 %v4103_v28  ;;  %v4027_v16 = vmax.f32 %v5985_v57, 0.0 }
 0x333   :  { %v5991_v51 = vadd.f32 %v2988_v10, %v2320_v12  ;;  %3763 = vmatmul.mubr.bf16.gmra.mrb[104].mxu1 %v9280_v27  ;;  %v4028_v58 = vmax.f32 %v5987_v8, 0.0 }
 0x334   :  { %v4031_v55 = vmax.f32 %v5989_v41, 0.0  ;;  %3772 = vmatprep.mubr.bf16.mxu1 %v9281_v43 }
 0x335   :  { %v4032_v46 = vmax.f32 %v5991_v51, 0.0 }
 0x336   :  { %v4107_v32 = vpack.c.bf16 %v4031_v55, %v4027_v16 }
 0x337   :  { %v4108_v6 = vpack.c.bf16 %v4032_v46, %v4028_v58 }
 0x339   :  { %4550 = vmatprep.mubr.bf16.mxu0 %v4108_v6 }
 0x33a   :  { %4551 = vmatmul.mubr.bf16.gmra.mrb[148].mxu0 %v4107_v32 }
 0x33b   :  { %3773 = vmatmul.mubr.bf16.gmra.mrb[108].mxu1 %v9282_v7 }
 0x33c   :  { %3782 = vmatprep.mubr.bf16.mxu1 %v9283_v23 }
 0x343   :  { %3783 = vmatmul.mubr.bf16.gmra.mrb[112].mxu1 %v9284_v61 }
 0x344   :  { %3792 = vmatprep.mubr.bf16.mxu1 %v9285_v39 }
 0x34b   :  { %3793 = vmatmul.mubr.bf16.gmra.mrb[116].mxu1 %v9286_v40 }
 0x34c   :  { %3802 = vmatprep.mubr.bf16.mxu1 %v9287_v9 }
 0x353   :  { %3803 = vmatmul.mubr.bf16.gmra.mrb[120].mxu1 %v9288_v52 }
 0x354   :  { %3812 = vmatprep.mubr.bf16.mxu1 %v9289_v14 }
 0x35b   :  { %3813 = vmatmul.mubr.bf16.gmra.mrb[124].mxu1 %v9290_v2 }
 0x35c   :  { %3822 = vmatprep.mubr.bf16.mxu1 %v9291_v1 }
 0x363   :  { %3823 = vmatmul.mubr.bf16.gmra.mrb[128].mxu1 %v9292_v44 }
 0x364   :  { %3832 = vmatprep.mubr.bf16.mxu1 %v9293_v60 }
 0x36b   :  { %3833 = vmatmul.mubr.bf16.gmra.mrb[132].mxu1 %v9294_v59 }
 0x36c   :  { %3842 = vmatprep.mubr.bf16.mxu1 %v9295_v21 }
 0x373   :  { %3843 = vmatmul.mubr.bf16.gmra.mrb[136].mxu1 %v9296_v53 }
 0x374   :  { %3852 = vmatprep.mubr.bf16.mxu1 %v9297_v38 }
 0x37b   :  { %3853 = vmatmul.mubr.bf16.gmra.mrb[140].mxu1 %v8039_v13 }
 0x37c   :  { %3862 = vmatprep.mubr.bf16.mxu1 %v8041_v5 }
 0x383   :  { %3863 = vmatmul.mubr.bf16.gmra.mrb[144].mxu1 %v9298_v26 }
 0x384   :  { %3872 = vmatprep.mubr.bf16.mxu1 %v9299_v4 }
 0x38b   :  { %3873 = vmatmul.mubr.bf16.gmra.mrb[148].mxu1 %v8055_v19 }
 0x3ce   :  { %v3694_v17 = vpop.f32.mrb[76].mxu1 }
 0x3cf   :  { %v5992_v13 = vadd.f32 %v3694_v17, %v8318_v35  ;;  %v3696_v5 = vpop.f32.mrb[77].mxu1 }
 0x3d0   :  { %v5993_v22 = vadd.f32 %v3696_v5, %v8321_v3  ;;  %v3698_v33 = vpop.f32.mrb[78].mxu1 }
 0x3d1   :  { %v5994_v54 = vadd.f32 %v3698_v33, %v8318_v35  ;;  %v3700_v19 = vpop.f32.mrb[79].mxu1  ;;  %v3885_v20 = vmax.f32 %v5992_v13, 0.0 }
 0x3d2   :  { %v5995_v18 = vadd.f32 %v3700_v19, %v8321_v3  ;;  %v3886_v30 = vmax.f32 %v5993_v22, 0.0 }
 0x3d3   :  { %v3889_v63 = vmax.f32 %v5994_v54, 0.0 }
 0x3d4   :  { %v3890_v56 = vmax.f32 %v5995_v18, 0.0 }
 0x3d5   :  { %v4037_v15 = vpack.c.bf16 %v3889_v63, %v3885_v20 }
 0x3d6   :  { %v4038_v47 = vpack.c.bf16 %v3890_v56, %v3886_v30  ;;  %v3704_v34 = vpop.f32.mrb[80].mxu1 }
 0x3d7   :  { %v5996_v62 = vadd.f32 %v3704_v34, %v8318_v35  ;;  %v3706_v48 = vpop.f32.mrb[81].mxu1 }
 0x3d8   :  { %v5997_v28 = vadd.f32 %v3706_v48, %v8321_v3  ;;  %v3708_v36 = vpop.f32.mrb[82].mxu1  ;;  %4591 = vmatprep.mubr.bf16.mxu0 %v4038_v47 }
 0x3d9   :  { %v5998_v25 = vadd.f32 %v3708_v36, %v8318_v35  ;;  %v3710_v49 = vpop.f32.mrb[83].mxu1  ;;  %4592 = vmatmul.mubr.bf16.vlgmr.msra.gmra.mrb[76].mxu0 %v4037_v15  ;;  %v3893_v50 = vmax.f32 %v5996_v62, 0.0 }
 0x3da   :  { %v5999_v45 = vadd.f32 %v3710_v49, %v8321_v3  ;;  %v3894_v24 = vmax.f32 %v5997_v28, 0.0 }
 0x3db   :  { %v3897_v57 = vmax.f32 %v5998_v25, 0.0 }
 0x3dc   :  { %v3898_v37 = vmax.f32 %v5999_v45, 0.0 }
 0x3dd   :  { %v4041_v12 = vpack.c.bf16 %v3897_v57, %v3893_v50 }
 0x3de   :  { %v4042_v8 = vpack.c.bf16 %v3898_v37, %v3894_v24  ;;  %v3714_v29 = vpop.f32.mrb[84].mxu1 }
 0x3df   :  { %v6000_v41 = vadd.f32 %v3714_v29, %v8318_v35  ;;  %v3716_v10 = vpop.f32.mrb[85].mxu1 }
 0x3e0   :  { %v6001_v51 = vadd.f32 %v3716_v10, %v8321_v3  ;;  %v3718_v16 = vpop.f32.mrb[86].mxu1  ;;  %4599 = vmatprep.mubr.bf16.mxu0 %v4042_v8 }
 0x3e1   :  { %v6002_v55 = vadd.f32 %v3718_v16, %v8318_v35  ;;  %v3720_v27 = vpop.f32.mrb[87].mxu1  ;;  %4600 = vmatmul.mubr.bf16.gmra.mrb[80].mxu0 %v4041_v12  ;;  %v3901_v46 = vmax.f32 %v6000_v41, 0.0 }
 0x3e2   :  { %v6003_v58 = vadd.f32 %v3720_v27, %v8321_v3  ;;  %v3902_v32 = vmax.f32 %v6001_v51, 0.0 }
 0x3e3   :  { %v3905_v43 = vmax.f32 %v6002_v55, 0.0 }
 0x3e4   :  { %v3906_v6 = vmax.f32 %v6003_v58, 0.0 }
 0x3e5   :  { %v4045_v7 = vpack.c.bf16 %v3905_v43, %v3901_v46 }
 0x3e6   :  { %v4046_v23 = vpack.c.bf16 %v3906_v6, %v3902_v32  ;;  %v3724_v61 = vpop.f32.mrb[88].mxu1 }
 0x3e7   :  { %v6004_v39 = vadd.f32 %v3724_v61, %v8318_v35  ;;  %v3726_v40 = vpop.f32.mrb[89].mxu1 }
 0x3e8   :  { %v6005_v9 = vadd.f32 %v3726_v40, %v8321_v3  ;;  %v3728_v52 = vpop.f32.mrb[90].mxu1  ;;  %4607 = vmatprep.mubr.bf16.mxu0 %v4046_v23 }
 0x3e9   :  { %v6006_v14 = vadd.f32 %v3728_v52, %v8318_v35  ;;  %v3730_v11 = vpop.f32.mrb[91].mxu1  ;;  %4608 = vmatmul.mubr.bf16.gmra.mrb[84].mxu0 %v4045_v7  ;;  %v3909_v1 = vmax.f32 %v6004_v39, 0.0 }
 0x3ea   :  { %v6007_v2 = vadd.f32 %v3730_v11, %v8321_v3  ;;  %v3910_v60 = vmax.f32 %v6005_v9, 0.0 }
 0x3eb   :  { %v3913_v44 = vmax.f32 %v6006_v14, 0.0 }
 0x3ec   :  { %v3914_v59 = vmax.f32 %v6007_v2, 0.0 }
 0x3ed   :  { %v4049_v21 = vpack.c.bf16 %v3913_v44, %v3909_v1 }
 0x3ee   :  { %v4050_v53 = vpack.c.bf16 %v3914_v59, %v3910_v60  ;;  %v3734_v38 = vpop.f32.mrb[92].mxu1 }
 0x3ef   :  { %v6008_v26 = vadd.f32 %v3734_v38, %v8318_v35  ;;  %v3736_v4 = vpop.f32.mrb[93].mxu1 }
 0x3f0   :  { %v6009_v0 = vadd.f32 %v3736_v4, %v8321_v3  ;;  %v3738_v31 = vpop.f32.mrb[94].mxu1  ;;  %4615 = vmatprep.mubr.bf16.mxu0 %v4050_v53 }
 0x3f1   :  { %v6010_v17 = vadd.f32 %v3738_v31, %v8318_v35  ;;  %v3740_v13 = vpop.f32.mrb[95].mxu1  ;;  %4616 = vmatmul.mubr.bf16.gmra.mrb[88].mxu0 %v4049_v21  ;;  %v3917_v22 = vmax.f32 %v6008_v26, 0.0 }
 0x3f2   :  { %v6011_v5 = vadd.f32 %v3740_v13, %v8321_v3  ;;  %v3918_v54 = vmax.f32 %v6009_v0, 0.0 }
 0x3f3   :  { %v3921_v33 = vmax.f32 %v6010_v17, 0.0 }
 0x3f4   :  { %v3922_v19 = vmax.f32 %v6011_v5, 0.0 }
 0x3f5   :  { %v4053_v18 = vpack.c.bf16 %v3921_v33, %v3917_v22 }
 0x3f6   :  { %v4054_v20 = vpack.c.bf16 %v3922_v19, %v3918_v54  ;;  %v3744_v63 = vpop.f32.mrb[96].mxu1 }
 0x3f7   :  { %v6012_v30 = vadd.f32 %v3744_v63, %v8318_v35  ;;  %v3746_v56 = vpop.f32.mrb[97].mxu1 }
 0x3f8   :  { %v6013_v15 = vadd.f32 %v3746_v56, %v8321_v3  ;;  %v3748_v47 = vpop.f32.mrb[98].mxu1  ;;  %4623 = vmatprep.mubr.bf16.mxu0 %v4054_v20 }
 0x3f9   :  { %v6014_v34 = vadd.f32 %v3748_v47, %v8318_v35  ;;  %v3750_v62 = vpop.f32.mrb[99].mxu1  ;;  %4624 = vmatmul.mubr.bf16.gmra.mrb[92].mxu0 %v4053_v18  ;;  %v3925_v28 = vmax.f32 %v6012_v30, 0.0 }
 0x3fa   :  { %v6015_v48 = vadd.f32 %v3750_v62, %v8321_v3  ;;  %v3926_v25 = vmax.f32 %v6013_v15, 0.0 }
 0x3fb   :  { %v3929_v36 = vmax.f32 %v6014_v34, 0.0 }
 0x3fc   :  { %v3930_v49 = vmax.f32 %v6015_v48, 0.0 }
 0x3fd   :  { %v4057_v45 = vpack.c.bf16 %v3929_v36, %v3925_v28 }
 0x3fe   :  { %v4058_v50 = vpack.c.bf16 %v3930_v49, %v3926_v25  ;;  %v3754_v57 = vpop.f32.mrb[100].mxu1 }
 0x3ff   :  { %v6016_v24 = vadd.f32 %v3754_v57, %v8318_v35  ;;  %v3756_v37 = vpop.f32.mrb[101].mxu1 }
 0x400   :  { %v6017_v12 = vadd.f32 %v3756_v37, %v8321_v3  ;;  %v3758_v8 = vpop.f32.mrb[102].mxu1  ;;  %4631 = vmatprep.mubr.bf16.mxu0 %v4058_v50 }
 0x401   :  { %v6018_v29 = vadd.f32 %v3758_v8, %v8318_v35  ;;  %v3760_v41 = vpop.f32.mrb[103].mxu1  ;;  %4632 = vmatmul.mubr.bf16.gmra.mrb[96].mxu0 %v4057_v45  ;;  %v3933_v51 = vmax.f32 %v6016_v24, 0.0 }
 0x402   :  { %v6019_v10 = vadd.f32 %v3760_v41, %v8321_v3  ;;  %v3934_v55 = vmax.f32 %v6017_v12, 0.0 }
 0x403   :  { %v3937_v16 = vmax.f32 %v6018_v29, 0.0 }
 0x404   :  { %v3938_v27 = vmax.f32 %v6019_v10, 0.0 }
 0x405   :  { %v4061_v58 = vpack.c.bf16 %v3937_v16, %v3933_v51 }
 0x406   :  { %v4062_v46 = vpack.c.bf16 %v3938_v27, %v3934_v55  ;;  %v3764_v43 = vpop.f32.mrb[104].mxu1 }
 0x407   :  { %v6020_v32 = vadd.f32 %v3764_v43, %v8318_v35  ;;  %v3766_v6 = vpop.f32.mrb[105].mxu1 }
 0x408   :  { %v6021_v7 = vadd.f32 %v3766_v6, %v8321_v3  ;;  %v3768_v23 = vpop.f32.mrb[106].mxu1  ;;  %4639 = vmatprep.mubr.bf16.mxu0 %v4062_v46 }
 0x409   :  { %v6022_v61 = vadd.f32 %v3768_v23, %v8318_v35  ;;  %v3770_v39 = vpop.f32.mrb[107].mxu1  ;;  %4640 = vmatmul.mubr.bf16.gmra.mrb[100].mxu0 %v4061_v58  ;;  %v3941_v9 = vmax.f32 %v6020_v32, 0.0 }
 0x40a   :  { %v6023_v40 = vadd.f32 %v3770_v39, %v8321_v3  ;;  %v3942_v14 = vmax.f32 %v6021_v7, 0.0 }
 0x40b   :  { %v3945_v52 = vmax.f32 %v6022_v61, 0.0 }
 0x40c   :  { %v3946_v11 = vmax.f32 %v6023_v40, 0.0 }
 0x40d   :  { %v4065_v2 = vpack.c.bf16 %v3945_v52, %v3941_v9 }
 0x40e   :  { %v4066_v1 = vpack.c.bf16 %v3946_v11, %v3942_v14  ;;  %v3774_v44 = vpop.f32.mrb[108].mxu1 }
 0x40f   :  { %v6024_v60 = vadd.f32 %v3774_v44, %v8318_v35  ;;  %v3776_v59 = vpop.f32.mrb[109].mxu1 }
 0x410   :  { %v6025_v21 = vadd.f32 %v3776_v59, %v8321_v3  ;;  %v3778_v53 = vpop.f32.mrb[110].mxu1  ;;  %4647 = vmatprep.mubr.bf16.mxu0 %v4066_v1 }
 0x411   :  { %v6026_v38 = vadd.f32 %v3778_v53, %v8318_v35  ;;  %v3780_v26 = vpop.f32.mrb[111].mxu1  ;;  %4648 = vmatmul.mubr.bf16.gmra.mrb[104].mxu0 %v4065_v2  ;;  %v3949_v0 = vmax.f32 %v6024_v60, 0.0 }
 0x412   :  { %v6027_v4 = vadd.f32 %v3780_v26, %v8321_v3  ;;  %v3950_v17 = vmax.f32 %v6025_v21, 0.0 }
 0x413   :  { %v3953_v31 = vmax.f32 %v6026_v38, 0.0 }
 0x414   :  { %v3954_v13 = vmax.f32 %v6027_v4, 0.0 }
 0x415   :  { %v4069_v5 = vpack.c.bf16 %v3953_v31, %v3949_v0 }
 0x416   :  { %v4070_v22 = vpack.c.bf16 %v3954_v13, %v3950_v17  ;;  %v3784_v33 = vpop.f32.mrb[112].mxu1 }
 0x417   :  { %v6028_v54 = vadd.f32 %v3784_v33, %v8318_v35  ;;  %v3786_v19 = vpop.f32.mrb[113].mxu1 }
 0x418   :  { %v6029_v18 = vadd.f32 %v3786_v19, %v8321_v3  ;;  %v3788_v20 = vpop.f32.mrb[114].mxu1  ;;  %4655 = vmatprep.mubr.bf16.mxu0 %v4070_v22 }
 0x419   :  { %v6030_v63 = vadd.f32 %v3788_v20, %v8318_v35  ;;  %v3790_v30 = vpop.f32.mrb[115].mxu1  ;;  %4656 = vmatmul.mubr.bf16.gmra.mrb[108].mxu0 %v4069_v5  ;;  %v3957_v15 = vmax.f32 %v6028_v54, 0.0 }
 0x41a   :  { %v6031_v56 = vadd.f32 %v3790_v30, %v8321_v3  ;;  %v3958_v34 = vmax.f32 %v6029_v18, 0.0 }
 0x41b   :  { %v3961_v47 = vmax.f32 %v6030_v63, 0.0 }
 0x41c   :  { %v3962_v62 = vmax.f32 %v6031_v56, 0.0 }
 0x41d   :  { %v4073_v48 = vpack.c.bf16 %v3961_v47, %v3957_v15 }
 0x41e   :  { %v4074_v28 = vpack.c.bf16 %v3962_v62, %v3958_v34  ;;  %v3794_v36 = vpop.f32.mrb[116].mxu1 }
 0x41f   :  { %v6032_v25 = vadd.f32 %v3794_v36, %v8318_v35  ;;  %v3796_v49 = vpop.f32.mrb[117].mxu1 }
 0x420   :  { %v6033_v45 = vadd.f32 %v3796_v49, %v8321_v3  ;;  %v3798_v50 = vpop.f32.mrb[118].mxu1  ;;  %4663 = vmatprep.mubr.bf16.mxu0 %v4074_v28 }
 0x421   :  { %v6034_v57 = vadd.f32 %v3798_v50, %v8318_v35  ;;  %v3800_v24 = vpop.f32.mrb[119].mxu1  ;;  %4664 = vmatmul.mubr.bf16.gmra.mrb[112].mxu0 %v4073_v48  ;;  %v3965_v12 = vmax.f32 %v6032_v25, 0.0 }
 0x422   :  { %v6035_v37 = vadd.f32 %v3800_v24, %v8321_v3  ;;  %v3966_v29 = vmax.f32 %v6033_v45, 0.0 }
 0x423   :  { %v3969_v8 = vmax.f32 %v6034_v57, 0.0 }
 0x424   :  { %v3970_v41 = vmax.f32 %v6035_v37, 0.0 }
 0x425   :  { %v4077_v10 = vpack.c.bf16 %v3969_v8, %v3965_v12 }
 0x426   :  { %v4078_v51 = vpack.c.bf16 %v3970_v41, %v3966_v29  ;;  %v3804_v16 = vpop.f32.mrb[120].mxu1 }
 0x427   :  { %v6036_v55 = vadd.f32 %v3804_v16, %v8318_v35  ;;  %v3806_v27 = vpop.f32.mrb[121].mxu1 }
 0x428   :  { %v6037_v58 = vadd.f32 %v3806_v27, %v8321_v3  ;;  %v3808_v46 = vpop.f32.mrb[122].mxu1  ;;  %4671 = vmatprep.mubr.bf16.mxu0 %v4078_v51 }
 0x429   :  { %v6038_v43 = vadd.f32 %v3808_v46, %v8318_v35  ;;  %v3810_v32 = vpop.f32.mrb[123].mxu1  ;;  %4672 = vmatmul.mubr.bf16.gmra.mrb[116].mxu0 %v4077_v10  ;;  %v3973_v7 = vmax.f32 %v6036_v55, 0.0 }
 0x42a   :  { %v6039_v6 = vadd.f32 %v3810_v32, %v8321_v3  ;;  %v3974_v61 = vmax.f32 %v6037_v58, 0.0 }
 0x42b   :  { %v3977_v23 = vmax.f32 %v6038_v43, 0.0 }
 0x42c   :  { %v3978_v39 = vmax.f32 %v6039_v6, 0.0 }
 0x42d   :  { %v4081_v40 = vpack.c.bf16 %v3977_v23, %v3973_v7 }
 0x42e   :  { %v4082_v9 = vpack.c.bf16 %v3978_v39, %v3974_v61  ;;  %v3814_v52 = vpop.f32.mrb[124].mxu1 }
 0x42f   :  { %v6040_v14 = vadd.f32 %v3814_v52, %v8318_v35  ;;  %v3816_v11 = vpop.f32.mrb[125].mxu1 }
 0x430   :  { %v6041_v2 = vadd.f32 %v3816_v11, %v8321_v3  ;;  %v3818_v1 = vpop.f32.mrb[126].mxu1  ;;  %4679 = vmatprep.mubr.bf16.mxu0 %v4082_v9 }
 0x431   :  { %v6042_v44 = vadd.f32 %v3818_v1, %v8318_v35  ;;  %v3820_v60 = vpop.f32.mrb[127].mxu1  ;;  %4680 = vmatmul.mubr.bf16.gmra.mrb[120].mxu0 %v4081_v40  ;;  %v3981_v21 = vmax.f32 %v6040_v14, 0.0 }
 0x432   :  { %v6043_v59 = vadd.f32 %v3820_v60, %v8321_v3  ;;  %v3982_v38 = vmax.f32 %v6041_v2, 0.0 }
 0x433   :  { %v3985_v53 = vmax.f32 %v6042_v44, 0.0 }
 0x434   :  { %v3986_v26 = vmax.f32 %v6043_v59, 0.0 }
 0x435   :  { %v4085_v4 = vpack.c.bf16 %v3985_v53, %v3981_v21 }
 0x436   :  { %v4086_v0 = vpack.c.bf16 %v3986_v26, %v3982_v38  ;;  %v3824_v31 = vpop.f32.mrb[128].mxu1 }
 0x437   :  { %v6044_v17 = vadd.f32 %v3824_v31, %v8318_v35  ;;  %v3826_v13 = vpop.f32.mrb[129].mxu1 }
 0x438   :  { %v6045_v5 = vadd.f32 %v3826_v13, %v8321_v3  ;;  %v3828_v22 = vpop.f32.mrb[130].mxu1  ;;  %4687 = vmatprep.mubr.bf16.mxu0 %v4086_v0 }
 0x439   :  { %v6046_v33 = vadd.f32 %v3828_v22, %v8318_v35  ;;  %v3830_v54 = vpop.f32.mrb[131].mxu1  ;;  %4688 = vmatmul.mubr.bf16.gmra.mrb[124].mxu0 %v4085_v4  ;;  %v3989_v18 = vmax.f32 %v6044_v17, 0.0 }
 0x43a   :  { %v6047_v19 = vadd.f32 %v3830_v54, %v8321_v3  ;;  %v3990_v63 = vmax.f32 %v6045_v5, 0.0 }
 0x43b   :  { %v3993_v20 = vmax.f32 %v6046_v33, 0.0 }
 0x43c   :  { %v3994_v30 = vmax.f32 %v6047_v19, 0.0 }
 0x43d   :  { %v4089_v56 = vpack.c.bf16 %v3993_v20, %v3989_v18 }
 0x43e   :  { %v4090_v15 = vpack.c.bf16 %v3994_v30, %v3990_v63  ;;  %v3834_v47 = vpop.f32.mrb[132].mxu1 }
 0x43f   :  { %v6048_v34 = vadd.f32 %v3834_v47, %v8318_v35  ;;  %v3836_v62 = vpop.f32.mrb[133].mxu1 }
 0x440   :  { %v6049_v48 = vadd.f32 %v3836_v62, %v8321_v3  ;;  %v3838_v28 = vpop.f32.mrb[134].mxu1  ;;  %4695 = vmatprep.mubr.bf16.mxu0 %v4090_v15 }
 0x441   :  { %v6050_v36 = vadd.f32 %v3838_v28, %v8318_v35  ;;  %v3840_v25 = vpop.f32.mrb[135].mxu1  ;;  %4696 = vmatmul.mubr.bf16.gmra.mrb[128].mxu0 %v4089_v56  ;;  %v3997_v45 = vmax.f32 %v6048_v34, 0.0 }
 0x442   :  { %v6051_v49 = vadd.f32 %v3840_v25, %v8321_v3  ;;  %v3998_v57 = vmax.f32 %v6049_v48, 0.0 }
 0x443   :  { %v4001_v50 = vmax.f32 %v6050_v36, 0.0 }
 0x444   :  { %v4002_v24 = vmax.f32 %v6051_v49, 0.0 }
 0x445   :  { %v4093_v37 = vpack.c.bf16 %v4001_v50, %v3997_v45  ;;  %v8400_v50 = vand.u32 127, %v799_v42 }
 0x446   :  { %v4094_v12 = vpack.c.bf16 %v4002_v24, %v3998_v57  ;;  %v3844_v8 = vpop.f32.mrb[136].mxu1  ;;  %v8402_v57 = vld [vmem:[#allocation9] ss:$0 sm:$0xff] }
 0x447   :  { %v6052_v29 = vadd.f32 %v3844_v8, %v8318_v35  ;;  %v3846_v41 = vpop.f32.mrb[137].mxu1  ;;  %vm4746_vm0 = vcmp.lt.s32.totalorder %v8400_v50, 4 }
 0x448   :  { %v6053_v10 = vadd.f32 %v3846_v41, %v8321_v3  ;;  %v3848_v51 = vpop.f32.mrb[138].mxu1  ;;  %4703 = vmatprep.mubr.bf16.mxu0 %v4094_v12 }
 0x449   :  { %v6054_v16 = vadd.f32 %v3848_v51, %v8318_v35  ;;  %v3850_v55 = vpop.f32.mrb[139].mxu1  ;;  %4704 = vmatmul.mubr.bf16.gmra.mrb[132].mxu0 %v4093_v37  ;;  %v4005_v58 = vmax.f32 %v6052_v29, 0.0 }
 0x44a   :  { %v6055_v27 = vadd.f32 %v3850_v55, %v8321_v3  ;;  %v4006_v43 = vmax.f32 %v6053_v10, 0.0 }
 0x44b   :  { %v4009_v46 = vmax.f32 %v6054_v16, 0.0 }
 0x44c   :  { %v4010_v32 = vmax.f32 %v6055_v27, 0.0 }
 0x44d   :  { %v4097_v6 = vpack.c.bf16 %v4009_v46, %v4005_v58 }
 0x44e   :  { %v4098_v7 = vpack.c.bf16 %v4010_v32, %v4006_v43  ;;  %v3854_v23 = vpop.f32.mrb[140].mxu1 }
 0x44f   :  { %v6056_v61 = vadd.f32 %v3854_v23, %v8318_v35  ;;  %v3856_v39 = vpop.f32.mrb[141].mxu1 }
 0x450   :  { %v6057_v40 = vadd.f32 %v3856_v39, %v8321_v3  ;;  %v3858_v9 = vpop.f32.mrb[142].mxu1  ;;  %4711 = vmatprep.mubr.bf16.mxu0 %v4098_v7 }
 0x451   :  { %v6058_v52 = vadd.f32 %v3858_v9, %v8318_v35  ;;  %v3860_v14 = vpop.f32.mrb[143].mxu1  ;;  %4712 = vmatmul.mubr.bf16.gmra.mrb[136].mxu0 %v4097_v6  ;;  %v4013_v2 = vmax.f32 %v6056_v61, 0.0 }
 0x452   :  { %v6059_v11 = vadd.f32 %v3860_v14, %v8321_v3  ;;  %v4014_v44 = vmax.f32 %v6057_v40, 0.0 }
 0x453   :  { %v4017_v1 = vmax.f32 %v6058_v52, 0.0 }
 0x454   :  { %v4018_v60 = vmax.f32 %v6059_v11, 0.0 }
 0x455   :  { %v4101_v59 = vpack.c.bf16 %v4017_v1, %v4013_v2 }
 0x456   :  { %v4102_v21 = vpack.c.bf16 %v4018_v60, %v4014_v44  ;;  %v3864_v53 = vpop.f32.mrb[144].mxu1 }
 0x457   :  { %v6060_v38 = vadd.f32 %v3864_v53, %v8318_v35  ;;  %v3866_v26 = vpop.f32.mrb[145].mxu1 }
 0x458   :  { %v6061_v4 = vadd.f32 %v3866_v26, %v8321_v3  ;;  %v3868_v0 = vpop.f32.mrb[146].mxu1  ;;  %4719 = vmatprep.mubr.bf16.mxu0 %v4102_v21 }
 0x459   :  { %v6062_v31 = vadd.f32 %v3868_v0, %v8318_v35  ;;  %v3870_v17 = vpop.f32.mrb[147].mxu1  ;;  %4720 = vmatmul.mubr.bf16.gmra.mrb[140].mxu0 %v4101_v59  ;;  %v4021_v5 = vmax.f32 %v6060_v38, 0.0 }
 0x45a   :  { %v6063_v13 = vadd.f32 %v3870_v17, %v8321_v3  ;;  %v4022_v33 = vmax.f32 %v6061_v4, 0.0 }
 0x45b   :  { %v4025_v22 = vmax.f32 %v6062_v31, 0.0 }
 0x45c   :  { %v4026_v54 = vmax.f32 %v6063_v13, 0.0 }
 0x45d   :  { %v4105_v19 = vpack.c.bf16 %v4025_v22, %v4021_v5 }
 0x45e   :  { %v4106_v18 = vpack.c.bf16 %v4026_v54, %v4022_v33  ;;  %v3874_v20 = vpop.f32.mrb[148].mxu1 }
 0x45f   :  { %v6064_v63 = vadd.f32 %v3874_v20, %v8318_v35  ;;  %v3876_v30 = vpop.f32.mrb[149].mxu1 }
 0x460   :  { %v6065_v56 = vadd.f32 %v3876_v30, %v8321_v3  ;;  %v3878_v15 = vpop.f32.mrb[150].mxu1  ;;  %4727 = vmatprep.mubr.bf16.mxu0 %v4106_v18 }
 0x461   :  { %v6066_v47 = vadd.f32 %v3878_v15, %v8318_v35  ;;  %v3880_v34 = vpop.f32.mrb[151].mxu1  ;;  %4728 = vmatmul.mubr.bf16.gmra.mrb[144].mxu0 %v4105_v19  ;;  %v4029_v48 = vmax.f32 %v6064_v63, 0.0 }
 0x462   :  { %v6067_v62 = vadd.f32 %v3880_v34, %v8321_v3  ;;  %v4030_v36 = vmax.f32 %v6065_v56, 0.0 }
 0x463   :  { %v4033_v28 = vmax.f32 %v6066_v47, 0.0 }
 0x464   :  { %v4034_v25 = vmax.f32 %v6067_v62, 0.0 }
 0x465   :  { %v4109_v49 = vpack.c.bf16 %v4033_v28, %v4029_v48 }
 0x466   :  { %v4110_v45 = vpack.c.bf16 %v4034_v25, %v4030_v36 }
 0x468   :  { %4735 = vmatprep.mubr.bf16.mxu0 %v4110_v45 }
 0x469   :  { %4736 = vmatmul.mubr.bf16.gmra.mrb[148].mxu0 %v4109_v49 }
 0x4ac   :  { %v4593_v35 = vpop.f32.mrb[76].mxu0 }
 0x4ad   :  { %v6068_v24 = vadd.f32 %v8402_v57, %v4593_v35  ;;  %v4595_v37 = vpop.f32.mrb[77].mxu0 }
 0x4ae   :  { %v4596_v3 = vpop.f32.mrb[78].mxu0 }
 0x4af   :  { %v6069_v12 = vadd.f32 %v8402_v57, %v4596_v3  ;;  %v4598_v8 = vpop.f32.mrb[79].mxu0  ;;  %v8409_v29 = vsel %vm4746_vm0, %v6068_v24, -1e+30 }
 0x4b0   :  { %4785 = vmax.xlane.f32.xlu0 %v8409_v29 }
 0x4b1   :  { %v8414_v42 = vsel %vm4746_vm0, %v6069_v12, -1e+30 }
 0x4b4   :  { %v4601_v41 = vpop.f32.mrb[80].mxu0  ;;  %4787 = vmax.xlane.f32.xlu0 %v8414_v42 }
 0x4b5   :  { %v6070_v10 = vadd.f32 %v8402_v57, %v4601_v41  ;;  %v4603_v51 = vpop.f32.mrb[81].mxu0 }
 0x4b6   :  { %v4604_v16 = vpop.f32.mrb[82].mxu0 }
 0x4b7   :  { %v6071_v55 = vadd.f32 %v8402_v57, %v4604_v16  ;;  %v4606_v27 = vpop.f32.mrb[83].mxu0  ;;  %v8421_v58 = vsel %vm4746_vm0, %v6070_v10, -1e+30 }
 0x4b8   :  { %4789 = vmax.xlane.f32.xlu1 %v8421_v58 }
 0x4b9   :  { %v8426_v46 = vsel %vm4746_vm0, %v6071_v55, -1e+30 }
 0x4bc   :  { %v4609_v43 = vpop.f32.mrb[84].mxu0  ;;  %4791 = vmax.xlane.f32.xlu1 %v8426_v46 }
 0x4bd   :  { %v6072_v32 = vadd.f32 %v8402_v57, %v4609_v43  ;;  %v4611_v6 = vpop.f32.mrb[85].mxu0 }
 0x4be   :  { %v4612_v7 = vpop.f32.mrb[86].mxu0 }
 0x4bf   :  { %v6073_v23 = vadd.f32 %v8402_v57, %v4612_v7  ;;  %v4614_v61 = vpop.f32.mrb[87].mxu0  ;;  %v8433_v39 = vsel %vm4746_vm0, %v6072_v32, -1e+30 }
 0x4c0   :  { %4793 = vmax.xlane.f32.xlu0 %v8433_v39 }
 0x4c1   :  { %v8438_v40 = vsel %vm4746_vm0, %v6073_v23, -1e+30 }
 0x4c2   :  { %4795 = vmax.xlane.f32.xlu1 %v8438_v40 }
 0x4c4   :  { %v4617_v9 = vpop.f32.mrb[88].mxu0 }
 0x4c5   :  { %v6074_v52 = vadd.f32 %v8402_v57, %v4617_v9  ;;  %v4619_v14 = vpop.f32.mrb[89].mxu0 }
 0x4c6   :  { %v4620_v11 = vpop.f32.mrb[90].mxu0 }
 0x4c7   :  { %v6075_v2 = vadd.f32 %v8402_v57, %v4620_v11  ;;  %v4622_v1 = vpop.f32.mrb[91].mxu0  ;;  %v8445_v44 = vsel %vm4746_vm0, %v6074_v52, -1e+30 }
 0x4c8   :  { %4797 = vmax.xlane.f32.xlu0 %v8445_v44 }
 0x4c9   :  { %v8450_v60 = vsel %vm4746_vm0, %v6075_v2, -1e+30 }
 0x4ca   :  { %4799 = vmax.xlane.f32.xlu1 %v8450_v60 }
 0x4cc   :  { %v4625_v59 = vpop.f32.mrb[92].mxu0 }
 0x4cd   :  { %v6076_v21 = vadd.f32 %v8402_v57, %v4625_v59  ;;  %v4627_v53 = vpop.f32.mrb[93].mxu0 }
 0x4ce   :  { %v4628_v38 = vpop.f32.mrb[94].mxu0 }
 0x4cf   :  { %v6077_v26 = vadd.f32 %v8402_v57, %v4628_v38  ;;  %v4630_v4 = vpop.f32.mrb[95].mxu0  ;;  %v8457_v0 = vsel %vm4746_vm0, %v6076_v21, -1e+30 }
 0x4d0   :  { %4801 = vmax.xlane.f32.xlu0 %v8457_v0 }
 0x4d1   :  { %v8462_v31 = vsel %vm4746_vm0, %v6077_v26, -1e+30 }
 0x4d2   :  { %4803 = vmax.xlane.f32.xlu1 %v8462_v31 }
 0x4d4   :  { %v4633_v17 = vpop.f32.mrb[96].mxu0 }
 0x4d5   :  { %v6078_v13 = vadd.f32 %v8402_v57, %v4633_v17  ;;  %v4635_v5 = vpop.f32.mrb[97].mxu0 }
 0x4d6   :  { %v4636_v22 = vpop.f32.mrb[98].mxu0 }
 0x4d7   :  { %v6079_v33 = vadd.f32 %v8402_v57, %v4636_v22  ;;  %v4638_v54 = vpop.f32.mrb[99].mxu0  ;;  %v8469_v19 = vsel %vm4746_vm0, %v6078_v13, -1e+30 }
 0x4d8   :  { %4805 = vmax.xlane.f32.xlu0 %v8469_v19 }
 0x4d9   :  { %v8474_v18 = vsel %vm4746_vm0, %v6079_v33, -1e+30 }
 0x4da   :  { %4807 = vmax.xlane.f32.xlu1 %v8474_v18 }
 0x4dc   :  { %v4641_v20 = vpop.f32.mrb[100].mxu0 }
 0x4dd   :  { %v6080_v63 = vadd.f32 %v8402_v57, %v4641_v20  ;;  %v4643_v30 = vpop.f32.mrb[101].mxu0 }
 0x4de   :  { %v4644_v56 = vpop.f32.mrb[102].mxu0 }
 0x4df   :  { %v6081_v15 = vadd.f32 %v8402_v57, %v4644_v56  ;;  %v4646_v47 = vpop.f32.mrb[103].mxu0  ;;  %v8481_v34 = vsel %vm4746_vm0, %v6080_v63, -1e+30 }
 0x4e0   :  { %4809 = vmax.xlane.f32.xlu0 %v8481_v34 }
 0x4e1   :  { %v8486_v62 = vsel %vm4746_vm0, %v6081_v15, -1e+30 }
 0x4e2   :  { %4811 = vmax.xlane.f32.xlu1 %v8486_v62 }
 0x4e4   :  { %v4649_v48 = vpop.f32.mrb[104].mxu0 }
 0x4e5   :  { %v6082_v28 = vadd.f32 %v8402_v57, %v4649_v48  ;;  %v4651_v36 = vpop.f32.mrb[105].mxu0 }
 0x4e6   :  { %v4652_v25 = vpop.f32.mrb[106].mxu0 }
 0x4e7   :  { %v6083_v49 = vadd.f32 %v8402_v57, %v4652_v25  ;;  %v4654_v45 = vpop.f32.mrb[107].mxu0  ;;  %v8493_v35 = vsel %vm4746_vm0, %v6082_v28, -1e+30 }
 0x4e8   :  { %4813 = vmax.xlane.f32.xlu0 %v8493_v35 }
 0x4e9   :  { %v8498_v24 = vsel %vm4746_vm0, %v6083_v49, -1e+30 }
 0x4ea   :  { %4815 = vmax.xlane.f32.xlu1 %v8498_v24 }
 0x4ec   :  { %v4657_v37 = vpop.f32.mrb[108].mxu0 }
 0x4ed   :  { %v6084_v3 = vadd.f32 %v8402_v57, %v4657_v37  ;;  %v4659_v12 = vpop.f32.mrb[109].mxu0 }
 0x4ee   :  { %v4660_v8 = vpop.f32.mrb[110].mxu0 }
 0x4ef   :  { %v6085_v41 = vadd.f32 %v8402_v57, %v4660_v8  ;;  %v4662_v10 = vpop.f32.mrb[111].mxu0  ;;  %v8505_v51 = vsel %vm4746_vm0, %v6084_v3, -1e+30 }
 0x4f0   :  { %4817 = vmax.xlane.f32.xlu0 %v8505_v51 }
 0x4f1   :  { %v8510_v16 = vsel %vm4746_vm0, %v6085_v41, -1e+30 }
 0x4f2   :  { %4819 = vmax.xlane.f32.xlu1 %v8510_v16 }
 0x4f4   :  { %v4665_v55 = vpop.f32.mrb[112].mxu0 }
 0x4f5   :  { %v6086_v27 = vadd.f32 %v8402_v57, %v4665_v55  ;;  %v4667_v43 = vpop.f32.mrb[113].mxu0 }
 0x4f6   :  { %v4668_v32 = vpop.f32.mrb[114].mxu0 }
 0x4f7   :  { %v6087_v6 = vadd.f32 %v8402_v57, %v4668_v32  ;;  %v4670_v7 = vpop.f32.mrb[115].mxu0  ;;  %v8517_v23 = vsel %vm4746_vm0, %v6086_v27, -1e+30 }
 0x4f8   :  { %4821 = vmax.xlane.f32.xlu0 %v8517_v23 }
 0x4f9   :  { %v8522_v61 = vsel %vm4746_vm0, %v6087_v6, -1e+30 }
 0x4fa   :  { %4823 = vmax.xlane.f32.xlu1 %v8522_v61 }
 0x4fc   :  { %v4673_v9 = vpop.f32.mrb[116].mxu0 }
 0x4fd   :  { %v6088_v52 = vadd.f32 %v8402_v57, %v4673_v9  ;;  %v4675_v14 = vpop.f32.mrb[117].mxu0 }
 0x4fe   :  { %v4676_v11 = vpop.f32.mrb[118].mxu0 }
 0x4ff   :  { %v6089_v2 = vadd.f32 %v8402_v57, %v4676_v11  ;;  %v4678_v1 = vpop.f32.mrb[119].mxu0  ;;  %v8529_v59 = vsel %vm4746_vm0, %v6088_v52, -1e+30 }
 0x500   :  { %4825 = vmax.xlane.f32.xlu0 %v8529_v59 }
 0x501   :  { %v8534_v21 = vsel %vm4746_vm0, %v6089_v2, -1e+30 }
 0x502   :  { %4827 = vmax.xlane.f32.xlu1 %v8534_v21 }
 0x504   :  { %v4681_v53 = vpop.f32.mrb[120].mxu0 }
 0x505   :  { %v6090_v38 = vadd.f32 %v8402_v57, %v4681_v53  ;;  %v4683_v26 = vpop.f32.mrb[121].mxu0 }
 0x506   :  { %v4684_v4 = vpop.f32.mrb[122].mxu0 }
 0x507   :  { %v6091_v17 = vadd.f32 %v8402_v57, %v4684_v4  ;;  %v4686_v13 = vpop.f32.mrb[123].mxu0  ;;  %v8541_v5 = vsel %vm4746_vm0, %v6090_v38, -1e+30 }
 0x508   :  { %4829 = vmax.xlane.f32.xlu0 %v8541_v5 }
 0x509   :  { %v8546_v22 = vsel %vm4746_vm0, %v6091_v17, -1e+30 }
 0x50a   :  { %4831 = vmax.xlane.f32.xlu1 %v8546_v22 }
 0x50c   :  { %v4689_v33 = vpop.f32.mrb[124].mxu0 }
 0x50d   :  { %v6092_v54 = vadd.f32 %v8402_v57, %v4689_v33  ;;  %v4691_v20 = vpop.f32.mrb[125].mxu0 }
 0x50e   :  { %v4692_v63 = vpop.f32.mrb[126].mxu0 }
 0x50f   :  { %v6093_v30 = vadd.f32 %v8402_v57, %v4692_v63  ;;  %v4694_v56 = vpop.f32.mrb[127].mxu0  ;;  %v8553_v15 = vsel %vm4746_vm0, %v6092_v54, -1e+30 }
 0x510   :  { %4833 = vmax.xlane.f32.xlu0 %v8553_v15 }
 0x511   :  { %v8558_v47 = vsel %vm4746_vm0, %v6093_v30, -1e+30 }
 0x512   :  { %4835 = vmax.xlane.f32.xlu1 %v8558_v47 }
 0x514   :  { %v4697_v48 = vpop.f32.mrb[128].mxu0 }
 0x515   :  { %v6094_v28 = vadd.f32 %v8402_v57, %v4697_v48  ;;  %v4699_v36 = vpop.f32.mrb[129].mxu0 }
 0x516   :  { %v4700_v25 = vpop.f32.mrb[130].mxu0 }
 0x517   :  { %v6095_v49 = vadd.f32 %v8402_v57, %v4700_v25  ;;  %v4702_v45 = vpop.f32.mrb[131].mxu0  ;;  %v8565_v37 = vsel %vm4746_vm0, %v6094_v28, -1e+30 }
 0x518   :  { %4837 = vmax.xlane.f32.xlu0 %v8565_v37 }
 0x519   :  { %v8570_v3 = vsel %vm4746_vm0, %v6095_v49, -1e+30 }
 0x51a   :  { %4839 = vmax.xlane.f32.xlu1 %v8570_v3 }
 0x51c   :  { %v4705_v12 = vpop.f32.mrb[132].mxu0 }
 0x51d   :  { %v6096_v8 = vadd.f32 %v8402_v57, %v4705_v12  ;;  %v4707_v41 = vpop.f32.mrb[133].mxu0 }
 0x51e   :  { %v4708_v10 = vpop.f32.mrb[134].mxu0 }
 0x51f   :  { %v6097_v55 = vadd.f32 %v8402_v57, %v4708_v10  ;;  %v4710_v27 = vpop.f32.mrb[135].mxu0  ;;  %v8577_v43 = vsel %vm4746_vm0, %v6096_v8, -1e+30 }
 0x520   :  { %4841 = vmax.xlane.f32.xlu0 %v8577_v43 }
 0x521   :  { %v8582_v32 = vsel %vm4746_vm0, %v6097_v55, -1e+30 }
 0x522   :  { %4843 = vmax.xlane.f32.xlu1 %v8582_v32 }
 0x524   :  { %v4713_v6 = vpop.f32.mrb[136].mxu0 }
 0x525   :  { %v6098_v7 = vadd.f32 %v8402_v57, %v4713_v6  ;;  %v4715_v9 = vpop.f32.mrb[137].mxu0 }
 0x526   :  { %v4716_v52 = vpop.f32.mrb[138].mxu0 }
 0x527   :  { %v6099_v14 = vadd.f32 %v8402_v57, %v4716_v52  ;;  %v4718_v11 = vpop.f32.mrb[139].mxu0  ;;  %v8589_v2 = vsel %vm4746_vm0, %v6098_v7, -1e+30 }
 0x528   :  { %4845 = vmax.xlane.f32.xlu0 %v8589_v2 }
 0x529   :  { %v8594_v1 = vsel %vm4746_vm0, %v6099_v14, -1e+30 }
 0x52a   :  { %4847 = vmax.xlane.f32.xlu1 %v8594_v1 }
 0x52c   :  { %v4721_v53 = vpop.f32.mrb[140].mxu0 }
 0x52d   :  { %v6100_v38 = vadd.f32 %v8402_v57, %v4721_v53  ;;  %v4723_v26 = vpop.f32.mrb[141].mxu0 }
 0x52e   :  { %v4724_v4 = vpop.f32.mrb[142].mxu0 }
 0x52f   :  { %v6101_v17 = vadd.f32 %v8402_v57, %v4724_v4  ;;  %v4726_v13 = vpop.f32.mrb[143].mxu0  ;;  %v8601_v33 = vsel %vm4746_vm0, %v6100_v38, -1e+30 }
 0x530   :  { %4849 = vmax.xlane.f32.xlu0 %v8601_v33 }
 0x531   :  { %v8606_v54 = vsel %vm4746_vm0, %v6101_v17, -1e+30 }
 0x532   :  { %4851 = vmax.xlane.f32.xlu1 %v8606_v54 }
 0x534   :  { %v4729_v20 = vpop.f32.mrb[144].mxu0 }
 0x535   :  { %v6102_v63 = vadd.f32 %v8402_v57, %v4729_v20  ;;  %v4731_v30 = vpop.f32.mrb[145].mxu0 }
 0x536   :  { %v4732_v56 = vpop.f32.mrb[146].mxu0 }
 0x537   :  { %v6103_v48 = vadd.f32 %v8402_v57, %v4732_v56  ;;  %v4734_v28 = vpop.f32.mrb[147].mxu0  ;;  %v8613_v36 = vsel %vm4746_vm0, %v6102_v63, -1e+30 }
 0x538   :  { %4853 = vmax.xlane.f32.xlu0 %v8613_v36 }
 0x539   :  { %v8618_v25 = vsel %vm4746_vm0, %v6103_v48, -1e+30 }
 0x53a   :  { %4855 = vmax.xlane.f32.xlu1 %v8618_v25 }
 0x53c   :  { %v4737_v49 = vpop.f32.mrb[148].mxu0 }
 0x53d   :  { %v6104_v45 = vadd.f32 %v8402_v57, %v4737_v49  ;;  %v4739_v12 = vpop.f32.mrb[149].mxu0  ;;  %v4786_v8 = vpop.xlane.xlu0 %4785 }
 0x53e   :  { %v4861_v41 = vsub.f32 %v8409_v29, %v4786_v8  ;;  %v4740_v10 = vpop.f32.mrb[150].mxu0 }
 0x53f   :  { %v6105_v55 = vadd.f32 %v8402_v57, %v4740_v10  ;;  %v4742_v27 = vpop.f32.mrb[151].mxu0  ;;  %v8626_v6 = vsel %vm4746_vm0, %v6104_v45, -1e+30 }
 0x540   :  { %v4899_v7 = vmul.f32 1.442695, %v4861_v41  ;;  %4857 = vmax.xlane.f32.xlu0 %v8626_v6 }
 0x541   :  { %v4788_v9 = vpop.xlane.xlu0 %4787  ;;  %v8631_v52 = vsel %vm4746_vm0, %v6105_v55, -1e+30 }
 0x542   :  { %6989 = vpow2.f32 %v4899_v7  ;;  %v4862_v14 = vsub.f32 %v8414_v42, %v4788_v9  ;;  %4859 = vmax.xlane.f32.xlu1 %v8631_v52 }
 0x544   :  { %v4901_v29 = vmul.f32 1.442695, %v4862_v14 }
 0x545   :  { %v4790_v57 = vpop.xlane.xlu1 %4789 }
 0x546   :  { %6991 = vpow2.f32 %v4901_v29  ;;  %v4863_v11 = vsub.f32 %v8421_v58, %v4790_v57 }
 0x548   :  { %v4903_v53 = vmul.f32 1.442695, %v4863_v11 }
 0x549   :  { %v4792_v38 = vpop.xlane.xlu1 %4791 }
 0x54a   :  { %6993 = vpow2.f32 %v4903_v53  ;;  %v4864_v26 = vsub.f32 %v8426_v46, %v4792_v38 }
 0x54c   :  { %v6990_v4 = vpop.eup %6989  ;;  %v4905_v17 = vmul.f32 1.442695, %v4864_v26 }
 0x54d   :  { %v4794_v13 = vpop.xlane.xlu0 %4793  ;;  %v8639_v20 = vsel %vm4746_vm0, %v6990_v4, 0.0 }
 0x54e   :  { %6995 = vpow2.f32 %v4905_v17  ;;  %v4865_v42 = vsub.f32 %v8433_v39, %v4794_v13  ;;  %5013 = vadd.xlane.f32.xlu0 %v8639_v20 }
 0x54f   :  { %v4796_v63 = vpop.xlane.xlu1 %4795 }
 0x550   :  { %v6992_v30 = vpop.eup %6991  ;;  %v4907_v58 = vmul.f32 1.442695, %v4865_v42  ;;  %v4866_v56 = vsub.f32 %v8438_v40, %v4796_v63 }
 0x551   :  { %v8646_v46 = vsel %vm4746_vm0, %v6992_v30, 0.0 }
 0x552   :  { %6997 = vpow2.f32 %v4907_v58  ;;  %v4909_v48 = vmul.f32 1.442695, %v4866_v56  ;;  %5015 = vadd.xlane.f32.xlu1 %v8646_v46 }
 0x554   :  { %v6994_v28 = vpop.eup %6993  ;;  %6999 = vpow2.f32 %v4909_v48 }
 0x555   :  { %v4798_v49 = vpop.xlane.xlu0 %4797  ;;  %v8651_v39 = vsel %vm4746_vm0, %v6994_v28, 0.0 }
 0x556   :  { %v4867_v45 = vsub.f32 %v8445_v44, %v4798_v49  ;;  %5017 = vadd.xlane.f32.xlu0 %v8651_v39 }
 0x557   :  { %v4800_v40 = vpop.xlane.xlu1 %4799 }
 0x558   :  { %v6996_v12 = vpop.eup %6995  ;;  %v4911_v8 = vmul.f32 1.442695, %v4867_v45  ;;  %v4868_v41 = vsub.f32 %v8450_v60, %v4800_v40 }
 0x559   :  { %v8658_v10 = vsel %vm4746_vm0, %v6996_v12, 0.0 }
 0x55a   :  { %7001 = vpow2.f32 %v4911_v8  ;;  %v4913_v55 = vmul.f32 1.442695, %v4868_v41  ;;  %5019 = vadd.xlane.f32.xlu1 %v8658_v10 }
 0x55c   :  { %v6998_v27 = vpop.eup %6997  ;;  %7003 = vpow2.f32 %v4913_v55 }
 0x55d   :  { %v4802_v7 = vpop.xlane.xlu0 %4801  ;;  %v8663_v44 = vsel %vm4746_vm0, %v6998_v27, 0.0 }
 0x55e   :  { %v7000_v9 = vpop.eup %6999  ;;  %v4869_v14 = vsub.f32 %v8457_v0, %v4802_v7  ;;  %5021 = vadd.xlane.f32.xlu0 %v8663_v44 }
 0x55f   :  { %v4804_v60 = vpop.xlane.xlu1 %4803  ;;  %v8669_v29 = vsel %vm4746_vm0, %v7000_v9, 0.0 }
 0x560   :  { %v4915_v57 = vmul.f32 1.442695, %v4869_v14  ;;  %v4870_v11 = vsub.f32 %v8462_v31, %v4804_v60  ;;  %5023 = vadd.xlane.f32.xlu1 %v8669_v29 }
 0x562   :  { %7005 = vpow2.f32 %v4915_v57  ;;  %v4917_v53 = vmul.f32 1.442695, %v4870_v11 }
 0x564   :  { %v7002_v38 = vpop.eup %7001  ;;  %7007 = vpow2.f32 %v4917_v53 }
 0x565   :  { %v4806_v26 = vpop.xlane.xlu0 %4805  ;;  %v8675_v0 = vsel %vm4746_vm0, %v7002_v38, 0.0 }
 0x566   :  { %v7004_v4 = vpop.eup %7003  ;;  %v4871_v17 = vsub.f32 %v8469_v19, %v4806_v26  ;;  %5025 = vadd.xlane.f32.xlu0 %v8675_v0 }
 0x567   :  { %v4808_v13 = vpop.xlane.xlu1 %4807  ;;  %v8681_v31 = vsel %vm4746_vm0, %v7004_v4, 0.0 }
 0x568   :  { %v4919_v42 = vmul.f32 1.442695, %v4871_v17  ;;  %v4872_v63 = vsub.f32 %v8474_v18, %v4808_v13  ;;  %5027 = vadd.xlane.f32.xlu1 %v8681_v31 }
 0x56a   :  { %7009 = vpow2.f32 %v4919_v42  ;;  %v4921_v30 = vmul.f32 1.442695, %v4872_v63 }
 0x56c   :  { %v7006_v58 = vpop.eup %7005  ;;  %7011 = vpow2.f32 %v4921_v30 }
 0x56d   :  { %v4810_v56 = vpop.xlane.xlu0 %4809  ;;  %v8687_v19 = vsel %vm4746_vm0, %v7006_v58, 0.0 }
 0x56e   :  { %v7008_v48 = vpop.eup %7007  ;;  %v4873_v28 = vsub.f32 %v8481_v34, %v4810_v56  ;;  %5029 = vadd.xlane.f32.xlu0 %v8687_v19 }
 0x56f   :  { %v4812_v49 = vpop.xlane.xlu1 %4811  ;;  %v8693_v18 = vsel %vm4746_vm0, %v7008_v48, 0.0 }
 0x570   :  { %v4923_v45 = vmul.f32 1.442695, %v4873_v28  ;;  %v4874_v40 = vsub.f32 %v8486_v62, %v4812_v49  ;;  %5031 = vadd.xlane.f32.xlu1 %v8693_v18 }
 0x572   :  { %7013 = vpow2.f32 %v4923_v45  ;;  %v4925_v12 = vmul.f32 1.442695, %v4874_v40 }
 0x574   :  { %v7010_v8 = vpop.eup %7009  ;;  %7015 = vpow2.f32 %v4925_v12 }
 0x575   :  { %v4814_v41 = vpop.xlane.xlu0 %4813  ;;  %v8699_v34 = vsel %vm4746_vm0, %v7010_v8, 0.0 }
 0x576   :  { %v7012_v55 = vpop.eup %7011  ;;  %v4875_v27 = vsub.f32 %v8493_v35, %v4814_v41  ;;  %5033 = vadd.xlane.f32.xlu0 %v8699_v34 }
 0x577   :  { %v4816_v7 = vpop.xlane.xlu1 %4815  ;;  %v8705_v62 = vsel %vm4746_vm0, %v7012_v55, 0.0 }
 0x578   :  { %v4927_v9 = vmul.f32 1.442695, %v4875_v27  ;;  %v4876_v14 = vsub.f32 %v8498_v24, %v4816_v7  ;;  %5035 = vadd.xlane.f32.xlu1 %v8705_v62 }
 0x57a   :  { %7017 = vpow2.f32 %v4927_v9  ;;  %v4929_v60 = vmul.f32 1.442695, %v4876_v14 }
 0x57c   :  { %v7014_v57 = vpop.eup %7013  ;;  %7019 = vpow2.f32 %v4929_v60 }
 0x57d   :  { %v4818_v11 = vpop.xlane.xlu0 %4817  ;;  %v8711_v35 = vsel %vm4746_vm0, %v7014_v57, 0.0 }
 0x57e   :  { %v7016_v53 = vpop.eup %7015  ;;  %v4877_v38 = vsub.f32 %v8505_v51, %v4818_v11  ;;  %5037 = vadd.xlane.f32.xlu0 %v8711_v35 }
 0x57f   :  { %v4820_v26 = vpop.xlane.xlu1 %4819  ;;  %v8717_v24 = vsel %vm4746_vm0, %v7016_v53, 0.0 }
 0x580   :  { %v4931_v4 = vmul.f32 1.442695, %v4877_v38  ;;  %v4878_v17 = vsub.f32 %v8510_v16, %v4820_v26  ;;  %5039 = vadd.xlane.f32.xlu1 %v8717_v24 }
 0x582   :  { %7021 = vpow2.f32 %v4931_v4  ;;  %v4933_v13 = vmul.f32 1.442695, %v4878_v17 }
 0x584   :  { %v7018_v42 = vpop.eup %7017  ;;  %7023 = vpow2.f32 %v4933_v13 }
 0x585   :  { %v4822_v63 = vpop.xlane.xlu0 %4821  ;;  %v8723_v51 = vsel %vm4746_vm0, %v7018_v42, 0.0 }
 0x586   :  { %v7020_v30 = vpop.eup %7019  ;;  %v4879_v58 = vsub.f32 %v8517_v23, %v4822_v63  ;;  %5041 = vadd.xlane.f32.xlu0 %v8723_v51 }
 0x587   :  { %v4824_v56 = vpop.xlane.xlu1 %4823  ;;  %v8729_v16 = vsel %vm4746_vm0, %v7020_v30, 0.0 }
 0x588   :  { %v4935_v48 = vmul.f32 1.442695, %v4879_v58  ;;  %v4880_v28 = vsub.f32 %v8522_v61, %v4824_v56  ;;  %5043 = vadd.xlane.f32.xlu1 %v8729_v16 }
 0x58a   :  { %7025 = vpow2.f32 %v4935_v48  ;;  %v4937_v49 = vmul.f32 1.442695, %v4880_v28 }
 0x58c   :  { %v7022_v45 = vpop.eup %7021  ;;  %7027 = vpow2.f32 %v4937_v49 }
 0x58d   :  { %v4826_v40 = vpop.xlane.xlu0 %4825  ;;  %v8735_v23 = vsel %vm4746_vm0, %v7022_v45, 0.0 }
 0x58e   :  { %v7024_v12 = vpop.eup %7023  ;;  %v4881_v8 = vsub.f32 %v8529_v59, %v4826_v40  ;;  %5045 = vadd.xlane.f32.xlu0 %v8735_v23 }
 0x58f   :  { %v4828_v41 = vpop.xlane.xlu1 %4827  ;;  %v8741_v61 = vsel %vm4746_vm0, %v7024_v12, 0.0 }
 0x590   :  { %v4939_v55 = vmul.f32 1.442695, %v4881_v8  ;;  %v4882_v27 = vsub.f32 %v8534_v21, %v4828_v41  ;;  %5047 = vadd.xlane.f32.xlu1 %v8741_v61 }
 0x592   :  { %7029 = vpow2.f32 %v4939_v55  ;;  %v4941_v7 = vmul.f32 1.442695, %v4882_v27 }
 0x594   :  { %v7026_v9 = vpop.eup %7025  ;;  %7031 = vpow2.f32 %v4941_v7 }
 0x595   :  { %v4830_v14 = vpop.xlane.xlu0 %4829  ;;  %v8747_v59 = vsel %vm4746_vm0, %v7026_v9, 0.0 }
 0x596   :  { %v7028_v60 = vpop.eup %7027  ;;  %v4883_v57 = vsub.f32 %v8541_v5, %v4830_v14  ;;  %5049 = vadd.xlane.f32.xlu0 %v8747_v59 }
 0x597   :  { %v4832_v11 = vpop.xlane.xlu1 %4831  ;;  %v8753_v21 = vsel %vm4746_vm0, %v7028_v60, 0.0 }
 0x598   :  { %v4943_v53 = vmul.f32 1.442695, %v4883_v57  ;;  %v4884_v38 = vsub.f32 %v8546_v22, %v4832_v11  ;;  %5051 = vadd.xlane.f32.xlu1 %v8753_v21 }
 0x59a   :  { %7033 = vpow2.f32 %v4943_v53  ;;  %v4945_v26 = vmul.f32 1.442695, %v4884_v38 }
 0x59c   :  { %v7030_v4 = vpop.eup %7029  ;;  %7035 = vpow2.f32 %v4945_v26 }
 0x59d   :  { %v4834_v17 = vpop.xlane.xlu0 %4833  ;;  %v8759_v5 = vsel %vm4746_vm0, %v7030_v4, 0.0 }
 0x59e   :  { %v7032_v13 = vpop.eup %7031  ;;  %v4885_v42 = vsub.f32 %v8553_v15, %v4834_v17  ;;  %5053 = vadd.xlane.f32.xlu0 %v8759_v5 }
 0x59f   :  { %v4836_v63 = vpop.xlane.xlu1 %4835  ;;  %v8765_v22 = vsel %vm4746_vm0, %v7032_v13, 0.0 }
 0x5a0   :  { %v4947_v30 = vmul.f32 1.442695, %v4885_v42  ;;  %v4886_v58 = vsub.f32 %v8558_v47, %v4836_v63  ;;  %5055 = vadd.xlane.f32.xlu1 %v8765_v22 }
 0x5a2   :  { %7037 = vpow2.f32 %v4947_v30  ;;  %v4949_v56 = vmul.f32 1.442695, %v4886_v58 }
 0x5a4   :  { %v7034_v48 = vpop.eup %7033  ;;  %7039 = vpow2.f32 %v4949_v56 }
 0x5a5   :  { %v4838_v28 = vpop.xlane.xlu0 %4837  ;;  %v8771_v15 = vsel %vm4746_vm0, %v7034_v48, 0.0 }
 0x5a6   :  { %v7036_v49 = vpop.eup %7035  ;;  %v4887_v45 = vsub.f32 %v8565_v37, %v4838_v28  ;;  %5057 = vadd.xlane.f32.xlu0 %v8771_v15 }
 0x5a7   :  { %v4840_v40 = vpop.xlane.xlu1 %4839  ;;  %v8777_v47 = vsel %vm4746_vm0, %v7036_v49, 0.0 }
 0x5a8   :  { %v4951_v12 = vmul.f32 1.442695, %v4887_v45  ;;  %v4888_v8 = vsub.f32 %v8570_v3, %v4840_v40  ;;  %5059 = vadd.xlane.f32.xlu1 %v8777_v47 }
 0x5aa   :  { %7041 = vpow2.f32 %v4951_v12  ;;  %v4953_v41 = vmul.f32 1.442695, %v4888_v8 }
 0x5ac   :  { %v7038_v55 = vpop.eup %7037  ;;  %7043 = vpow2.f32 %v4953_v41 }
 0x5ad   :  { %v4842_v27 = vpop.xlane.xlu0 %4841  ;;  %v8783_v37 = vsel %vm4746_vm0, %v7038_v55, 0.0 }
 0x5ae   :  { %v7040_v7 = vpop.eup %7039  ;;  %v4889_v9 = vsub.f32 %v8577_v43, %v4842_v27  ;;  %5061 = vadd.xlane.f32.xlu0 %v8783_v37 }
 0x5af   :  { %v4844_v14 = vpop.xlane.xlu1 %4843  ;;  %v8789_v3 = vsel %vm4746_vm0, %v7040_v7, 0.0 }
 0x5b0   :  { %v4955_v60 = vmul.f32 1.442695, %v4889_v9  ;;  %v4890_v57 = vsub.f32 %v8582_v32, %v4844_v14  ;;  %5063 = vadd.xlane.f32.xlu1 %v8789_v3 }
 0x5b2   :  { %7045 = vpow2.f32 %v4955_v60  ;;  %v4957_v11 = vmul.f32 1.442695, %v4890_v57 }
 0x5b4   :  { %v7042_v53 = vpop.eup %7041  ;;  %7047 = vpow2.f32 %v4957_v11 }
 0x5b5   :  { %v4846_v38 = vpop.xlane.xlu0 %4845  ;;  %v8795_v43 = vsel %vm4746_vm0, %v7042_v53, 0.0 }
 0x5b6   :  { %v7044_v26 = vpop.eup %7043  ;;  %v4891_v4 = vsub.f32 %v8589_v2, %v4846_v38  ;;  %5065 = vadd.xlane.f32.xlu0 %v8795_v43 }
 0x5b7   :  { %v4848_v17 = vpop.xlane.xlu1 %4847  ;;  %v8801_v32 = vsel %vm4746_vm0, %v7044_v26, 0.0 }
 0x5b8   :  { %v4959_v13 = vmul.f32 1.442695, %v4891_v4  ;;  %v4892_v42 = vsub.f32 %v8594_v1, %v4848_v17  ;;  %5067 = vadd.xlane.f32.xlu1 %v8801_v32 }
 0x5ba   :  { %7049 = vpow2.f32 %v4959_v13  ;;  %v4961_v63 = vmul.f32 1.442695, %v4892_v42 }
 0x5bc   :  { %v7046_v30 = vpop.eup %7045  ;;  %7051 = vpow2.f32 %v4961_v63 }
 0x5bd   :  { %v4850_v58 = vpop.xlane.xlu0 %4849  ;;  %v8807_v2 = vsel %vm4746_vm0, %v7046_v30, 0.0 }
 0x5be   :  { %v7048_v56 = vpop.eup %7047  ;;  %v4893_v48 = vsub.f32 %v8601_v33, %v4850_v58  ;;  %5069 = vadd.xlane.f32.xlu0 %v8807_v2 }
 0x5bf   :  { %v4852_v28 = vpop.xlane.xlu1 %4851  ;;  %v8813_v1 = vsel %vm4746_vm0, %v7048_v56, 0.0 }
 0x5c0   :  { %v4963_v49 = vmul.f32 1.442695, %v4893_v48  ;;  %v4894_v45 = vsub.f32 %v8606_v54, %v4852_v28  ;;  %5071 = vadd.xlane.f32.xlu1 %v8813_v1 }
 0x5c2   :  { %7053 = vpow2.f32 %v4963_v49  ;;  %v4965_v40 = vmul.f32 1.442695, %v4894_v45 }
 0x5c4   :  { %v7050_v12 = vpop.eup %7049  ;;  %7055 = vpow2.f32 %v4965_v40 }
 0x5c5   :  { %v4854_v8 = vpop.xlane.xlu0 %4853  ;;  %v8819_v33 = vsel %vm4746_vm0, %v7050_v12, 0.0 }
 0x5c6   :  { %v7052_v41 = vpop.eup %7051  ;;  %v4895_v55 = vsub.f32 %v8613_v36, %v4854_v8  ;;  %5073 = vadd.xlane.f32.xlu0 %v8819_v33 }
 0x5c7   :  { %v4856_v27 = vpop.xlane.xlu1 %4855  ;;  %v8825_v54 = vsel %vm4746_vm0, %v7052_v41, 0.0 }
 0x5c8   :  { %v4967_v7 = vmul.f32 1.442695, %v4895_v55  ;;  %v4896_v9 = vsub.f32 %v8618_v25, %v4856_v27  ;;  %5075 = vadd.xlane.f32.xlu1 %v8825_v54 }
 0x5ca   :  { %7057 = vpow2.f32 %v4967_v7  ;;  %v4969_v14 = vmul.f32 1.442695, %v4896_v9 }
 0x5cc   :  { %v7054_v60 = vpop.eup %7053  ;;  %7059 = vpow2.f32 %v4969_v14 }
 0x5cd   :  { %v4858_v57 = vpop.xlane.xlu0 %4857  ;;  %v8831_v36 = vsel %vm4746_vm0, %v7054_v60, 0.0 }
 0x5ce   :  { %v7056_v11 = vpop.eup %7055  ;;  %v4897_v53 = vsub.f32 %v8626_v6, %v4858_v57  ;;  %5077 = vadd.xlane.f32.xlu0 %v8831_v36 }
 0x5cf   :  { %v4860_v38 = vpop.xlane.xlu1 %4859  ;;  %v8837_v25 = vsel %vm4746_vm0, %v7056_v11, 0.0 }
 0x5d0   :  { %v4971_v26 = vmul.f32 1.442695, %v4897_v53  ;;  %v4898_v4 = vsub.f32 %v8631_v52, %v4860_v38  ;;  %5079 = vadd.xlane.f32.xlu1 %v8837_v25 }
 0x5d2   :  { %7061 = vpow2.f32 %v4971_v26  ;;  %v4973_v17 = vmul.f32 1.442695, %v4898_v4 }
 0x5d4   :  { %v7058_v13 = vpop.eup %7057  ;;  %7063 = vpow2.f32 %v4973_v17 }
 0x5d5   :  { %v8843_v42 = vsel %vm4746_vm0, %v7058_v13, 0.0 }
 0x5d6   :  { %v7060_v6 = vpop.eup %7059  ;;  %5081 = vadd.xlane.f32.xlu0 %v8843_v42 }
 0x5d7   :  { %v8848_v63 = vsel %vm4746_vm0, %v7060_v6, 0.0 }
 0x5d8   :  { %5083 = vadd.xlane.f32.xlu1 %v8848_v63 }
 0x5db   :  { %v5014_v52 = vpop.xlane.xlu0 %5013 }
 0x5dc   :  { %v7062_v30 = vpop.eup %7061  ;;  %7065 = vrcp.f32 %v5014_v52 }
 0x5dd   :  { %v8853_v58 = vsel %vm4746_vm0, %v7062_v30, 0.0 }
 0x5de   :  { %v7064_v56 = vpop.eup %7063  ;;  %5085 = vadd.xlane.f32.xlu0 %v8853_v58 }
 0x5df   :  { %v5016_v48 = vpop.xlane.xlu1 %5015  ;;  %v8858_v28 = vsel %vm4746_vm0, %v7064_v56, 0.0 }
 0x5e0   :  { %7067 = vrcp.f32 %v5016_v48  ;;  %5087 = vadd.xlane.f32.xlu1 %v8858_v28 }
 0x5e3   :  { %v5018_v49 = vpop.xlane.xlu0 %5017 }
 0x5e4   :  { %7069 = vrcp.f32 %v5018_v49 }
 0x5e6   :  { %v7066_v40 = vpop.eup %7065 }
 0x5e7   :  { %v5020_v45 = vpop.xlane.xlu1 %5019  ;;  %v5127_v8 = vmul.f32 %v7066_v40, %v8639_v20 }
 0x5e8   :  { %7071 = vrcp.f32 %v5020_v45 }
 0x5ea   :  { %v7068_v12 = vpop.eup %7067 }
 0x5eb   :  { %v5128_v41 = vmul.f32 %v7068_v12, %v8646_v46  ;;  %v5022_v55 = vpop.xlane.xlu0 %5021 }
 0x5ec   :  { %7073 = vrcp.f32 %v5022_v55 }
 0x5ed   :  { %v5730_v27 = vpack.c.bf16 %v5128_v41, %v5127_v8  ;;  %v5024_v7 = vpop.xlane.xlu1 %5023 }
 0x5ee   :  { %7075 = vrcp.f32 %v5024_v7  ;;  %v7070_v50 = vpop.eup %7069 }
 0x5ef   :  { %5731 = vst [vmem:[%s8961_s5] sm:$0xff] %v5730_v27   ;;  %v5129_v14 = vmul.f32 %v7070_v50, %v8651_v39 }
 0x5f2   :  { %v7072_v9 = vpop.eup %7071 }
 0x5f3   :  { %v5130_v60 = vmul.f32 %v7072_v9, %v8658_v10  ;;  %v5026_v57 = vpop.xlane.xlu0 %5025 }
 0x5f4   :  { %7077 = vrcp.f32 %v5026_v57 }
 0x5f5   :  { %v5735_v20 = vpack.c.bf16 %v5130_v60, %v5129_v14  ;;  %v5028_v11 = vpop.xlane.xlu1 %5027 }
 0x5f6   :  { %v7074_v46 = vpop.eup %7073  ;;  %7079 = vrcp.f32 %v5028_v11 }
 0x5f7   :  { %5822 = vst [vmem:[%s8961_s5 + $0x8] sm:$0xff] %v5735_v20   ;;  %v5131_v38 = vmul.f32 %v7074_v46, %v8663_v44 }
 0x5f8   :  { %v7076_v53 = vpop.eup %7075 }
 0x5f9   :  { %v5132_v26 = vmul.f32 %v7076_v53, %v8669_v29 }
 0x5fb   :  { %v5740_v4 = vpack.c.bf16 %v5132_v26, %v5131_v38  ;;  %v5030_v17 = vpop.xlane.xlu0 %5029 }
 0x5fc   :  { %7081 = vrcp.f32 %v5030_v17 }
 0x5fd   :  { %5823 = vst [vmem:[%s8961_s5 + $0x10] sm:$0xff] %v5740_v4   ;;  %v5032_v39 = vpop.xlane.xlu1 %5031 }
 0x5fe   :  { %v7078_v10 = vpop.eup %7077  ;;  %7083 = vrcp.f32 %v5032_v39 }
 0x5ff   :  { %v5133_v6 = vmul.f32 %v7078_v10, %v8675_v0 }
 0x600   :  { %v7080_v13 = vpop.eup %7079 }
 0x601   :  { %v5134_v52 = vmul.f32 %v7080_v13, %v8681_v31 }
 0x603   :  { %v5745_v30 = vpack.c.bf16 %v5134_v52, %v5133_v6  ;;  %v5034_v56 = vpop.xlane.xlu0 %5033 }
 0x604   :  { %7085 = vrcp.f32 %v5034_v56 }
 0x605   :  { %5824 = vst [vmem:[%s8961_s5 + $0x18] sm:$0xff] %v5745_v30   ;;  %v5036_v44 = vpop.xlane.xlu1 %5035 }
 0x606   :  { %v7082_v29 = vpop.eup %7081  ;;  %7087 = vrcp.f32 %v5036_v44 }
 0x607   :  { %v5135_v49 = vmul.f32 %v7082_v29, %v8687_v19 }
 0x608   :  { %v7084_v48 = vpop.eup %7083 }
 0x609   :  { %v5136_v45 = vmul.f32 %v7084_v48, %v8693_v18 }
 0x60b   :  { %v5750_v40 = vpack.c.bf16 %v5136_v45, %v5135_v49  ;;  %v5038_v12 = vpop.xlane.xlu0 %5037 }
 0x60c   :  { %7089 = vrcp.f32 %v5038_v12 }
 0x60d   :  { %5825 = vst [vmem:[%s8961_s5 + $0x20] sm:$0xff] %v5750_v40   ;;  %v5040_v0 = vpop.xlane.xlu1 %5039 }
 0x60e   :  { %v7086_v31 = vpop.eup %7085  ;;  %7091 = vrcp.f32 %v5040_v0 }
 0x60f   :  { %v5137_v41 = vmul.f32 %v7086_v31, %v8699_v34 }
 0x610   :  { %v7088_v8 = vpop.eup %7087 }
 0x611   :  { %v5138_v55 = vmul.f32 %v7088_v8, %v8705_v62 }
 0x613   :  { %v5755_v27 = vpack.c.bf16 %v5138_v55, %v5137_v41  ;;  %v5042_v7 = vpop.xlane.xlu0 %5041 }
 0x614   :  { %7093 = vrcp.f32 %v5042_v7 }
 0x615   :  { %5826 = vst [vmem:[%s8961_s5 + $0x28] sm:$0xff] %v5755_v27   ;;  %v5044_v19 = vpop.xlane.xlu1 %5043 }
 0x616   :  { %v7090_v18 = vpop.eup %7089  ;;  %7095 = vrcp.f32 %v5044_v19 }
 0x617   :  { %v5139_v9 = vmul.f32 %v7090_v18, %v8711_v35 }
 0x618   :  { %v7092_v50 = vpop.eup %7091 }
 0x619   :  { %v5140_v14 = vmul.f32 %v7092_v50, %v8717_v24 }
 0x61b   :  { %v5760_v60 = vpack.c.bf16 %v5140_v14, %v5139_v9  ;;  %v5046_v57 = vpop.xlane.xlu0 %5045 }
 0x61c   :  { %7097 = vrcp.f32 %v5046_v57 }
 0x61d   :  { %5827 = vst [vmem:[%s8961_s5 + $0x30] sm:$0xff] %v5760_v60   ;;  %v5048_v34 = vpop.xlane.xlu1 %5047 }
 0x61e   :  { %v7094_v62 = vpop.eup %7093  ;;  %7099 = vrcp.f32 %v5048_v34 }
 0x61f   :  { %v5141_v11 = vmul.f32 %v7094_v62, %v8723_v51 }
 0x620   :  { %v7096_v20 = vpop.eup %7095 }
 0x621   :  { %v5142_v46 = vmul.f32 %v7096_v20, %v8729_v16 }
 0x623   :  { %v5765_v53 = vpack.c.bf16 %v5142_v46, %v5141_v11  ;;  %v5050_v38 = vpop.xlane.xlu0 %5049 }
 0x624   :  { %7101 = vrcp.f32 %v5050_v38 }
 0x625   :  { %5828 = vst [vmem:[%s8961_s5 + $0x38] sm:$0xff] %v5765_v53   ;;  %v5052_v35 = vpop.xlane.xlu1 %5051 }
 0x626   :  { %v7098_v24 = vpop.eup %7097  ;;  %7103 = vrcp.f32 %v5052_v35 }
 0x627   :  { %v5143_v4 = vmul.f32 %v7098_v24, %v8735_v23 }
 0x628   :  { %v7100_v26 = vpop.eup %7099 }
 0x629   :  { %v5144_v17 = vmul.f32 %v7100_v26, %v8741_v61 }
 0x62b   :  { %v5770_v39 = vpack.c.bf16 %v5144_v17, %v5143_v4  ;;  %v5054_v10 = vpop.xlane.xlu0 %5053 }
 0x62c   :  { %7105 = vrcp.f32 %v5054_v10 }
 0x62d   :  { %5829 = vst [vmem:[%s8961_s5 + $0x40] sm:$0xff] %v5770_v39   ;;  %v5056_v51 = vpop.xlane.xlu1 %5055 }
 0x62e   :  { %v7102_v16 = vpop.eup %7101  ;;  %7107 = vrcp.f32 %v5056_v51 }
 0x62f   :  { %v5145_v6 = vmul.f32 %v7102_v16, %v8747_v59 }
 0x630   :  { %v7104_v13 = vpop.eup %7103 }
 0x631   :  { %v5146_v52 = vmul.f32 %v7104_v13, %v8753_v21 }
 0x633   :  { %v5775_v30 = vpack.c.bf16 %v5146_v52, %v5145_v6  ;;  %v5058_v56 = vpop.xlane.xlu0 %5057 }
 0x634   :  { %7109 = vrcp.f32 %v5058_v56 }
 0x635   :  { %5830 = vst [vmem:[%s8961_s5 + $0x48] sm:$0xff] %v5775_v30   ;;  %v5060_v23 = vpop.xlane.xlu1 %5059 }
 0x636   :  { %v7106_v61 = vpop.eup %7105  ;;  %7111 = vrcp.f32 %v5060_v23 }
 0x637   :  { %v5147_v29 = vmul.f32 %v7106_v61, %v8759_v5 }
 0x638   :  { %v7108_v44 = vpop.eup %7107 }
 0x639   :  { %v5148_v48 = vmul.f32 %v7108_v44, %v8765_v22 }
 0x63b   :  { %v5780_v49 = vpack.c.bf16 %v5148_v48, %v5147_v29  ;;  %v5062_v45 = vpop.xlane.xlu0 %5061 }
 0x63c   :  { %7113 = vrcp.f32 %v5062_v45 }
 0x63d   :  { %5831 = vst [vmem:[%s8961_s5 + $0x50] sm:$0xff] %v5780_v49   ;;  %v5064_v59 = vpop.xlane.xlu1 %5063 }
 0x63e   :  { %v7110_v21 = vpop.eup %7109  ;;  %7115 = vrcp.f32 %v5064_v59 }
 0x63f   :  { %v5149_v12 = vmul.f32 %v7110_v21, %v8771_v15 }
 0x640   :  { %v7112_v40 = vpop.eup %7111 }
 0x641   :  { %v5150_v0 = vmul.f32 %v7112_v40, %v8777_v47 }
 0x643   :  { %v5785_v31 = vpack.c.bf16 %v5150_v0, %v5149_v12  ;;  %v5066_v8 = vpop.xlane.xlu0 %5065 }
 0x644   :  { %7117 = vrcp.f32 %v5066_v8 }
 0x645   :  { %5832 = vst [vmem:[%s8961_s5 + $0x58] sm:$0xff] %v5785_v31   ;;  %v5068_v5 = vpop.xlane.xlu1 %5067 }
 0x646   :  { %v7114_v22 = vpop.eup %7113  ;;  %7119 = vrcp.f32 %v5068_v5 }
 0x647   :  { %v5151_v55 = vmul.f32 %v7114_v22, %v8783_v37 }
 0x648   :  { %v7116_v41 = vpop.eup %7115 }
 0x649   :  { %v5152_v27 = vmul.f32 %v7116_v41, %v8789_v3 }
 0x64b   :  { %v5790_v7 = vpack.c.bf16 %v5152_v27, %v5151_v55  ;;  %v5070_v19 = vpop.xlane.xlu0 %5069 }
 0x64c   :  { %7121 = vrcp.f32 %v5070_v19 }
 0x64d   :  { %5833 = vst [vmem:[%s8961_s5 + $0x60] sm:$0xff] %v5790_v7   ;;  %v5072_v15 = vpop.xlane.xlu1 %5071 }
 0x64e   :  { %v7118_v47 = vpop.eup %7117  ;;  %7123 = vrcp.f32 %v5072_v15 }
 0x64f   :  { %v5153_v50 = vmul.f32 %v7118_v47, %v8795_v43 }
 0x650   :  { %v7120_v18 = vpop.eup %7119 }
 0x651   :  { %v5154_v9 = vmul.f32 %v7120_v18, %v8801_v32 }
 0x653   :  { %v5795_v14 = vpack.c.bf16 %v5154_v9, %v5153_v50  ;;  %v5074_v60 = vpop.xlane.xlu0 %5073 }
 0x654   :  { %7125 = vrcp.f32 %v5074_v60 }
 0x655   :  { %5834 = vst [vmem:[%s8961_s5 + $0x68] sm:$0xff] %v5795_v14   ;;  %v5076_v37 = vpop.xlane.xlu1 %5075 }
 0x656   :  { %v7122_v3 = vpop.eup %7121  ;;  %7127 = vrcp.f32 %v5076_v37 }
 0x657   :  { %v5155_v34 = vmul.f32 %v7122_v3, %v8807_v2 }
 0x658   :  { %v7124_v57 = vpop.eup %7123 }
 0x659   :  { %v5156_v62 = vmul.f32 %v7124_v57, %v8813_v1 }
 0x65b   :  { %v5800_v20 = vpack.c.bf16 %v5156_v62, %v5155_v34  ;;  %v5078_v11 = vpop.xlane.xlu0 %5077 }
 0x65c   :  { %7129 = vrcp.f32 %v5078_v11 }
 0x65d   :  { %5835 = vst [vmem:[%s8961_s5 + $0x70] sm:$0xff] %v5800_v20   ;;  %v5080_v43 = vpop.xlane.xlu1 %5079 }
 0x65e   :  { %v7126_v32 = vpop.eup %7125  ;;  %7131 = vrcp.f32 %v5080_v43 }
 0x65f   :  { %v5157_v53 = vmul.f32 %v7126_v32, %v8819_v33 }
 0x660   :  { %v7128_v46 = vpop.eup %7127 }
 0x661   :  { %v5158_v38 = vmul.f32 %v7128_v46, %v8825_v54 }
 0x663   :  { %v5805_v35 = vpack.c.bf16 %v5158_v38, %v5157_v53  ;;  %v5082_v24 = vpop.xlane.xlu0 %5081 }
 0x664   :  { %7133 = vrcp.f32 %v5082_v24 }
 0x665   :  { %5836 = vst [vmem:[%s8961_s5 + $0x78] sm:$0xff] %v5805_v35   ;;  %v5084_v2 = vpop.xlane.xlu1 %5083 }
 0x666   :  { %v7130_v1 = vpop.eup %7129  ;;  %7135 = vrcp.f32 %v5084_v2 }
 0x667   :  { %v5159_v4 = vmul.f32 %v7130_v1, %v8831_v36 }
 0x668   :  { %v7132_v26 = vpop.eup %7131 }
 0x669   :  { %v5160_v17 = vmul.f32 %v7132_v26, %v8837_v25 }
 0x66b   :  { %v5810_v39 = vpack.c.bf16 %v5160_v17, %v5159_v4  ;;  %v5086_v10 = vpop.xlane.xlu0 %5085 }
 0x66c   :  { %7137 = vrcp.f32 %v5086_v10 }
 0x66d   :  { %5837 = vst [vmem:[%s8961_s5 + $0x80] sm:$0xff] %v5810_v39   ;;  %v5088_v33 = vpop.xlane.xlu1 %5087 }
 0x66e   :  { %v7134_v54 = vpop.eup %7133  ;;  %7139 = vrcp.f32 %v5088_v33 }
 0x66f   :  { %v5161_v16 = vmul.f32 %v7134_v54, %v8843_v42 }
 0x670   :  { %v7136_v51 = vpop.eup %7135 }
 0x671   :  { %v5162_v13 = vmul.f32 %v7136_v51, %v8848_v63 }
 0x673   :  { %v5815_v6 = vpack.c.bf16 %v5162_v13, %v5161_v16 }
 0x675   :  { %5838 = vst [vmem:[%s8961_s5 + $0x88] sm:$0xff] %v5815_v6  }
 0x676   :  { %v7138_v36 = vpop.eup %7137 }
 0x677   :  { %v5163_v52 = vmul.f32 %v7138_v36, %v8853_v58 }
 0x678   :  { %v7140_v25 = vpop.eup %7139 }
 0x679   :  { %v5164_v30 = vmul.f32 %v7140_v25, %v8858_v28 }
 0x67b   :  { %v5820_v56 = vpack.c.bf16 %v5164_v30, %v5163_v52 }
 0x67d   :  { %5839 = vst [vmem:[%s8961_s5 + $0x90] sm:$0xff] %v5820_v56  }
 0x67e   :  { %5359 = vsyncpa [#allocation3], 1 }
 0x67f   :  { %5360 = vsyncpa [#allocation5], 1 }
 0x680   :  { %5361 = vsyncpa [#allocation8], 1 }

</bundles_post_ra>
